<compile_context>
chip_gen: v6e
topology: v6e:2x2x1
jax: 0.10.0
libtpu: 0.0.40
codegen_flags: <defaults>
</compile_context>

<pallas_src>
import functools

import jax
import jax.numpy as jnp
from jax.experimental import pallas as pl
from jax.experimental.pallas import tpu as pltpu

_VMEM_LIMIT = 48 * 1024 * 1024


def _round_up(x, m):
    return (x + m - 1) // m * m


def _pick_tile(dim, target, unit):
    """Return (tile, padded_dim): tile is a multiple of `unit`, divides padded_dim."""
    d = _round_up(max(dim, 1), unit)
    if d <= target:
        return d, d
    for t in range(target, unit - 1, -unit):
        if d % t == 0:
            return t, d
    return target, _round_up(d, target)


def _tile_divisor(padded_dim, target, unit):
    """Largest tile <= target (multiple of unit) dividing padded_dim."""
    if padded_dim <= target:
        return padded_dim
    for t in range(target, unit - 1, -unit):
        if padded_dim % t == 0:
            return t
    return unit


# ---------------------------------------------------------------------------
# Fused GEMM kernels:  out = maybe_relu( (X @ W_scaled) + bias [+ residual] )
# bf16 operands, f32 accumulation in VMEM scratch; K is the innermost grid axis.
# ---------------------------------------------------------------------------
def _mm_kernel(x_ref, w_ref, b_ref, o_ref, acc_ref, *, relu):
    k = pl.program_id(2)

    @pl.when(k == 0)
    def _():
        acc_ref[...] = jnp.zeros_like(acc_ref)

    acc_ref[...] += jnp.dot(x_ref[...], w_ref[...],
                            preferred_element_type=jnp.float32)

    @pl.when(k == pl.num_programs(2) - 1)
    def _():
        y = acc_ref[...] + b_ref[...]
        if relu:
            y = jnp.maximum(y, 0.0)
        o_ref[...] = y.astype(o_ref.dtype)


def _mm_res_kernel(x_ref, w_ref, b_ref, r_ref, o_ref, acc_ref, *, relu):
    k = pl.program_id(2)

    @pl.when(k == 0)
    def _():
        acc_ref[...] = jnp.zeros_like(acc_ref)

    acc_ref[...] += jnp.dot(x_ref[...], w_ref[...],
                            preferred_element_type=jnp.float32)

    @pl.when(k == pl.num_programs(2) - 1)
    def _():
        y = acc_ref[...] + b_ref[...] + r_ref[...].astype(jnp.float32)
        if relu:
            y = jnp.maximum(y, 0.0)
        o_ref[...] = y.astype(o_ref.dtype)


def fused_matmul(x, w_packed, b_packed, n_valid, *, residual=None, relu=False,
                 out_dtype=jnp.bfloat16, tm_target=256, tn_target=256,
                 tk_target=512):
    """x:[M,K] (any float dtype) @ pre-packed bf16 w:[Kp,Np] with fused epilogue.

    Returns the valid [M, n_valid] slice.
    """
    M, K = x.shape
    Kp, Np = w_packed.shape
    tm, Mp = _pick_tile(M, tm_target, 16)          # bf16 sublane packing -> 16
    tn = _tile_divisor(Np, tn_target, 128)
    tk = _tile_divisor(Kp, tk_target, 128)

    xb = x.astype(jnp.bfloat16)
    if (M, K) != (Mp, Kp):
        xb = jnp.pad(xb, ((0, Mp - M), (0, Kp - K)))

    grid = (Mp // tm, Np // tn, Kp // tk)
    in_specs = [
        pl.BlockSpec((tm, tk), lambda i, j, k: (i, k)),
        pl.BlockSpec((tk, tn), lambda i, j, k: (k, j)),
        pl.BlockSpec((1, tn), lambda i, j, k: (0, j)),
    ]
    args = [xb, w_packed, b_packed]

    if residual is None:
        kernel = functools.partial(_mm_kernel, relu=relu)
    else:
        rb = residual.astype(jnp.bfloat16)
        if rb.shape != (Mp, Np):
            rb = jnp.pad(rb, ((0, Mp - rb.shape[0]), (0, Np - rb.shape[1])))
        in_specs.append(pl.BlockSpec((tm, tn), lambda i, j, k: (i, j)))
        args.append(rb)
        kernel = functools.partial(_mm_res_kernel, relu=relu)

    out = pl.pallas_call(
        kernel,
        out_shape=jax.ShapeDtypeStruct((Mp, Np), out_dtype),
        grid_spec=pltpu.PrefetchScalarGridSpec(
            num_scalar_prefetch=0,
            grid=grid,
            in_specs=in_specs,
            out_specs=pl.BlockSpec((tm, tn), lambda i, j, k: (i, j)),
            scratch_shapes=[pltpu.VMEM((tm, tn), jnp.float32)],
        ),
        compiler_params=pltpu.CompilerParams(
            dimension_semantics=("parallel", "parallel", "arbitrary"),
            vmem_limit_bytes=_VMEM_LIMIT),
    )(*args)
    return out[:M, :n_valid]


# ---------------------------------------------------------------------------
# Conv (NHWC) + folded BN + optional residual + optional ReLU
# ---------------------------------------------------------------------------
def conv_bn_act(x, packed, *, stride, pad, relu, residual=None):
    """x: NHWC bf16.  packed: dict with pre-padded bf16 weight / f32 bias."""
    N, H, W, _ = x.shape
    kh, kw, cin, cout = packed['kh'], packed['kw'], packed['cin'], packed['cout']
    Ho = (H + 2 * pad - kh) // stride + 1
    Wo = (W + 2 * pad - kw) // stride + 1
    M = N * Ho * Wo

    if kh == 1 and kw == 1:
        # 1x1 conv: no im2col at all — direct strided slice GEMM.
        src = jnp.pad(x, ((0, 0), (pad, pad), (pad, pad), (0, 0))) if pad else x
        cols = src[:, 0:stride * (Ho - 1) + 1:stride,
                   0:stride * (Wo - 1) + 1:stride, :].reshape(M, cin)
    else:
        xp = jnp.pad(x, ((0, 0), (pad, pad), (pad, pad), (0, 0)))
        patches = [xp[:, i:i + stride * (Ho - 1) + 1:stride,
                      j:j + stride * (Wo - 1) + 1:stride, :]
                   for i in range(kh) for j in range(kw)]
        cols = jnp.concatenate(patches, axis=-1).reshape(M, kh * kw * cin)

    res = None
    if residual is not None:
        res = residual.reshape(M, cout)

    out = fused_matmul(cols, packed['w'], packed['b'], cout,
                       residual=res, relu=relu, out_dtype=jnp.bfloat16)
    return out.reshape(N, Ho, Wo, cout)


# ---------------------------------------------------------------------------
# MaxPool2d(kernel=3, stride=2, padding=1), NHWC, lane-dense, row-tiled grid
# ---------------------------------------------------------------------------
def _maxpool_kernel(p_ref, o_ref):
    o_ref[...] = jnp.max(p_ref[...], axis=0)


def maxpool2d_nhwc(x, k=3, stride=2, pad=1):
    N, H, W, C = x.shape
    Ho = (H + 2 * pad - k) // stride + 1
    Wo = (W + 2 * pad - k) // stride + 1
    neg = float(jnp.finfo(x.dtype).min)   # TODO(synk): float dtypes only
    xp = jnp.pad(x, ((0, 0), (pad, pad), (pad, pad), (0, 0)),
                 constant_values=neg)
    taps = [xp[:, i:i + stride * (Ho - 1) + 1:stride,
               j:j + stride * (Wo - 1) + 1:stride, :]
            for i in range(k) for j in range(k)]
    # lane-dense layout: last dim = Wo*C (multiple of 128 after padding)
    p = jnp.stack(taps, axis=0).reshape(k * k, N * Ho, Wo * C)
    R, L = N * Ho, Wo * C
    tr, Rp = _pick_tile(R, 256, 16)
    Lp = _round_up(L, 128)
    if (R, L) != (Rp, Lp):
        p = jnp.pad(p, ((0, 0), (0, Rp - R), (0, Lp - L)),
                    constant_values=neg)

    out = pl.pallas_call(
        _maxpool_kernel,
        out_shape=jax.ShapeDtypeStruct((Rp, Lp), x.dtype),
        grid_spec=pltpu.PrefetchScalarGridSpec(
            num_scalar_prefetch=0,
            grid=(Rp // tr,),
            in_specs=[pl.BlockSpec((k * k, tr, Lp), lambda r: (0, r, 0))],
            out_specs=pl.BlockSpec((tr, Lp), lambda r: (r, 0)),
        ),
        compiler_params=pltpu.CompilerParams(
            dimension_semantics=("parallel",),
            vmem_limit_bytes=_VMEM_LIMIT),
    )(p)
    return out[:R, :L].reshape(N, Ho, Wo, C)


# ---------------------------------------------------------------------------
# Deterministic parameters, packed once (BN folded, bf16, padded) at build time
# ---------------------------------------------------------------------------
def _bn_fold(gamma, beta, mean, var, eps=1e-5):
    scale = gamma / jnp.sqrt(var + eps)
    return scale, beta - mean * scale


def _pack_matmul_weights(wm, bias):
    K, N = wm.shape
    Kp = _round_up(K, 128)
    Np = _round_up(N, 128)
    w_p = jnp.zeros((Kp, Np), jnp.bfloat16).at[:K, :N].set(
        wm.astype(jnp.bfloat16))
    b_p = jnp.zeros((1, Np), jnp.float32).at[0, :N].set(
        bias.astype(jnp.float32))
    return w_p, b_p


def make_params(key, layers=(1, 1, 1, 1), input_channels=1, num_classes=62):
    expansion = 1
    keys = list(jax.random.split(key, 256))
    kidx = [0]

    def nk():
        k = keys[kidx[0]]
        kidx[0] += 1
        return k

    def conv_w(cout, cin, kh, kw):
        fan_in = cin * kh * kw
        return jax.random.normal(nk(), (cout, cin, kh, kw),
                                 jnp.float32) * (2.0 / fan_in) ** 0.5

    def bn_p(c):
        i = jnp.arange(c, dtype=jnp.float32)
        gamma = 1.0 + 0.01 * jnp.cos(i)
        beta = 0.01 * jnp.sin(i)
        mean = 0.05 * jnp.sin(0.5 * i)
        var = 1.0 + 0.1 * jnp.cos(0.3 * i) ** 2
        return _bn_fold(gamma, beta, mean, var)

    def pack_conv(cout, cin, kh, kw):
        w = conv_w(cout, cin, kh, kw)
        scale, bias = bn_p(cout)
        # torch weight [Cout,Cin,kh,kw] -> [kh*kw*Cin, Cout]; fold BN scale in.
        wm = w.transpose(2, 3, 1, 0).reshape(kh * kw * cin, cout) * scale[None, :]
        w_p, b_p = _pack_matmul_weights(wm, bias)
        return {'w': w_p, 'b': b_p, 'kh': kh, 'kw': kw, 'cin': cin, 'cout': cout}

    params = {'conv1': pack_conv(64, input_channels, 7, 7), 'layers': []}
    in_ch = 64
    stage_channels = (64, 128, 256, 512)
    stage_strides = (1, 2, 2, 2)
    strides = []
    for out_ch, stride, nblocks in zip(stage_channels, stage_strides, layers):
        blocks, blk_strides = [], []
        for b in range(nblocks):
            s = stride if b == 0 else 1
            blk = {'conv1': pack_conv(out_ch, in_ch, 3, 3),
                   'conv2': pack_conv(out_ch, out_ch, 3, 3)}
            if s != 1 or in_ch != out_ch * expansion:
                blk['down'] = pack_conv(out_ch * expansion, in_ch, 1, 1)
            blocks.append(blk)
            blk_strides.append(s)
            in_ch = out_ch * expansion
        params['layers'].append(blocks)
        strides.append(blk_strides)

    fc_w = jax.random.normal(nk(), (num_classes, 512 * expansion),
                             jnp.float32) * (1.0 / (512 * expansion)) ** 0.5
    fc_b = 0.01 * jnp.arange(num_classes, dtype=jnp.float32)
    w_p, b_p = _pack_matmul_weights(fc_w.T, fc_b)
    params['fc'] = {'w': w_p, 'b': b_p, 'n': num_classes}
    return params, strides


# ---------------------------------------------------------------------------
# Forward pass (NHWC, bf16 activations)
# ---------------------------------------------------------------------------
def basic_block(x, blk, stride):
    out = conv_bn_act(x, blk['conv1'], stride=stride, pad=1, relu=True)
    if 'down' in blk:
        identity = conv_bn_act(x, blk['down'], stride=stride, pad=0, relu=False)
    else:
        identity = x
    # conv2 + bn2 + residual add + relu fused in the Pallas epilogue
    out = conv_bn_act(out, blk['conv2'], stride=1, pad=1, relu=True,
                      residual=identity)
    return out


def resnet_forward(params, strides, x_nchw):
    x = jnp.transpose(x_nchw, (0, 2, 3, 1)).astype(jnp.bfloat16)  # NHWC once
    x = conv_bn_act(x, params['conv1'], stride=2, pad=3, relu=True)
    x = maxpool2d_nhwc(x, k=3, stride=2, pad=1)
    for stage, stage_strides in zip(params['layers'], strides):
        for blk, s in zip(stage, stage_strides):
            x = basic_block(x, blk, s)
    # AdaptiveAvgPool2d((1,1)) + flatten — trivial spatial mean (glue)
    feat = jnp.mean(x.astype(jnp.float32), axis=(1, 2))            # [N, 512]
    logits = fused_matmul(feat, params['fc']['w'], params['fc']['b'],
                          params['fc']['n'], relu=False,
                          out_dtype=jnp.float32)
    return logits


if __name__ == "__main__":
    key = jax.random.PRNGKey(0)
    kp, kx = jax.random.split(key)
    # ResNet with BasicBlock (expansion=1), layers=[1,1,1,1], in_channels=1,
    # num_classes=62 (module defaults).
    params, strides = make_params(kp, layers=(1, 1, 1, 1),
                                  input_channels=1, num_classes=62)
    x = jax.random.normal(kx, (2, 1, 32, 32), jnp.float32)          # NCHW
    fwd = jax.jit(functools.partial(resnet_forward, params, strides))
    out = jax.block_until_ready(fwd(x))
    assert out.shape == (2, 62), out.shape
    assert bool(jnp.all(jnp.isfinite(out)))
    print("KERNEL_OK")
</pallas_src>

<mosaic_0001>
module attributes {stable_mosaic.version = 11 : i64} {
  func.func @_mm_kernel(%arg0: i32, %arg1: i32, %arg2: i32, %arg3: memref<256x128xbf16, #tpu.memory_space<vmem>>, %arg4: memref<128x128xbf16, #tpu.memory_space<vmem>>, %arg5: memref<1x128xf32, #tpu.memory_space<vmem>>, %arg6: memref<256x128xbf16, #tpu.memory_space<vmem>>, %arg7: memref<256x128xf32, #tpu.memory_space<vmem>>) attributes {dimension_semantics = [#tpu.dimension_semantics<parallel>, #tpu.dimension_semantics<parallel>, #tpu.dimension_semantics<arbitrary>], iteration_bounds = array<i64: 2, 1, 1>, scalar_prefetch = 0 : i64, scratch_operands = 1 : i64, tpu.core_type = #tpu.core_type<tc>, window_params = [{transform_indices = @transform_0, window_bounds = array<i64: 256, 128>}, {transform_indices = @transform_1, window_bounds = array<i64: 128, 128>}, {transform_indices = @transform_2, window_bounds = array<i64: 1, 128>}, {transform_indices = @transform_3, window_bounds = array<i64: 256, 128>}]} {
    %c0_i32 = arith.constant 0 : i32
    %0 = arith.cmpi eq, %arg2, %c0_i32 : i32
    %1 = arith.extui %0 : i1 to i32
    %c0_i32_0 = arith.constant 0 : i32
    %2 = arith.cmpi ne, %1, %c0_i32_0 : i32
    scf.if %2 {
      %cst_10 = arith.constant 0.000000e+00 : f32
      %12 = vector.broadcast %cst_10 : f32 to vector<256x128xf32>
      %c0_11 = arith.constant 0 : index
      %c0_12 = arith.constant 0 : index
      %13 = vector.load %arg7[%c0_11, %c0_12] : memref<256x128xf32, #tpu.memory_space<vmem>>, vector<256x128xf32>
      tpu.vector_store %arg7[%c0_11, %c0_12], %12 {strides = array<i32>} : memref<256x128xf32, #tpu.memory_space<vmem>>, vector<256x128xf32>,
    } else {
    }
    %c0 = arith.constant 0 : index
    %c0_1 = arith.constant 0 : index
    %3 = vector.load %arg7[%c0, %c0_1] : memref<256x128xf32, #tpu.memory_space<vmem>>, vector<256x128xf32>
    %c0_2 = arith.constant 0 : index
    %c0_3 = arith.constant 0 : index
    %4 = vector.load %arg3[%c0_2, %c0_3] : memref<256x128xbf16, #tpu.memory_space<vmem>>, vector<256x128xbf16>
    %c0_4 = arith.constant 0 : index
    %c0_5 = arith.constant 0 : index
    %5 = vector.load %arg4[%c0_4, %c0_5] : memref<128x128xbf16, #tpu.memory_space<vmem>>, vector<128x128xbf16>
    %cst = arith.constant dense<0.000000e+00> : vector<256x128xf32>
    %6 = tpu.matmul %4, %5, %cst {dimension_numbers = #tpu.dot_dimension_numbers<[1], [0], [0], [1], [0, 0, 1, 1], [], []>} : vector<256x128xbf16>, vector<128x128xbf16>, vector<256x128xf32> -> vector<256x128xf32>
    %7 = arith.addf %3, %6 : vector<256x128xf32>
    %c0_6 = arith.constant 0 : index
    %c0_7 = arith.constant 0 : index
    %8 = vector.load %arg7[%c0_6, %c0_7] : memref<256x128xf32, #tpu.memory_space<vmem>>, vector<256x128xf32>
    tpu.vector_store %arg7[%c0_6, %c0_7], %7 {strides = array<i32>} : memref<256x128xf32, #tpu.memory_space<vmem>>, vector<256x128xf32>,
    %c0_i32_8 = arith.constant 0 : i32
    %9 = arith.cmpi eq, %arg2, %c0_i32_8 : i32
    %10 = arith.extui %9 : i1 to i32
    %c0_i32_9 = arith.constant 0 : i32
    %11 = arith.cmpi ne, %10, %c0_i32_9 : i32
    scf.if %11 {
      %c0_10 = arith.constant 0 : index
      %c0_11 = arith.constant 0 : index
      %12 = vector.load %arg7[%c0_10, %c0_11] : memref<256x128xf32, #tpu.memory_space<vmem>>, vector<256x128xf32>
      %c0_12 = arith.constant 0 : index
      %c0_13 = arith.constant 0 : index
      %13 = vector.load %arg5[%c0_12, %c0_13] : memref<1x128xf32, #tpu.memory_space<vmem>>, vector<1x128xf32>
      %14 = vector.broadcast %13 : vector<1x128xf32> to vector<256x128xf32>
      %15 = arith.addf %12, %14 : vector<256x128xf32>
      %cst_14 = arith.constant 0.000000e+00 : f32
      %16 = vector.broadcast %cst_14 : f32 to vector<256x128xf32>
      %17 = arith.maximumf %15, %16 : vector<256x128xf32>
      %18 = arith.truncf %17 : vector<256x128xf32> to vector<256x128xbf16>
      %c0_15 = arith.constant 0 : index
      %c0_16 = arith.constant 0 : index
      %19 = vector.load %arg6[%c0_15, %c0_16] : memref<256x128xbf16, #tpu.memory_space<vmem>>, vector<256x128xbf16>
      tpu.vector_store %arg6[%c0_15, %c0_16], %18 {strides = array<i32>} : memref<256x128xbf16, #tpu.memory_space<vmem>>, vector<256x128xbf16>,
    } else {
    }
    return
  }
  func.func @transform_0(%arg0: i32, %arg1: i32, %arg2: i32) -> (i32, i32) {
    %c0_i32 = arith.constant 0 : i32
    return %arg0, %arg2 : i32, i32
  }
  func.func @transform_1(%arg0: i32, %arg1: i32, %arg2: i32) -> (i32, i32) {
    %c0_i32 = arith.constant 0 : i32
    return %arg2, %arg1 : i32, i32
  }
  func.func @transform_2(%arg0: i32, %arg1: i32, %arg2: i32) -> (i32, i32) {
    %c0_i32 = arith.constant 0 : i32
    %c0_i32_0 = arith.constant 0 : i32
    return %c0_i32, %arg1 : i32, i32
  }
  func.func @transform_3(%arg0: i32, %arg1: i32, %arg2: i32) -> (i32, i32) {
    %c0_i32 = arith.constant 0 : i32
    return %arg0, %arg1 : i32, i32
  }
}

module attributes {stable_mosaic.version = 11 : i64} {
  func.func @_maxpool_kernel(%arg0: i32, %arg1: memref<9x16x512xbf16, #tpu.memory_space<vmem>>, %arg2: memref<16x512xbf16, #tpu.memory_space<vmem>>) attributes {dimension_semantics = [#tpu.dimension_semantics<parallel>], iteration_bounds = array<i64: 1>, scalar_prefetch = 0 : i64, scratch_operands = 0 : i64, tpu.core_type = #tpu.core_type<tc>, window_params = [{transform_indices = @transform_0, window_bounds = array<i64: 9, 16, 512>}, {transform_indices = @transform_1, window_bounds = array<i64: 16, 512>}]} {
    %c0 = arith.constant 0 : index
    %c0_0 = arith.constant 0 : index
    %c0_1 = arith.constant 0 : index
    %0 = vector.load %arg1[%c0, %c0_0, %c0_1] : memref<9x16x512xbf16, #tpu.memory_space<vmem>>, vector<9x16x512xbf16>
    %cst = arith.constant dense<0xFF80> : vector<16x512xbf16>
    %1 = vector.multi_reduction <maximumf>, %0, %cst [0] : vector<9x16x512xbf16> to vector<16x512xbf16>
    %c0_2 = arith.constant 0 : index
    %c0_3 = arith.constant 0 : index
    %2 = vector.load %arg2[%c0_2, %c0_3] : memref<16x512xbf16, #tpu.memory_space<vmem>>, vector<16x512xbf16>
    tpu.vector_store %arg2[%c0_2, %c0_3], %1 {strides = array<i32>} : memref<16x512xbf16, #tpu.memory_space<vmem>>, vector<16x512xbf16>,
    return
  }
  func.func @transform_0(%arg0: i32) -> (i32, i32, i32) {
    %c0_i32 = arith.constant 0 : i32
    %c0_i32_0 = arith.constant 0 : i32
    %c0_i32_1 = arith.constant 0 : i32
    return %c0_i32, %arg0, %c0_i32_0 : i32, i32, i32
  }
  func.func @transform_1(%arg0: i32) -> (i32, i32) {
    %c0_i32 = arith.constant 0 : i32
    %c0_i32_0 = arith.constant 0 : i32
    return %arg0, %c0_i32 : i32, i32
  }
}

module attributes {stable_mosaic.version = 11 : i64} {
  func.func @_mm_res_kernel(%arg0: i32, %arg1: i32, %arg2: i32, %arg3: memref<128x128xbf16, #tpu.memory_space<vmem>>, %arg4: memref<128x128xbf16, #tpu.memory_space<vmem>>, %arg5: memref<1x128xf32, #tpu.memory_space<vmem>>, %arg6: memref<128x128xbf16, #tpu.memory_space<vmem>>, %arg7: memref<128x128xbf16, #tpu.memory_space<vmem>>, %arg8: memref<128x128xf32, #tpu.memory_space<vmem>>) attributes {dimension_semantics = [#tpu.dimension_semantics<parallel>, #tpu.dimension_semantics<parallel>, #tpu.dimension_semantics<arbitrary>], iteration_bounds = array<i64: 1, 1, 5>, scalar_prefetch = 0 : i64, scratch_operands = 1 : i64, tpu.core_type = #tpu.core_type<tc>, window_params = [{transform_indices = @transform_0, window_bounds = array<i64: 128, 128>}, {transform_indices = @transform_1, window_bounds = array<i64: 128, 128>}, {transform_indices = @transform_2, window_bounds = array<i64: 1, 128>}, {transform_indices = @transform_3, window_bounds = array<i64: 128, 128>}, {transform_indices = @transform_4, window_bounds = array<i64: 128, 128>}]} {
    %c0_i32 = arith.constant 0 : i32
    %0 = arith.cmpi eq, %arg2, %c0_i32 : i32
    %1 = arith.extui %0 : i1 to i32
    %c0_i32_0 = arith.constant 0 : i32
    %2 = arith.cmpi ne, %1, %c0_i32_0 : i32
    scf.if %2 {
      %cst_9 = arith.constant 0.000000e+00 : f32
      %12 = vector.broadcast %cst_9 : f32 to vector<128x128xf32>
      %c0_10 = arith.constant 0 : index
      %c0_11 = arith.constant 0 : index
      %13 = vector.load %arg8[%c0_10, %c0_11] : memref<128x128xf32, #tpu.memory_space<vmem>>, vector<128x128xf32>
      tpu.vector_store %arg8[%c0_10, %c0_11], %12 {strides = array<i32>} : memref<128x128xf32, #tpu.memory_space<vmem>>, vector<128x128xf32>,
    } else {
    }
    %c0 = arith.constant 0 : index
    %c0_1 = arith.constant 0 : index
    %3 = vector.load %arg8[%c0, %c0_1] : memref<128x128xf32, #tpu.memory_space<vmem>>, vector<128x128xf32>
    %c0_2 = arith.constant 0 : index
    %c0_3 = arith.constant 0 : index
    %4 = vector.load %arg3[%c0_2, %c0_3] : memref<128x128xbf16, #tpu.memory_space<vmem>>, vector<128x128xbf16>
    %c0_4 = arith.constant 0 : index
    %c0_5 = arith.constant 0 : index
    %5 = vector.load %arg4[%c0_4, %c0_5] : memref<128x128xbf16, #tpu.memory_space<vmem>>, vector<128x128xbf16>
    %cst = arith.constant dense<0.000000e+00> : vector<128x128xf32>
    %6 = tpu.matmul %4, %5, %cst {dimension_numbers = #tpu.dot_dimension_numbers<[1], [0], [0], [1], [0, 0, 1, 1], [], []>} : vector<128x128xbf16>, vector<128x128xbf16>, vector<128x128xf32> -> vector<128x128xf32>
    %7 = arith.addf %3, %6 : vector<128x128xf32>
    %c0_6 = arith.constant 0 : index
    %c0_7 = arith.constant 0 : index
    %8 = vector.load %arg8[%c0_6, %c0_7] : memref<128x128xf32, #tpu.memory_space<vmem>>, vector<128x128xf32>
    tpu.vector_store %arg8[%c0_6, %c0_7], %7 {strides = array<i32>} : memref<128x128xf32, #tpu.memory_space<vmem>>, vector<128x128xf32>,
    %c4_i32 = arith.constant 4 : i32
    %9 = arith.cmpi eq, %arg2, %c4_i32 : i32
    %10 = arith.extui %9 : i1 to i32
    %c0_i32_8 = arith.constant 0 : i32
    %11 = arith.cmpi ne, %10, %c0_i32_8 : i32
    scf.if %11 {
      %c0_9 = arith.constant 0 : index
      %c0_10 = arith.constant 0 : index
      %12 = vector.load %arg8[%c0_9, %c0_10] : memref<128x128xf32, #tpu.memory_space<vmem>>, vector<128x128xf32>
      %c0_11 = arith.constant 0 : index
      %c0_12 = arith.constant 0 : index
      %13 = vector.load %arg5[%c0_11, %c0_12] : memref<1x128xf32, #tpu.memory_space<vmem>>, vector<1x128xf32>
      %14 = vector.broadcast %13 : vector<1x128xf32> to vector<128x128xf32>
      %15 = arith.addf %12, %14 : vector<128x128xf32>
      %c0_13 = arith.constant 0 : index
      %c0_14 = arith.constant 0 : index
      %16 = vector.load %arg6[%c0_13, %c0_14] : memref<128x128xbf16, #tpu.memory_space<vmem>>, vector<128x128xbf16>
      %17 = arith.extf %16 : vector<128x128xbf16> to vector<128x128xf32>
      %18 = arith.addf %15, %17 : vector<128x128xf32>
      %cst_15 = arith.constant 0.000000e+00 : f32
      %19 = vector.broadcast %cst_15 : f32 to vector<128x128xf32>
      %20 = arith.maximumf %18, %19 : vector<128x128xf32>
      %21 = arith.truncf %20 : vector<128x128xf32> to vector<128x128xbf16>
      %c0_16 = arith.constant 0 : index
      %c0_17 = arith.constant 0 : index
      %22 = vector.load %arg7[%c0_16, %c0_17] : memref<128x128xbf16, #tpu.memory_space<vmem>>, vector<128x128xbf16>
      tpu.vector_store %arg7[%c0_16, %c0_17], %21 {strides = array<i32>} : memref<128x128xbf16, #tpu.memory_space<vmem>>, vector<128x128xbf16>,
    } else {
    }
    return
  }
  func.func @transform_0(%arg0: i32, %arg1: i32, %arg2: i32) -> (i32, i32) {
    %c0_i32 = arith.constant 0 : i32
    return %arg0, %arg2 : i32, i32
  }
  func.func @transform_1(%arg0: i32, %arg1: i32, %arg2: i32) -> (i32, i32) {
    %c0_i32 = arith.constant 0 : i32
    return %arg2, %arg1 : i32, i32
  }
  func.func @transform_2(%arg0: i32, %arg1: i32, %arg2: i32) -> (i32, i32) {
    %c0_i32 = arith.constant 0 : i32
    %c0_i32_0 = arith.constant 0 : i32
    return %c0_i32, %arg1 : i32, i32
  }
  func.func @transform_3(%arg0: i32, %arg1: i32, %arg2: i32) -> (i32, i32) {
    %c0_i32 = arith.constant 0 : i32
    return %arg0, %arg1 : i32, i32
  }
  func.func @transform_4(%arg0: i32, %arg1: i32, %arg2: i32) -> (i32, i32) {
    %c0_i32 = arith.constant 0 : i32
    return %arg0, %arg1 : i32, i32
  }
}

module attributes {stable_mosaic.version = 11 : i64} {
  func.func @_mm_kernel(%arg0: i32, %arg1: i32, %arg2: i32, %arg3: memref<128x128xbf16, #tpu.memory_space<vmem>>, %arg4: memref<128x128xbf16, #tpu.memory_space<vmem>>, %arg5: memref<1x128xf32, #tpu.memory_space<vmem>>, %arg6: memref<128x128xbf16, #tpu.memory_space<vmem>>, %arg7: memref<128x128xf32, #tpu.memory_space<vmem>>) attributes {dimension_semantics = [#tpu.dimension_semantics<parallel>, #tpu.dimension_semantics<parallel>, #tpu.dimension_semantics<arbitrary>], iteration_bounds = array<i64: 1, 1, 5>, scalar_prefetch = 0 : i64, scratch_operands = 1 : i64, tpu.core_type = #tpu.core_type<tc>, window_params = [{transform_indices = @transform_0, window_bounds = array<i64: 128, 128>}, {transform_indices = @transform_1, window_bounds = array<i64: 128, 128>}, {transform_indices = @transform_2, window_bounds = array<i64: 1, 128>}, {transform_indices = @transform_3, window_bounds = array<i64: 128, 128>}]} {
    %c0_i32 = arith.constant 0 : i32
    %0 = arith.cmpi eq, %arg2, %c0_i32 : i32
    %1 = arith.extui %0 : i1 to i32
    %c0_i32_0 = arith.constant 0 : i32
    %2 = arith.cmpi ne, %1, %c0_i32_0 : i32
    scf.if %2 {
      %cst_9 = arith.constant 0.000000e+00 : f32
      %12 = vector.broadcast %cst_9 : f32 to vector<128x128xf32>
      %c0_10 = arith.constant 0 : index
      %c0_11 = arith.constant 0 : index
      %13 = vector.load %arg7[%c0_10, %c0_11] : memref<128x128xf32, #tpu.memory_space<vmem>>, vector<128x128xf32>
      tpu.vector_store %arg7[%c0_10, %c0_11], %12 {strides = array<i32>} : memref<128x128xf32, #tpu.memory_space<vmem>>, vector<128x128xf32>,
    } else {
    }
    %c0 = arith.constant 0 : index
    %c0_1 = arith.constant 0 : index
    %3 = vector.load %arg7[%c0, %c0_1] : memref<128x128xf32, #tpu.memory_space<vmem>>, vector<128x128xf32>
    %c0_2 = arith.constant 0 : index
    %c0_3 = arith.constant 0 : index
    %4 = vector.load %arg3[%c0_2, %c0_3] : memref<128x128xbf16, #tpu.memory_space<vmem>>, vector<128x128xbf16>
    %c0_4 = arith.constant 0 : index
    %c0_5 = arith.constant 0 : index
    %5 = vector.load %arg4[%c0_4, %c0_5] : memref<128x128xbf16, #tpu.memory_space<vmem>>, vector<128x128xbf16>
    %cst = arith.constant dense<0.000000e+00> : vector<128x128xf32>
    %6 = tpu.matmul %4, %5, %cst {dimension_numbers = #tpu.dot_dimension_numbers<[1], [0], [0], [1], [0, 0, 1, 1], [], []>} : vector<128x128xbf16>, vector<128x128xbf16>, vector<128x128xf32> -> vector<128x128xf32>
    %7 = arith.addf %3, %6 : vector<128x128xf32>
    %c0_6 = arith.constant 0 : index
    %c0_7 = arith.constant 0 : index
    %8 = vector.load %arg7[%c0_6, %c0_7] : memref<128x128xf32, #tpu.memory_space<vmem>>, vector<128x128xf32>
    tpu.vector_store %arg7[%c0_6, %c0_7], %7 {strides = array<i32>} : memref<128x128xf32, #tpu.memory_space<vmem>>, vector<128x128xf32>,
    %c4_i32 = arith.constant 4 : i32
    %9 = arith.cmpi eq, %arg2, %c4_i32 : i32
    %10 = arith.extui %9 : i1 to i32
    %c0_i32_8 = arith.constant 0 : i32
    %11 = arith.cmpi ne, %10, %c0_i32_8 : i32
    scf.if %11 {
      %c0_9 = arith.constant 0 : index
      %c0_10 = arith.constant 0 : index
      %12 = vector.load %arg7[%c0_9, %c0_10] : memref<128x128xf32, #tpu.memory_space<vmem>>, vector<128x128xf32>
      %c0_11 = arith.constant 0 : index
      %c0_12 = arith.constant 0 : index
      %13 = vector.load %arg5[%c0_11, %c0_12] : memref<1x128xf32, #tpu.memory_space<vmem>>, vector<1x128xf32>
      %14 = vector.broadcast %13 : vector<1x128xf32> to vector<128x128xf32>
      %15 = arith.addf %12, %14 : vector<128x128xf32>
      %cst_13 = arith.constant 0.000000e+00 : f32
      %16 = vector.broadcast %cst_13 : f32 to vector<128x128xf32>
      %17 = arith.maximumf %15, %16 : vector<128x128xf32>
      %18 = arith.truncf %17 : vector<128x128xf32> to vector<128x128xbf16>
      %c0_14 = arith.constant 0 : index
      %c0_15 = arith.constant 0 : index
      %19 = vector.load %arg6[%c0_14, %c0_15] : memref<128x128xbf16, #tpu.memory_space<vmem>>, vector<128x128xbf16>
      tpu.vector_store %arg6[%c0_14, %c0_15], %18 {strides = array<i32>} : memref<128x128xbf16, #tpu.memory_space<vmem>>, vector<128x128xbf16>,
    } else {
    }
    return
  }
  func.func @transform_0(%arg0: i32, %arg1: i32, %arg2: i32) -> (i32, i32) {
    %c0_i32 = arith.constant 0 : i32
    return %arg0, %arg2 : i32, i32
  }
  func.func @transform_1(%arg0: i32, %arg1: i32, %arg2: i32) -> (i32, i32) {
    %c0_i32 = arith.constant 0 : i32
    return %arg2, %arg1 : i32, i32
  }
  func.func @transform_2(%arg0: i32, %arg1: i32, %arg2: i32) -> (i32, i32) {
    %c0_i32 = arith.constant 0 : i32
    %c0_i32_0 = arith.constant 0 : i32
    return %c0_i32, %arg1 : i32, i32
  }
  func.func @transform_3(%arg0: i32, %arg1: i32, %arg2: i32) -> (i32, i32) {
    %c0_i32 = arith.constant 0 : i32
    return %arg0, %arg1 : i32, i32
  }
}

module attributes {stable_mosaic.version = 11 : i64} {
  func.func @_mm_kernel(%arg0: i32, %arg1: i32, %arg2: i32, %arg3: memref<32x128xbf16, #tpu.memory_space<vmem>>, %arg4: memref<128x128xbf16, #tpu.memory_space<vmem>>, %arg5: memref<1x128xf32, #tpu.memory_space<vmem>>, %arg6: memref<32x128xbf16, #tpu.memory_space<vmem>>, %arg7: memref<32x128xf32, #tpu.memory_space<vmem>>) attributes {dimension_semantics = [#tpu.dimension_semantics<parallel>, #tpu.dimension_semantics<parallel>, #tpu.dimension_semantics<arbitrary>], iteration_bounds = array<i64: 1, 1, 5>, scalar_prefetch = 0 : i64, scratch_operands = 1 : i64, tpu.core_type = #tpu.core_type<tc>, window_params = [{transform_indices = @transform_0, window_bounds = array<i64: 32, 128>}, {transform_indices = @transform_1, window_bounds = array<i64: 128, 128>}, {transform_indices = @transform_2, window_bounds = array<i64: 1, 128>}, {transform_indices = @transform_3, window_bounds = array<i64: 32, 128>}]} {
    %c0_i32 = arith.constant 0 : i32
    %0 = arith.cmpi eq, %arg2, %c0_i32 : i32
    %1 = arith.extui %0 : i1 to i32
    %c0_i32_0 = arith.constant 0 : i32
    %2 = arith.cmpi ne, %1, %c0_i32_0 : i32
    scf.if %2 {
      %cst_9 = arith.constant 0.000000e+00 : f32
      %12 = vector.broadcast %cst_9 : f32 to vector<32x128xf32>
      %c0_10 = arith.constant 0 : index
      %c0_11 = arith.constant 0 : index
      %13 = vector.load %arg7[%c0_10, %c0_11] : memref<32x128xf32, #tpu.memory_space<vmem>>, vector<32x128xf32>
      tpu.vector_store %arg7[%c0_10, %c0_11], %12 {strides = array<i32>} : memref<32x128xf32, #tpu.memory_space<vmem>>, vector<32x128xf32>,
    } else {
    }
    %c0 = arith.constant 0 : index
    %c0_1 = arith.constant 0 : index
    %3 = vector.load %arg7[%c0, %c0_1] : memref<32x128xf32, #tpu.memory_space<vmem>>, vector<32x128xf32>
    %c0_2 = arith.constant 0 : index
    %c0_3 = arith.constant 0 : index
    %4 = vector.load %arg3[%c0_2, %c0_3] : memref<32x128xbf16, #tpu.memory_space<vmem>>, vector<32x128xbf16>
    %c0_4 = arith.constant 0 : index
    %c0_5 = arith.constant 0 : index
    %5 = vector.load %arg4[%c0_4, %c0_5] : memref<128x128xbf16, #tpu.memory_space<vmem>>, vector<128x128xbf16>
    %cst = arith.constant dense<0.000000e+00> : vector<32x128xf32>
    %6 = tpu.matmul %4, %5, %cst {dimension_numbers = #tpu.dot_dimension_numbers<[1], [0], [0], [1], [0, 0, 1, 1], [], []>} : vector<32x128xbf16>, vector<128x128xbf16>, vector<32x128xf32> -> vector<32x128xf32>
    %7 = arith.addf %3, %6 : vector<32x128xf32>
    %c0_6 = arith.constant 0 : index
    %c0_7 = arith.constant 0 : index
    %8 = vector.load %arg7[%c0_6, %c0_7] : memref<32x128xf32, #tpu.memory_space<vmem>>, vector<32x128xf32>
    tpu.vector_store %arg7[%c0_6, %c0_7], %7 {strides = array<i32>} : memref<32x128xf32, #tpu.memory_space<vmem>>, vector<32x128xf32>,
    %c4_i32 = arith.constant 4 : i32
    %9 = arith.cmpi eq, %arg2, %c4_i32 : i32
    %10 = arith.extui %9 : i1 to i32
    %c0_i32_8 = arith.constant 0 : i32
    %11 = arith.cmpi ne, %10, %c0_i32_8 : i32
    scf.if %11 {
      %c0_9 = arith.constant 0 : index
      %c0_10 = arith.constant 0 : index
      %12 = vector.load %arg7[%c0_9, %c0_10] : memref<32x128xf32, #tpu.memory_space<vmem>>, vector<32x128xf32>
      %c0_11 = arith.constant 0 : index
      %c0_12 = arith.constant 0 : index
      %13 = vector.load %arg5[%c0_11, %c0_12] : memref<1x128xf32, #tpu.memory_space<vmem>>, vector<1x128xf32>
      %14 = vector.broadcast %13 : vector<1x128xf32> to vector<32x128xf32>
      %15 = arith.addf %12, %14 : vector<32x128xf32>
      %cst_13 = arith.constant 0.000000e+00 : f32
      %16 = vector.broadcast %cst_13 : f32 to vector<32x128xf32>
      %17 = arith.maximumf %15, %16 : vector<32x128xf32>
      %18 = arith.truncf %17 : vector<32x128xf32> to vector<32x128xbf16>
      %c0_14 = arith.constant 0 : index
      %c0_15 = arith.constant 0 : index
      %19 = vector.load %arg6[%c0_14, %c0_15] : memref<32x128xbf16, #tpu.memory_space<vmem>>, vector<32x128xbf16>
      tpu.vector_store %arg6[%c0_14, %c0_15], %18 {strides = array<i32>} : memref<32x128xbf16, #tpu.memory_space<vmem>>, vector<32x128xbf16>,
    } else {
    }
    return
  }
  func.func @transform_0(%arg0: i32, %arg1: i32, %arg2: i32) -> (i32, i32) {
    %c0_i32 = arith.constant 0 : i32
    return %arg0, %arg2 : i32, i32
  }
  func.func @transform_1(%arg0: i32, %arg1: i32, %arg2: i32) -> (i32, i32) {
    %c0_i32 = arith.constant 0 : i32
    return %arg2, %arg1 : i32, i32
  }
  func.func @transform_2(%arg0: i32, %arg1: i32, %arg2: i32) -> (i32, i32) {
    %c0_i32 = arith.constant 0 : i32
    %c0_i32_0 = arith.constant 0 : i32
    return %c0_i32, %arg1 : i32, i32
  }
  func.func @transform_3(%arg0: i32, %arg1: i32, %arg2: i32) -> (i32, i32) {
    %c0_i32 = arith.constant 0 : i32
    return %arg0, %arg1 : i32, i32
  }
}

module attributes {stable_mosaic.version = 11 : i64} {
  func.func @_mm_res_kernel(%arg0: i32, %arg1: i32, %arg2: i32, %arg3: memref<32x384xbf16, #tpu.memory_space<vmem>>, %arg4: memref<384x128xbf16, #tpu.memory_space<vmem>>, %arg5: memref<1x128xf32, #tpu.memory_space<vmem>>, %arg6: memref<32x128xbf16, #tpu.memory_space<vmem>>, %arg7: memref<32x128xbf16, #tpu.memory_space<vmem>>, %arg8: memref<32x128xf32, #tpu.memory_space<vmem>>) attributes {dimension_semantics = [#tpu.dimension_semantics<parallel>, #tpu.dimension_semantics<parallel>, #tpu.dimension_semantics<arbitrary>], iteration_bounds = array<i64: 1, 1, 3>, scalar_prefetch = 0 : i64, scratch_operands = 1 : i64, tpu.core_type = #tpu.core_type<tc>, window_params = [{transform_indices = @transform_0, window_bounds = array<i64: 32, 384>}, {transform_indices = @transform_1, window_bounds = array<i64: 384, 128>}, {transform_indices = @transform_2, window_bounds = array<i64: 1, 128>}, {transform_indices = @transform_3, window_bounds = array<i64: 32, 128>}, {transform_indices = @transform_4, window_bounds = array<i64: 32, 128>}]} {
    %c0_i32 = arith.constant 0 : i32
    %0 = arith.cmpi eq, %arg2, %c0_i32 : i32
    %1 = arith.extui %0 : i1 to i32
    %c0_i32_0 = arith.constant 0 : i32
    %2 = arith.cmpi ne, %1, %c0_i32_0 : i32
    scf.if %2 {
      %cst_9 = arith.constant 0.000000e+00 : f32
      %12 = vector.broadcast %cst_9 : f32 to vector<32x128xf32>
      %c0_10 = arith.constant 0 : index
      %c0_11 = arith.constant 0 : index
      %13 = vector.load %arg8[%c0_10, %c0_11] : memref<32x128xf32, #tpu.memory_space<vmem>>, vector<32x128xf32>
      tpu.vector_store %arg8[%c0_10, %c0_11], %12 {strides = array<i32>} : memref<32x128xf32, #tpu.memory_space<vmem>>, vector<32x128xf32>,
    } else {
    }
    %c0 = arith.constant 0 : index
    %c0_1 = arith.constant 0 : index
    %3 = vector.load %arg8[%c0, %c0_1] : memref<32x128xf32, #tpu.memory_space<vmem>>, vector<32x128xf32>
    %c0_2 = arith.constant 0 : index
    %c0_3 = arith.constant 0 : index
    %4 = vector.load %arg3[%c0_2, %c0_3] : memref<32x384xbf16, #tpu.memory_space<vmem>>, vector<32x384xbf16>
    %c0_4 = arith.constant 0 : index
    %c0_5 = arith.constant 0 : index
    %5 = vector.load %arg4[%c0_4, %c0_5] : memref<384x128xbf16, #tpu.memory_space<vmem>>, vector<384x128xbf16>
    %cst = arith.constant dense<0.000000e+00> : vector<32x128xf32>
    %6 = tpu.matmul %4, %5, %cst {dimension_numbers = #tpu.dot_dimension_numbers<[1], [0], [0], [1], [0, 0, 1, 1], [], []>} : vector<32x384xbf16>, vector<384x128xbf16>, vector<32x128xf32> -> vector<32x128xf32>
    %7 = arith.addf %3, %6 : vector<32x128xf32>
    %c0_6 = arith.constant 0 : index
    %c0_7 = arith.constant 0 : index
    %8 = vector.load %arg8[%c0_6, %c0_7] : memref<32x128xf32, #tpu.memory_space<vmem>>, vector<32x128xf32>
    tpu.vector_store %arg8[%c0_6, %c0_7], %7 {strides = array<i32>} : memref<32x128xf32, #tpu.memory_space<vmem>>, vector<32x128xf32>,
    %c2_i32 = arith.constant 2 : i32
    %9 = arith.cmpi eq, %arg2, %c2_i32 : i32
    %10 = arith.extui %9 : i1 to i32
    %c0_i32_8 = arith.constant 0 : i32
    %11 = arith.cmpi ne, %10, %c0_i32_8 : i32
    scf.if %11 {
      %c0_9 = arith.constant 0 : index
      %c0_10 = arith.constant 0 : index
      %12 = vector.load %arg8[%c0_9, %c0_10] : memref<32x128xf32, #tpu.memory_space<vmem>>, vector<32x128xf32>
      %c0_11 = arith.constant 0 : index
      %c0_12 = arith.constant 0 : index
      %13 = vector.load %arg5[%c0_11, %c0_12] : memref<1x128xf32, #tpu.memory_space<vmem>>, vector<1x128xf32>
      %14 = vector.broadcast %13 : vector<1x128xf32> to vector<32x128xf32>
      %15 = arith.addf %12, %14 : vector<32x128xf32>
      %c0_13 = arith.constant 0 : index
      %c0_14 = arith.constant 0 : index
      %16 = vector.load %arg6[%c0_13, %c0_14] : memref<32x128xbf16, #tpu.memory_space<vmem>>, vector<32x128xbf16>
      %17 = arith.extf %16 : vector<32x128xbf16> to vector<32x128xf32>
      %18 = arith.addf %15, %17 : vector<32x128xf32>
      %cst_15 = arith.constant 0.000000e+00 : f32
      %19 = vector.broadcast %cst_15 : f32 to vector<32x128xf32>
      %20 = arith.maximumf %18, %19 : vector<32x128xf32>
      %21 = arith.truncf %20 : vector<32x128xf32> to vector<32x128xbf16>
      %c0_16 = arith.constant 0 : index
      %c0_17 = arith.constant 0 : index
      %22 = vector.load %arg7[%c0_16, %c0_17] : memref<32x128xbf16, #tpu.memory_space<vmem>>, vector<32x128xbf16>
      tpu.vector_store %arg7[%c0_16, %c0_17], %21 {strides = array<i32>} : memref<32x128xbf16, #tpu.memory_space<vmem>>, vector<32x128xbf16>,
    } else {
    }
    return
  }
  func.func @transform_0(%arg0: i32, %arg1: i32, %arg2: i32) -> (i32, i32) {
    %c0_i32 = arith.constant 0 : i32
    return %arg0, %arg2 : i32, i32
  }
  func.func @transform_1(%arg0: i32, %arg1: i32, %arg2: i32) -> (i32, i32) {
    %c0_i32 = arith.constant 0 : i32
    return %arg2, %arg1 : i32, i32
  }
  func.func @transform_2(%arg0: i32, %arg1: i32, %arg2: i32) -> (i32, i32) {
    %c0_i32 = arith.constant 0 : i32
    %c0_i32_0 = arith.constant 0 : i32
    return %c0_i32, %arg1 : i32, i32
  }
  func.func @transform_3(%arg0: i32, %arg1: i32, %arg2: i32) -> (i32, i32) {
    %c0_i32 = arith.constant 0 : i32
    return %arg0, %arg1 : i32, i32
  }
  func.func @transform_4(%arg0: i32, %arg1: i32, %arg2: i32) -> (i32, i32) {
    %c0_i32 = arith.constant 0 : i32
    return %arg0, %arg1 : i32, i32
  }
}

module attributes {stable_mosaic.version = 11 : i64} {
  func.func @_mm_kernel(%arg0: i32, %arg1: i32, %arg2: i32, %arg3: memref<32x128xbf16, #tpu.memory_space<vmem>>, %arg4: memref<128x128xbf16, #tpu.memory_space<vmem>>, %arg5: memref<1x128xf32, #tpu.memory_space<vmem>>, %arg6: memref<32x128xbf16, #tpu.memory_space<vmem>>, %arg7: memref<32x128xf32, #tpu.memory_space<vmem>>) attributes {dimension_semantics = [#tpu.dimension_semantics<parallel>, #tpu.dimension_semantics<parallel>, #tpu.dimension_semantics<arbitrary>], iteration_bounds = array<i64: 1, 1, 1>, scalar_prefetch = 0 : i64, scratch_operands = 1 : i64, tpu.core_type = #tpu.core_type<tc>, window_params = [{transform_indices = @transform_0, window_bounds = array<i64: 32, 128>}, {transform_indices = @transform_1, window_bounds = array<i64: 128, 128>}, {transform_indices = @transform_2, window_bounds = array<i64: 1, 128>}, {transform_indices = @transform_3, window_bounds = array<i64: 32, 128>}]} {
    %c0_i32 = arith.constant 0 : i32
    %0 = arith.cmpi eq, %arg2, %c0_i32 : i32
    %1 = arith.extui %0 : i1 to i32
    %c0_i32_0 = arith.constant 0 : i32
    %2 = arith.cmpi ne, %1, %c0_i32_0 : i32
    scf.if %2 {
      %cst_10 = arith.constant 0.000000e+00 : f32
      %12 = vector.broadcast %cst_10 : f32 to vector<32x128xf32>
      %c0_11 = arith.constant 0 : index
      %c0_12 = arith.constant 0 : index
      %13 = vector.load %arg7[%c0_11, %c0_12] : memref<32x128xf32, #tpu.memory_space<vmem>>, vector<32x128xf32>
      tpu.vector_store %arg7[%c0_11, %c0_12], %12 {strides = array<i32>} : memref<32x128xf32, #tpu.memory_space<vmem>>, vector<32x128xf32>,
    } else {
    }
    %c0 = arith.constant 0 : index
    %c0_1 = arith.constant 0 : index
    %3 = vector.load %arg7[%c0, %c0_1] : memref<32x128xf32, #tpu.memory_space<vmem>>, vector<32x128xf32>
    %c0_2 = arith.constant 0 : index
    %c0_3 = arith.constant 0 : index
    %4 = vector.load %arg3[%c0_2, %c0_3] : memref<32x128xbf16, #tpu.memory_space<vmem>>, vector<32x128xbf16>
    %c0_4 = arith.constant 0 : index
    %c0_5 = arith.constant 0 : index
    %5 = vector.load %arg4[%c0_4, %c0_5] : memref<128x128xbf16, #tpu.memory_space<vmem>>, vector<128x128xbf16>
    %cst = arith.constant dense<0.000000e+00> : vector<32x128xf32>
    %6 = tpu.matmul %4, %5, %cst {dimension_numbers = #tpu.dot_dimension_numbers<[1], [0], [0], [1], [0, 0, 1, 1], [], []>} : vector<32x128xbf16>, vector<128x128xbf16>, vector<32x128xf32> -> vector<32x128xf32>
    %7 = arith.addf %3, %6 : vector<32x128xf32>
    %c0_6 = arith.constant 0 : index
    %c0_7 = arith.constant 0 : index
    %8 = vector.load %arg7[%c0_6, %c0_7] : memref<32x128xf32, #tpu.memory_space<vmem>>, vector<32x128xf32>
    tpu.vector_store %arg7[%c0_6, %c0_7], %7 {strides = array<i32>} : memref<32x128xf32, #tpu.memory_space<vmem>>, vector<32x128xf32>,
    %c0_i32_8 = arith.constant 0 : i32
    %9 = arith.cmpi eq, %arg2, %c0_i32_8 : i32
    %10 = arith.extui %9 : i1 to i32
    %c0_i32_9 = arith.constant 0 : i32
    %11 = arith.cmpi ne, %10, %c0_i32_9 : i32
    scf.if %11 {
      %c0_10 = arith.constant 0 : index
      %c0_11 = arith.constant 0 : index
      %12 = vector.load %arg7[%c0_10, %c0_11] : memref<32x128xf32, #tpu.memory_space<vmem>>, vector<32x128xf32>
      %c0_12 = arith.constant 0 : index
      %c0_13 = arith.constant 0 : index
      %13 = vector.load %arg5[%c0_12, %c0_13] : memref<1x128xf32, #tpu.memory_space<vmem>>, vector<1x128xf32>
      %14 = vector.broadcast %13 : vector<1x128xf32> to vector<32x128xf32>
      %15 = arith.addf %12, %14 : vector<32x128xf32>
      %16 = arith.truncf %15 : vector<32x128xf32> to vector<32x128xbf16>
      %c0_14 = arith.constant 0 : index
      %c0_15 = arith.constant 0 : index
      %17 = vector.load %arg6[%c0_14, %c0_15] : memref<32x128xbf16, #tpu.memory_space<vmem>>, vector<32x128xbf16>
      tpu.vector_store %arg6[%c0_14, %c0_15], %16 {strides = array<i32>} : memref<32x128xbf16, #tpu.memory_space<vmem>>, vector<32x128xbf16>,
    } else {
    }
    return
  }
  func.func @transform_0(%arg0: i32, %arg1: i32, %arg2: i32) -> (i32, i32) {
    %c0_i32 = arith.constant 0 : i32
    return %arg0, %arg2 : i32, i32
  }
  func.func @transform_1(%arg0: i32, %arg1: i32, %arg2: i32) -> (i32, i32) {
    %c0_i32 = arith.constant 0 : i32
    return %arg2, %arg1 : i32, i32
  }
  func.func @transform_2(%arg0: i32, %arg1: i32, %arg2: i32) -> (i32, i32) {
    %c0_i32 = arith.constant 0 : i32
    %c0_i32_0 = arith.constant 0 : i32
    return %c0_i32, %arg1 : i32, i32
  }
  func.func @transform_3(%arg0: i32, %arg1: i32, %arg2: i32) -> (i32, i32) {
    %c0_i32 = arith.constant 0 : i32
    return %arg0, %arg1 : i32, i32
  }
}

module attributes {stable_mosaic.version = 11 : i64} {
  func.func @_mm_kernel(%arg0: i32, %arg1: i32, %arg2: i32, %arg3: memref<16x384xbf16, #tpu.memory_space<vmem>>, %arg4: memref<384x256xbf16, #tpu.memory_space<vmem>>, %arg5: memref<1x256xf32, #tpu.memory_space<vmem>>, %arg6: memref<16x256xbf16, #tpu.memory_space<vmem>>, %arg7: memref<16x256xf32, #tpu.memory_space<vmem>>) attributes {dimension_semantics = [#tpu.dimension_semantics<parallel>, #tpu.dimension_semantics<parallel>, #tpu.dimension_semantics<arbitrary>], iteration_bounds = array<i64: 1, 1, 3>, scalar_prefetch = 0 : i64, scratch_operands = 1 : i64, tpu.core_type = #tpu.core_type<tc>, window_params = [{transform_indices = @transform_0, window_bounds = array<i64: 16, 384>}, {transform_indices = @transform_1, window_bounds = array<i64: 384, 256>}, {transform_indices = @transform_2, window_bounds = array<i64: 1, 256>}, {transform_indices = @transform_3, window_bounds = array<i64: 16, 256>}]} {
    %c0_i32 = arith.constant 0 : i32
    %0 = arith.cmpi eq, %arg2, %c0_i32 : i32
    %1 = arith.extui %0 : i1 to i32
    %c0_i32_0 = arith.constant 0 : i32
    %2 = arith.cmpi ne, %1, %c0_i32_0 : i32
    scf.if %2 {
      %cst_9 = arith.constant 0.000000e+00 : f32
      %12 = vector.broadcast %cst_9 : f32 to vector<16x256xf32>
      %c0_10 = arith.constant 0 : index
      %c0_11 = arith.constant 0 : index
      %13 = vector.load %arg7[%c0_10, %c0_11] : memref<16x256xf32, #tpu.memory_space<vmem>>, vector<16x256xf32>
      tpu.vector_store %arg7[%c0_10, %c0_11], %12 {strides = array<i32>} : memref<16x256xf32, #tpu.memory_space<vmem>>, vector<16x256xf32>,
    } else {
    }
    %c0 = arith.constant 0 : index
    %c0_1 = arith.constant 0 : index
    %3 = vector.load %arg7[%c0, %c0_1] : memref<16x256xf32, #tpu.memory_space<vmem>>, vector<16x256xf32>
    %c0_2 = arith.constant 0 : index
    %c0_3 = arith.constant 0 : index
    %4 = vector.load %arg3[%c0_2, %c0_3] : memref<16x384xbf16, #tpu.memory_space<vmem>>, vector<16x384xbf16>
    %c0_4 = arith.constant 0 : index
    %c0_5 = arith.constant 0 : index
    %5 = vector.load %arg4[%c0_4, %c0_5] : memref<384x256xbf16, #tpu.memory_space<vmem>>, vector<384x256xbf16>
    %cst = arith.constant dense<0.000000e+00> : vector<16x256xf32>
    %6 = tpu.matmul %4, %5, %cst {dimension_numbers = #tpu.dot_dimension_numbers<[1], [0], [0], [1], [0, 0, 1, 1], [], []>} : vector<16x384xbf16>, vector<384x256xbf16>, vector<16x256xf32> -> vector<16x256xf32>
    %7 = arith.addf %3, %6 : vector<16x256xf32>
    %c0_6 = arith.constant 0 : index
    %c0_7 = arith.constant 0 : index
    %8 = vector.load %arg7[%c0_6, %c0_7] : memref<16x256xf32, #tpu.memory_space<vmem>>, vector<16x256xf32>
    tpu.vector_store %arg7[%c0_6, %c0_7], %7 {strides = array<i32>} : memref<16x256xf32, #tpu.memory_space<vmem>>, vector<16x256xf32>,
    %c2_i32 = arith.constant 2 : i32
    %9 = arith.cmpi eq, %arg2, %c2_i32 : i32
    %10 = arith.extui %9 : i1 to i32
    %c0_i32_8 = arith.constant 0 : i32
    %11 = arith.cmpi ne, %10, %c0_i32_8 : i32
    scf.if %11 {
      %c0_9 = arith.constant 0 : index
      %c0_10 = arith.constant 0 : index
      %12 = vector.load %arg7[%c0_9, %c0_10] : memref<16x256xf32, #tpu.memory_space<vmem>>, vector<16x256xf32>
      %c0_11 = arith.constant 0 : index
      %c0_12 = arith.constant 0 : index
      %13 = vector.load %arg5[%c0_11, %c0_12] : memref<1x256xf32, #tpu.memory_space<vmem>>, vector<1x256xf32>
      %14 = vector.broadcast %13 : vector<1x256xf32> to vector<16x256xf32>
      %15 = arith.addf %12, %14 : vector<16x256xf32>
      %cst_13 = arith.constant 0.000000e+00 : f32
      %16 = vector.broadcast %cst_13 : f32 to vector<16x256xf32>
      %17 = arith.maximumf %15, %16 : vector<16x256xf32>
      %18 = arith.truncf %17 : vector<16x256xf32> to vector<16x256xbf16>
      %c0_14 = arith.constant 0 : index
      %c0_15 = arith.constant 0 : index
      %19 = vector.load %arg6[%c0_14, %c0_15] : memref<16x256xbf16, #tpu.memory_space<vmem>>, vector<16x256xbf16>
      tpu.vector_store %arg6[%c0_14, %c0_15], %18 {strides = array<i32>} : memref<16x256xbf16, #tpu.memory_space<vmem>>, vector<16x256xbf16>,
    } else {
    }
    return
  }
  func.func @transform_0(%arg0: i32, %arg1: i32, %arg2: i32) -> (i32, i32) {
    %c0_i32 = arith.constant 0 : i32
    return %arg0, %arg2 : i32, i32
  }
  func.func @transform_1(%arg0: i32, %arg1: i32, %arg2: i32) -> (i32, i32) {
    %c0_i32 = arith.constant 0 : i32
    return %arg2, %arg1 : i32, i32
  }
  func.func @transform_2(%arg0: i32, %arg1: i32, %arg2: i32) -> (i32, i32) {
    %c0_i32 = arith.constant 0 : i32
    %c0_i32_0 = arith.constant 0 : i32
    return %c0_i32, %arg1 : i32, i32
  }
  func.func @transform_3(%arg0: i32, %arg1: i32, %arg2: i32) -> (i32, i32) {
    %c0_i32 = arith.constant 0 : i32
    return %arg0, %arg1 : i32, i32
  }
}

module attributes {stable_mosaic.version = 11 : i64} {
  func.func @_mm_res_kernel(%arg0: i32, %arg1: i32, %arg2: i32, %arg3: memref<16x384xbf16, #tpu.memory_space<vmem>>, %arg4: memref<384x256xbf16, #tpu.memory_space<vmem>>, %arg5: memref<1x256xf32, #tpu.memory_space<vmem>>, %arg6: memref<16x256xbf16, #tpu.memory_space<vmem>>, %arg7: memref<16x256xbf16, #tpu.memory_space<vmem>>, %arg8: memref<16x256xf32, #tpu.memory_space<vmem>>) attributes {dimension_semantics = [#tpu.dimension_semantics<parallel>, #tpu.dimension_semantics<parallel>, #tpu.dimension_semantics<arbitrary>], iteration_bounds = array<i64: 1, 1, 6>, scalar_prefetch = 0 : i64, scratch_operands = 1 : i64, tpu.core_type = #tpu.core_type<tc>, window_params = [{transform_indices = @transform_0, window_bounds = array<i64: 16, 384>}, {transform_indices = @transform_1, window_bounds = array<i64: 384, 256>}, {transform_indices = @transform_2, window_bounds = array<i64: 1, 256>}, {transform_indices = @transform_3, window_bounds = array<i64: 16, 256>}, {transform_indices = @transform_4, window_bounds = array<i64: 16, 256>}]} {
    %c0_i32 = arith.constant 0 : i32
    %0 = arith.cmpi eq, %arg2, %c0_i32 : i32
    %1 = arith.extui %0 : i1 to i32
    %c0_i32_0 = arith.constant 0 : i32
    %2 = arith.cmpi ne, %1, %c0_i32_0 : i32
    scf.if %2 {
      %cst_9 = arith.constant 0.000000e+00 : f32
      %12 = vector.broadcast %cst_9 : f32 to vector<16x256xf32>
      %c0_10 = arith.constant 0 : index
      %c0_11 = arith.constant 0 : index
      %13 = vector.load %arg8[%c0_10, %c0_11] : memref<16x256xf32, #tpu.memory_space<vmem>>, vector<16x256xf32>
      tpu.vector_store %arg8[%c0_10, %c0_11], %12 {strides = array<i32>} : memref<16x256xf32, #tpu.memory_space<vmem>>, vector<16x256xf32>,
    } else {
    }
    %c0 = arith.constant 0 : index
    %c0_1 = arith.constant 0 : index
    %3 = vector.load %arg8[%c0, %c0_1] : memref<16x256xf32, #tpu.memory_space<vmem>>, vector<16x256xf32>
    %c0_2 = arith.constant 0 : index
    %c0_3 = arith.constant 0 : index
    %4 = vector.load %arg3[%c0_2, %c0_3] : memref<16x384xbf16, #tpu.memory_space<vmem>>, vector<16x384xbf16>
    %c0_4 = arith.constant 0 : index
    %c0_5 = arith.constant 0 : index
    %5 = vector.load %arg4[%c0_4, %c0_5] : memref<384x256xbf16, #tpu.memory_space<vmem>>, vector<384x256xbf16>
    %cst = arith.constant dense<0.000000e+00> : vector<16x256xf32>
    %6 = tpu.matmul %4, %5, %cst {dimension_numbers = #tpu.dot_dimension_numbers<[1], [0], [0], [1], [0, 0, 1, 1], [], []>} : vector<16x384xbf16>, vector<384x256xbf16>, vector<16x256xf32> -> vector<16x256xf32>
    %7 = arith.addf %3, %6 : vector<16x256xf32>
    %c0_6 = arith.constant 0 : index
    %c0_7 = arith.constant 0 : index
    %8 = vector.load %arg8[%c0_6, %c0_7] : memref<16x256xf32, #tpu.memory_space<vmem>>, vector<16x256xf32>
    tpu.vector_store %arg8[%c0_6, %c0_7], %7 {strides = array<i32>} : memref<16x256xf32, #tpu.memory_space<vmem>>, vector<16x256xf32>,
    %c5_i32 = arith.constant 5 : i32
    %9 = arith.cmpi eq, %arg2, %c5_i32 : i32
    %10 = arith.extui %9 : i1 to i32
    %c0_i32_8 = arith.constant 0 : i32
    %11 = arith.cmpi ne, %10, %c0_i32_8 : i32
    scf.if %11 {
      %c0_9 = arith.constant 0 : index
      %c0_10 = arith.constant 0 : index
      %12 = vector.load %arg8[%c0_9, %c0_10] : memref<16x256xf32, #tpu.memory_space<vmem>>, vector<16x256xf32>
      %c0_11 = arith.constant 0 : index
      %c0_12 = arith.constant 0 : index
      %13 = vector.load %arg5[%c0_11, %c0_12] : memref<1x256xf32, #tpu.memory_space<vmem>>, vector<1x256xf32>
      %14 = vector.broadcast %13 : vector<1x256xf32> to vector<16x256xf32>
      %15 = arith.addf %12, %14 : vector<16x256xf32>
      %c0_13 = arith.constant 0 : index
      %c0_14 = arith.constant 0 : index
      %16 = vector.load %arg6[%c0_13, %c0_14] : memref<16x256xbf16, #tpu.memory_space<vmem>>, vector<16x256xbf16>
      %17 = arith.extf %16 : vector<16x256xbf16> to vector<16x256xf32>
      %18 = arith.addf %15, %17 : vector<16x256xf32>
      %cst_15 = arith.constant 0.000000e+00 : f32
      %19 = vector.broadcast %cst_15 : f32 to vector<16x256xf32>
      %20 = arith.maximumf %18, %19 : vector<16x256xf32>
      %21 = arith.truncf %20 : vector<16x256xf32> to vector<16x256xbf16>
      %c0_16 = arith.constant 0 : index
      %c0_17 = arith.constant 0 : index
      %22 = vector.load %arg7[%c0_16, %c0_17] : memref<16x256xbf16, #tpu.memory_space<vmem>>, vector<16x256xbf16>
      tpu.vector_store %arg7[%c0_16, %c0_17], %21 {strides = array<i32>} : memref<16x256xbf16, #tpu.memory_space<vmem>>, vector<16x256xbf16>,
    } else {
    }
    return
  }
  func.func @transform_0(%arg0: i32, %arg1: i32, %arg2: i32) -> (i32, i32) {
    %c0_i32 = arith.constant 0 : i32
    return %arg0, %arg2 : i32, i32
  }
  func.func @transform_1(%arg0: i32, %arg1: i32, %arg2: i32) -> (i32, i32) {
    %c0_i32 = arith.constant 0 : i32
    return %arg2, %arg1 : i32, i32
  }
  func.func @transform_2(%arg0: i32, %arg1: i32, %arg2: i32) -> (i32, i32) {
    %c0_i32 = arith.constant 0 : i32
    %c0_i32_0 = arith.constant 0 : i32
    return %c0_i32, %arg1 : i32, i32
  }
  func.func @transform_3(%arg0: i32, %arg1: i32, %arg2: i32) -> (i32, i32) {
    %c0_i32 = arith.constant 0 : i32
    return %arg0, %arg1 : i32, i32
  }
  func.func @transform_4(%arg0: i32, %arg1: i32, %arg2: i32) -> (i32, i32) {
    %c0_i32 = arith.constant 0 : i32
    return %arg0, %arg1 : i32, i32
  }
}

module attributes {stable_mosaic.version = 11 : i64} {
  func.func @_mm_kernel(%arg0: i32, %arg1: i32, %arg2: i32, %arg3: memref<16x128xbf16, #tpu.memory_space<vmem>>, %arg4: memref<128x256xbf16, #tpu.memory_space<vmem>>, %arg5: memref<1x256xf32, #tpu.memory_space<vmem>>, %arg6: memref<16x256xbf16, #tpu.memory_space<vmem>>, %arg7: memref<16x256xf32, #tpu.memory_space<vmem>>) attributes {dimension_semantics = [#tpu.dimension_semantics<parallel>, #tpu.dimension_semantics<parallel>, #tpu.dimension_semantics<arbitrary>], iteration_bounds = array<i64: 1, 1, 1>, scalar_prefetch = 0 : i64, scratch_operands = 1 : i64, tpu.core_type = #tpu.core_type<tc>, window_params = [{transform_indices = @transform_0, window_bounds = array<i64: 16, 128>}, {transform_indices = @transform_1, window_bounds = array<i64: 128, 256>}, {transform_indices = @transform_2, window_bounds = array<i64: 1, 256>}, {transform_indices = @transform_3, window_bounds = array<i64: 16, 256>}]} {
    %c0_i32 = arith.constant 0 : i32
    %0 = arith.cmpi eq, %arg2, %c0_i32 : i32
    %1 = arith.extui %0 : i1 to i32
    %c0_i32_0 = arith.constant 0 : i32
    %2 = arith.cmpi ne, %1, %c0_i32_0 : i32
    scf.if %2 {
      %cst_10 = arith.constant 0.000000e+00 : f32
      %12 = vector.broadcast %cst_10 : f32 to vector<16x256xf32>
      %c0_11 = arith.constant 0 : index
      %c0_12 = arith.constant 0 : index
      %13 = vector.load %arg7[%c0_11, %c0_12] : memref<16x256xf32, #tpu.memory_space<vmem>>, vector<16x256xf32>
      tpu.vector_store %arg7[%c0_11, %c0_12], %12 {strides = array<i32>} : memref<16x256xf32, #tpu.memory_space<vmem>>, vector<16x256xf32>,
    } else {
    }
    %c0 = arith.constant 0 : index
    %c0_1 = arith.constant 0 : index
    %3 = vector.load %arg7[%c0, %c0_1] : memref<16x256xf32, #tpu.memory_space<vmem>>, vector<16x256xf32>
    %c0_2 = arith.constant 0 : index
    %c0_3 = arith.constant 0 : index
    %4 = vector.load %arg3[%c0_2, %c0_3] : memref<16x128xbf16, #tpu.memory_space<vmem>>, vector<16x128xbf16>
    %c0_4 = arith.constant 0 : index
    %c0_5 = arith.constant 0 : index
    %5 = vector.load %arg4[%c0_4, %c0_5] : memref<128x256xbf16, #tpu.memory_space<vmem>>, vector<128x256xbf16>
    %cst = arith.constant dense<0.000000e+00> : vector<16x256xf32>
    %6 = tpu.matmul %4, %5, %cst {dimension_numbers = #tpu.dot_dimension_numbers<[1], [0], [0], [1], [0, 0, 1, 1], [], []>} : vector<16x128xbf16>, vector<128x256xbf16>, vector<16x256xf32> -> vector<16x256xf32>
    %7 = arith.addf %3, %6 : vector<16x256xf32>
    %c0_6 = arith.constant 0 : index
    %c0_7 = arith.constant 0 : index
    %8 = vector.load %arg7[%c0_6, %c0_7] : memref<16x256xf32, #tpu.memory_space<vmem>>, vector<16x256xf32>
    tpu.vector_store %arg7[%c0_6, %c0_7], %7 {strides = array<i32>} : memref<16x256xf32, #tpu.memory_space<vmem>>, vector<16x256xf32>,
    %c0_i32_8 = arith.constant 0 : i32
    %9 = arith.cmpi eq, %arg2, %c0_i32_8 : i32
    %10 = arith.extui %9 : i1 to i32
    %c0_i32_9 = arith.constant 0 : i32
    %11 = arith.cmpi ne, %10, %c0_i32_9 : i32
    scf.if %11 {
      %c0_10 = arith.constant 0 : index
      %c0_11 = arith.constant 0 : index
      %12 = vector.load %arg7[%c0_10, %c0_11] : memref<16x256xf32, #tpu.memory_space<vmem>>, vector<16x256xf32>
      %c0_12 = arith.constant 0 : index
      %c0_13 = arith.constant 0 : index
      %13 = vector.load %arg5[%c0_12, %c0_13] : memref<1x256xf32, #tpu.memory_space<vmem>>, vector<1x256xf32>
      %14 = vector.broadcast %13 : vector<1x256xf32> to vector<16x256xf32>
      %15 = arith.addf %12, %14 : vector<16x256xf32>
      %16 = arith.truncf %15 : vector<16x256xf32> to vector<16x256xbf16>
      %c0_14 = arith.constant 0 : index
      %c0_15 = arith.constant 0 : index
      %17 = vector.load %arg6[%c0_14, %c0_15] : memref<16x256xbf16, #tpu.memory_space<vmem>>, vector<16x256xbf16>
      tpu.vector_store %arg6[%c0_14, %c0_15], %16 {strides = array<i32>} : memref<16x256xbf16, #tpu.memory_space<vmem>>, vector<16x256xbf16>,
    } else {
    }
    return
  }
  func.func @transform_0(%arg0: i32, %arg1: i32, %arg2: i32) -> (i32, i32) {
    %c0_i32 = arith.constant 0 : i32
    return %arg0, %arg2 : i32, i32
  }
  func.func @transform_1(%arg0: i32, %arg1: i32, %arg2: i32) -> (i32, i32) {
    %c0_i32 = arith.constant 0 : i32
    return %arg2, %arg1 : i32, i32
  }
  func.func @transform_2(%arg0: i32, %arg1: i32, %arg2: i32) -> (i32, i32) {
    %c0_i32 = arith.constant 0 : i32
    %c0_i32_0 = arith.constant 0 : i32
    return %c0_i32, %arg1 : i32, i32
  }
  func.func @transform_3(%arg0: i32, %arg1: i32, %arg2: i32) -> (i32, i32) {
    %c0_i32 = arith.constant 0 : i32
    return %arg0, %arg1 : i32, i32
  }
}

module attributes {stable_mosaic.version = 11 : i64} {
  func.func @_mm_kernel(%arg0: i32, %arg1: i32, %arg2: i32, %arg3: memref<16x384xbf16, #tpu.memory_space<vmem>>, %arg4: memref<384x256xbf16, #tpu.memory_space<vmem>>, %arg5: memref<1x256xf32, #tpu.memory_space<vmem>>, %arg6: memref<16x256xbf16, #tpu.memory_space<vmem>>, %arg7: memref<16x256xf32, #tpu.memory_space<vmem>>) attributes {dimension_semantics = [#tpu.dimension_semantics<parallel>, #tpu.dimension_semantics<parallel>, #tpu.dimension_semantics<arbitrary>], iteration_bounds = array<i64: 1, 2, 6>, scalar_prefetch = 0 : i64, scratch_operands = 1 : i64, tpu.core_type = #tpu.core_type<tc>, window_params = [{transform_indices = @transform_0, window_bounds = array<i64: 16, 384>}, {transform_indices = @transform_1, window_bounds = array<i64: 384, 256>}, {transform_indices = @transform_2, window_bounds = array<i64: 1, 256>}, {transform_indices = @transform_3, window_bounds = array<i64: 16, 256>}]} {
    %c0_i32 = arith.constant 0 : i32
    %0 = arith.cmpi eq, %arg2, %c0_i32 : i32
    %1 = arith.extui %0 : i1 to i32
    %c0_i32_0 = arith.constant 0 : i32
    %2 = arith.cmpi ne, %1, %c0_i32_0 : i32
    scf.if %2 {
      %cst_9 = arith.constant 0.000000e+00 : f32
      %12 = vector.broadcast %cst_9 : f32 to vector<16x256xf32>
      %c0_10 = arith.constant 0 : index
      %c0_11 = arith.constant 0 : index
      %13 = vector.load %arg7[%c0_10, %c0_11] : memref<16x256xf32, #tpu.memory_space<vmem>>, vector<16x256xf32>
      tpu.vector_store %arg7[%c0_10, %c0_11], %12 {strides = array<i32>} : memref<16x256xf32, #tpu.memory_space<vmem>>, vector<16x256xf32>,
    } else {
    }
    %c0 = arith.constant 0 : index
    %c0_1 = arith.constant 0 : index
    %3 = vector.load %arg7[%c0, %c0_1] : memref<16x256xf32, #tpu.memory_space<vmem>>, vector<16x256xf32>
    %c0_2 = arith.constant 0 : index
    %c0_3 = arith.constant 0 : index
    %4 = vector.load %arg3[%c0_2, %c0_3] : memref<16x384xbf16, #tpu.memory_space<vmem>>, vector<16x384xbf16>
    %c0_4 = arith.constant 0 : index
    %c0_5 = arith.constant 0 : index
    %5 = vector.load %arg4[%c0_4, %c0_5] : memref<384x256xbf16, #tpu.memory_space<vmem>>, vector<384x256xbf16>
    %cst = arith.constant dense<0.000000e+00> : vector<16x256xf32>
    %6 = tpu.matmul %4, %5, %cst {dimension_numbers = #tpu.dot_dimension_numbers<[1], [0], [0], [1], [0, 0, 1, 1], [], []>} : vector<16x384xbf16>, vector<384x256xbf16>, vector<16x256xf32> -> vector<16x256xf32>
    %7 = arith.addf %3, %6 : vector<16x256xf32>
    %c0_6 = arith.constant 0 : index
    %c0_7 = arith.constant 0 : index
    %8 = vector.load %arg7[%c0_6, %c0_7] : memref<16x256xf32, #tpu.memory_space<vmem>>, vector<16x256xf32>
    tpu.vector_store %arg7[%c0_6, %c0_7], %7 {strides = array<i32>} : memref<16x256xf32, #tpu.memory_space<vmem>>, vector<16x256xf32>,
    %c5_i32 = arith.constant 5 : i32
    %9 = arith.cmpi eq, %arg2, %c5_i32 : i32
    %10 = arith.extui %9 : i1 to i32
    %c0_i32_8 = arith.constant 0 : i32
    %11 = arith.cmpi ne, %10, %c0_i32_8 : i32
    scf.if %11 {
      %c0_9 = arith.constant 0 : index
      %c0_10 = arith.constant 0 : index
      %12 = vector.load %arg7[%c0_9, %c0_10] : memref<16x256xf32, #tpu.memory_space<vmem>>, vector<16x256xf32>
      %c0_11 = arith.constant 0 : index
      %c0_12 = arith.constant 0 : index
      %13 = vector.load %arg5[%c0_11, %c0_12] : memref<1x256xf32, #tpu.memory_space<vmem>>, vector<1x256xf32>
      %14 = vector.broadcast %13 : vector<1x256xf32> to vector<16x256xf32>
      %15 = arith.addf %12, %14 : vector<16x256xf32>
      %cst_13 = arith.constant 0.000000e+00 : f32
      %16 = vector.broadcast %cst_13 : f32 to vector<16x256xf32>
      %17 = arith.maximumf %15, %16 : vector<16x256xf32>
      %18 = arith.truncf %17 : vector<16x256xf32> to vector<16x256xbf16>
      %c0_14 = arith.constant 0 : index
      %c0_15 = arith.constant 0 : index
      %19 = vector.load %arg6[%c0_14, %c0_15] : memref<16x256xbf16, #tpu.memory_space<vmem>>, vector<16x256xbf16>
      tpu.vector_store %arg6[%c0_14, %c0_15], %18 {strides = array<i32>} : memref<16x256xbf16, #tpu.memory_space<vmem>>, vector<16x256xbf16>,
    } else {
    }
    return
  }
  func.func @transform_0(%arg0: i32, %arg1: i32, %arg2: i32) -> (i32, i32) {
    %c0_i32 = arith.constant 0 : i32
    return %arg0, %arg2 : i32, i32
  }
  func.func @transform_1(%arg0: i32, %arg1: i32, %arg2: i32) -> (i32, i32) {
    %c0_i32 = arith.constant 0 : i32
    return %arg2, %arg1 : i32, i32
  }
  func.func @transform_2(%arg0: i32, %arg1: i32, %arg2: i32) -> (i32, i32) {
    %c0_i32 = arith.constant 0 : i32
    %c0_i32_0 = arith.constant 0 : i32
    return %c0_i32, %arg1 : i32, i32
  }
  func.func @transform_3(%arg0: i32, %arg1: i32, %arg2: i32) -> (i32, i32) {
    %c0_i32 = arith.constant 0 : i32
    return %arg0, %arg1 : i32, i32
  }
}

module attributes {stable_mosaic.version = 11 : i64} {
  func.func @_mm_res_kernel(%arg0: i32, %arg1: i32, %arg2: i32, %arg3: memref<16x512xbf16, #tpu.memory_space<vmem>>, %arg4: memref<512x256xbf16, #tpu.memory_space<vmem>>, %arg5: memref<1x256xf32, #tpu.memory_space<vmem>>, %arg6: memref<16x256xbf16, #tpu.memory_space<vmem>>, %arg7: memref<16x256xbf16, #tpu.memory_space<vmem>>, %arg8: memref<16x256xf32, #tpu.memory_space<vmem>>) attributes {dimension_semantics = [#tpu.dimension_semantics<parallel>, #tpu.dimension_semantics<parallel>, #tpu.dimension_semantics<arbitrary>], iteration_bounds = array<i64: 1, 2, 9>, scalar_prefetch = 0 : i64, scratch_operands = 1 : i64, tpu.core_type = #tpu.core_type<tc>, window_params = [{transform_indices = @transform_0, window_bounds = array<i64: 16, 512>}, {transform_indices = @transform_1, window_bounds = array<i64: 512, 256>}, {transform_indices = @transform_2, window_bounds = array<i64: 1, 256>}, {transform_indices = @transform_3, window_bounds = array<i64: 16, 256>}, {transform_indices = @transform_4, window_bounds = array<i64: 16, 256>}]} {
    %c0_i32 = arith.constant 0 : i32
    %0 = arith.cmpi eq, %arg2, %c0_i32 : i32
    %1 = arith.extui %0 : i1 to i32
    %c0_i32_0 = arith.constant 0 : i32
    %2 = arith.cmpi ne, %1, %c0_i32_0 : i32
    scf.if %2 {
      %cst_9 = arith.constant 0.000000e+00 : f32
      %12 = vector.broadcast %cst_9 : f32 to vector<16x256xf32>
      %c0_10 = arith.constant 0 : index
      %c0_11 = arith.constant 0 : index
      %13 = vector.load %arg8[%c0_10, %c0_11] : memref<16x256xf32, #tpu.memory_space<vmem>>, vector<16x256xf32>
      tpu.vector_store %arg8[%c0_10, %c0_11], %12 {strides = array<i32>} : memref<16x256xf32, #tpu.memory_space<vmem>>, vector<16x256xf32>,
    } else {
    }
    %c0 = arith.constant 0 : index
    %c0_1 = arith.constant 0 : index
    %3 = vector.load %arg8[%c0, %c0_1] : memref<16x256xf32, #tpu.memory_space<vmem>>, vector<16x256xf32>
    %c0_2 = arith.constant 0 : index
    %c0_3 = arith.constant 0 : index
    %4 = vector.load %arg3[%c0_2, %c0_3] : memref<16x512xbf16, #tpu.memory_space<vmem>>, vector<16x512xbf16>
    %c0_4 = arith.constant 0 : index
    %c0_5 = arith.constant 0 : index
    %5 = vector.load %arg4[%c0_4, %c0_5] : memref<512x256xbf16, #tpu.memory_space<vmem>>, vector<512x256xbf16>
    %cst = arith.constant dense<0.000000e+00> : vector<16x256xf32>
    %6 = tpu.matmul %4, %5, %cst {dimension_numbers = #tpu.dot_dimension_numbers<[1], [0], [0], [1], [0, 0, 1, 1], [], []>} : vector<16x512xbf16>, vector<512x256xbf16>, vector<16x256xf32> -> vector<16x256xf32>
    %7 = arith.addf %3, %6 : vector<16x256xf32>
    %c0_6 = arith.constant 0 : index
    %c0_7 = arith.constant 0 : index
    %8 = vector.load %arg8[%c0_6, %c0_7] : memref<16x256xf32, #tpu.memory_space<vmem>>, vector<16x256xf32>
    tpu.vector_store %arg8[%c0_6, %c0_7], %7 {strides = array<i32>} : memref<16x256xf32, #tpu.memory_space<vmem>>, vector<16x256xf32>,
    %c8_i32 = arith.constant 8 : i32
    %9 = arith.cmpi eq, %arg2, %c8_i32 : i32
    %10 = arith.extui %9 : i1 to i32
    %c0_i32_8 = arith.constant 0 : i32
    %11 = arith.cmpi ne, %10, %c0_i32_8 : i32
    scf.if %11 {
      %c0_9 = arith.constant 0 : index
      %c0_10 = arith.constant 0 : index
      %12 = vector.load %arg8[%c0_9, %c0_10] : memref<16x256xf32, #tpu.memory_space<vmem>>, vector<16x256xf32>
      %c0_11 = arith.constant 0 : index
      %c0_12 = arith.constant 0 : index
      %13 = vector.load %arg5[%c0_11, %c0_12] : memref<1x256xf32, #tpu.memory_space<vmem>>, vector<1x256xf32>
      %14 = vector.broadcast %13 : vector<1x256xf32> to vector<16x256xf32>
      %15 = arith.addf %12, %14 : vector<16x256xf32>
      %c0_13 = arith.constant 0 : index
      %c0_14 = arith.constant 0 : index
      %16 = vector.load %arg6[%c0_13, %c0_14] : memref<16x256xbf16, #tpu.memory_space<vmem>>, vector<16x256xbf16>
      %17 = arith.extf %16 : vector<16x256xbf16> to vector<16x256xf32>
      %18 = arith.addf %15, %17 : vector<16x256xf32>
      %cst_15 = arith.constant 0.000000e+00 : f32
      %19 = vector.broadcast %cst_15 : f32 to vector<16x256xf32>
      %20 = arith.maximumf %18, %19 : vector<16x256xf32>
      %21 = arith.truncf %20 : vector<16x256xf32> to vector<16x256xbf16>
      %c0_16 = arith.constant 0 : index
      %c0_17 = arith.constant 0 : index
      %22 = vector.load %arg7[%c0_16, %c0_17] : memref<16x256xbf16, #tpu.memory_space<vmem>>, vector<16x256xbf16>
      tpu.vector_store %arg7[%c0_16, %c0_17], %21 {strides = array<i32>} : memref<16x256xbf16, #tpu.memory_space<vmem>>, vector<16x256xbf16>,
    } else {
    }
    return
  }
  func.func @transform_0(%arg0: i32, %arg1: i32, %arg2: i32) -> (i32, i32) {
    %c0_i32 = arith.constant 0 : i32
    return %arg0, %arg2 : i32, i32
  }
  func.func @transform_1(%arg0: i32, %arg1: i32, %arg2: i32) -> (i32, i32) {
    %c0_i32 = arith.constant 0 : i32
    return %arg2, %arg1 : i32, i32
  }
  func.func @transform_2(%arg0: i32, %arg1: i32, %arg2: i32) -> (i32, i32) {
    %c0_i32 = arith.constant 0 : i32
    %c0_i32_0 = arith.constant 0 : i32
    return %c0_i32, %arg1 : i32, i32
  }
  func.func @transform_3(%arg0: i32, %arg1: i32, %arg2: i32) -> (i32, i32) {
    %c0_i32 = arith.constant 0 : i32
    return %arg0, %arg1 : i32, i32
  }
  func.func @transform_4(%arg0: i32, %arg1: i32, %arg2: i32) -> (i32, i32) {
    %c0_i32 = arith.constant 0 : i32
    return %arg0, %arg1 : i32, i32
  }
}

module attributes {stable_mosaic.version = 11 : i64} {
  func.func @_mm_kernel(%arg0: i32, %arg1: i32, %arg2: i32, %arg3: memref<16x256xbf16, #tpu.memory_space<vmem>>, %arg4: memref<256x256xbf16, #tpu.memory_space<vmem>>, %arg5: memref<1x256xf32, #tpu.memory_space<vmem>>, %arg6: memref<16x256xbf16, #tpu.memory_space<vmem>>, %arg7: memref<16x256xf32, #tpu.memory_space<vmem>>) attributes {dimension_semantics = [#tpu.dimension_semantics<parallel>, #tpu.dimension_semantics<parallel>, #tpu.dimension_semantics<arbitrary>], iteration_bounds = array<i64: 1, 2, 1>, scalar_prefetch = 0 : i64, scratch_operands = 1 : i64, tpu.core_type = #tpu.core_type<tc>, window_params = [{transform_indices = @transform_0, window_bounds = array<i64: 16, 256>}, {transform_indices = @transform_1, window_bounds = array<i64: 256, 256>}, {transform_indices = @transform_2, window_bounds = array<i64: 1, 256>}, {transform_indices = @transform_3, window_bounds = array<i64: 16, 256>}]} {
    %c0_i32 = arith.constant 0 : i32
    %0 = arith.cmpi eq, %arg2, %c0_i32 : i32
    %1 = arith.extui %0 : i1 to i32
    %c0_i32_0 = arith.constant 0 : i32
    %2 = arith.cmpi ne, %1, %c0_i32_0 : i32
    scf.if %2 {
      %cst_10 = arith.constant 0.000000e+00 : f32
      %12 = vector.broadcast %cst_10 : f32 to vector<16x256xf32>
      %c0_11 = arith.constant 0 : index
      %c0_12 = arith.constant 0 : index
      %13 = vector.load %arg7[%c0_11, %c0_12] : memref<16x256xf32, #tpu.memory_space<vmem>>, vector<16x256xf32>
      tpu.vector_store %arg7[%c0_11, %c0_12], %12 {strides = array<i32>} : memref<16x256xf32, #tpu.memory_space<vmem>>, vector<16x256xf32>,
    } else {
    }
    %c0 = arith.constant 0 : index
    %c0_1 = arith.constant 0 : index
    %3 = vector.load %arg7[%c0, %c0_1] : memref<16x256xf32, #tpu.memory_space<vmem>>, vector<16x256xf32>
    %c0_2 = arith.constant 0 : index
    %c0_3 = arith.constant 0 : index
    %4 = vector.load %arg3[%c0_2, %c0_3] : memref<16x256xbf16, #tpu.memory_space<vmem>>, vector<16x256xbf16>
    %c0_4 = arith.constant 0 : index
    %c0_5 = arith.constant 0 : index
    %5 = vector.load %arg4[%c0_4, %c0_5] : memref<256x256xbf16, #tpu.memory_space<vmem>>, vector<256x256xbf16>
    %cst = arith.constant dense<0.000000e+00> : vector<16x256xf32>
    %6 = tpu.matmul %4, %5, %cst {dimension_numbers = #tpu.dot_dimension_numbers<[1], [0], [0], [1], [0, 0, 1, 1], [], []>} : vector<16x256xbf16>, vector<256x256xbf16>, vector<16x256xf32> -> vector<16x256xf32>
    %7 = arith.addf %3, %6 : vector<16x256xf32>
    %c0_6 = arith.constant 0 : index
    %c0_7 = arith.constant 0 : index
    %8 = vector.load %arg7[%c0_6, %c0_7] : memref<16x256xf32, #tpu.memory_space<vmem>>, vector<16x256xf32>
    tpu.vector_store %arg7[%c0_6, %c0_7], %7 {strides = array<i32>} : memref<16x256xf32, #tpu.memory_space<vmem>>, vector<16x256xf32>,
    %c0_i32_8 = arith.constant 0 : i32
    %9 = arith.cmpi eq, %arg2, %c0_i32_8 : i32
    %10 = arith.extui %9 : i1 to i32
    %c0_i32_9 = arith.constant 0 : i32
    %11 = arith.cmpi ne, %10, %c0_i32_9 : i32
    scf.if %11 {
      %c0_10 = arith.constant 0 : index
      %c0_11 = arith.constant 0 : index
      %12 = vector.load %arg7[%c0_10, %c0_11] : memref<16x256xf32, #tpu.memory_space<vmem>>, vector<16x256xf32>
      %c0_12 = arith.constant 0 : index
      %c0_13 = arith.constant 0 : index
      %13 = vector.load %arg5[%c0_12, %c0_13] : memref<1x256xf32, #tpu.memory_space<vmem>>, vector<1x256xf32>
      %14 = vector.broadcast %13 : vector<1x256xf32> to vector<16x256xf32>
      %15 = arith.addf %12, %14 : vector<16x256xf32>
      %16 = arith.truncf %15 : vector<16x256xf32> to vector<16x256xbf16>
      %c0_14 = arith.constant 0 : index
      %c0_15 = arith.constant 0 : index
      %17 = vector.load %arg6[%c0_14, %c0_15] : memref<16x256xbf16, #tpu.memory_space<vmem>>, vector<16x256xbf16>
      tpu.vector_store %arg6[%c0_14, %c0_15], %16 {strides = array<i32>} : memref<16x256xbf16, #tpu.memory_space<vmem>>, vector<16x256xbf16>,
    } else {
    }
    return
  }
  func.func @transform_0(%arg0: i32, %arg1: i32, %arg2: i32) -> (i32, i32) {
    %c0_i32 = arith.constant 0 : i32
    return %arg0, %arg2 : i32, i32
  }
  func.func @transform_1(%arg0: i32, %arg1: i32, %arg2: i32) -> (i32, i32) {
    %c0_i32 = arith.constant 0 : i32
    return %arg2, %arg1 : i32, i32
  }
  func.func @transform_2(%arg0: i32, %arg1: i32, %arg2: i32) -> (i32, i32) {
    %c0_i32 = arith.constant 0 : i32
    %c0_i32_0 = arith.constant 0 : i32
    return %c0_i32, %arg1 : i32, i32
  }
  func.func @transform_3(%arg0: i32, %arg1: i32, %arg2: i32) -> (i32, i32) {
    %c0_i32 = arith.constant 0 : i32
    return %arg0, %arg1 : i32, i32
  }
}

module attributes {stable_mosaic.version = 11 : i64} {
  func.func @_mm_kernel(%arg0: i32, %arg1: i32, %arg2: i32, %arg3: memref<16x512xbf16, #tpu.memory_space<vmem>>, %arg4: memref<512x128xbf16, #tpu.memory_space<vmem>>, %arg5: memref<1x128xf32, #tpu.memory_space<vmem>>, %arg6: memref<16x128xf32, #tpu.memory_space<vmem>>, %arg7: memref<16x128xf32, #tpu.memory_space<vmem>>) attributes {dimension_semantics = [#tpu.dimension_semantics<parallel>, #tpu.dimension_semantics<parallel>, #tpu.dimension_semantics<arbitrary>], iteration_bounds = array<i64: 1, 1, 1>, scalar_prefetch = 0 : i64, scratch_operands = 1 : i64, tpu.core_type = #tpu.core_type<tc>, window_params = [{transform_indices = @transform_0, window_bounds = array<i64: 16, 512>}, {transform_indices = @transform_1, window_bounds = array<i64: 512, 128>}, {transform_indices = @transform_2, window_bounds = array<i64: 1, 128>}, {transform_indices = @transform_3, window_bounds = array<i64: 16, 128>}]} {
    %c0_i32 = arith.constant 0 : i32
    %0 = arith.cmpi eq, %arg2, %c0_i32 : i32
    %1 = arith.extui %0 : i1 to i32
    %c0_i32_0 = arith.constant 0 : i32
    %2 = arith.cmpi ne, %1, %c0_i32_0 : i32
    scf.if %2 {
      %cst_10 = arith.constant 0.000000e+00 : f32
      %12 = vector.broadcast %cst_10 : f32 to vector<16x128xf32>
      %c0_11 = arith.constant 0 : index
      %c0_12 = arith.constant 0 : index
      %13 = vector.load %arg7[%c0_11, %c0_12] : memref<16x128xf32, #tpu.memory_space<vmem>>, vector<16x128xf32>
      tpu.vector_store %arg7[%c0_11, %c0_12], %12 {strides = array<i32>} : memref<16x128xf32, #tpu.memory_space<vmem>>, vector<16x128xf32>,
    } else {
    }
    %c0 = arith.constant 0 : index
    %c0_1 = arith.constant 0 : index
    %3 = vector.load %arg7[%c0, %c0_1] : memref<16x128xf32, #tpu.memory_space<vmem>>, vector<16x128xf32>
    %c0_2 = arith.constant 0 : index
    %c0_3 = arith.constant 0 : index
    %4 = vector.load %arg3[%c0_2, %c0_3] : memref<16x512xbf16, #tpu.memory_space<vmem>>, vector<16x512xbf16>
    %c0_4 = arith.constant 0 : index
    %c0_5 = arith.constant 0 : index
    %5 = vector.load %arg4[%c0_4, %c0_5] : memref<512x128xbf16, #tpu.memory_space<vmem>>, vector<512x128xbf16>
    %cst = arith.constant dense<0.000000e+00> : vector<16x128xf32>
    %6 = tpu.matmul %4, %5, %cst {dimension_numbers = #tpu.dot_dimension_numbers<[1], [0], [0], [1], [0, 0, 1, 1], [], []>} : vector<16x512xbf16>, vector<512x128xbf16>, vector<16x128xf32> -> vector<16x128xf32>
    %7 = arith.addf %3, %6 : vector<16x128xf32>
    %c0_6 = arith.constant 0 : index
    %c0_7 = arith.constant 0 : index
    %8 = vector.load %arg7[%c0_6, %c0_7] : memref<16x128xf32, #tpu.memory_space<vmem>>, vector<16x128xf32>
    tpu.vector_store %arg7[%c0_6, %c0_7], %7 {strides = array<i32>} : memref<16x128xf32, #tpu.memory_space<vmem>>, vector<16x128xf32>,
    %c0_i32_8 = arith.constant 0 : i32
    %9 = arith.cmpi eq, %arg2, %c0_i32_8 : i32
    %10 = arith.extui %9 : i1 to i32
    %c0_i32_9 = arith.constant 0 : i32
    %11 = arith.cmpi ne, %10, %c0_i32_9 : i32
    scf.if %11 {
      %c0_10 = arith.constant 0 : index
      %c0_11 = arith.constant 0 : index
      %12 = vector.load %arg7[%c0_10, %c0_11] : memref<16x128xf32, #tpu.memory_space<vmem>>, vector<16x128xf32>
      %c0_12 = arith.constant 0 : index
      %c0_13 = arith.constant 0 : index
      %13 = vector.load %arg5[%c0_12, %c0_13] : memref<1x128xf32, #tpu.memory_space<vmem>>, vector<1x128xf32>
      %14 = vector.broadcast %13 : vector<1x128xf32> to vector<16x128xf32>
      %15 = arith.addf %12, %14 : vector<16x128xf32>
      %c0_14 = arith.constant 0 : index
      %c0_15 = arith.constant 0 : index
      %16 = vector.load %arg6[%c0_14, %c0_15] : memref<16x128xf32, #tpu.memory_space<vmem>>, vector<16x128xf32>
      tpu.vector_store %arg6[%c0_14, %c0_15], %15 {strides = array<i32>} : memref<16x128xf32, #tpu.memory_space<vmem>>, vector<16x128xf32>,
    } else {
    }
    return
  }
  func.func @transform_0(%arg0: i32, %arg1: i32, %arg2: i32) -> (i32, i32) {
    %c0_i32 = arith.constant 0 : i32
    return %arg0, %arg2 : i32, i32
  }
  func.func @transform_1(%arg0: i32, %arg1: i32, %arg2: i32) -> (i32, i32) {
    %c0_i32 = arith.constant 0 : i32
    return %arg2, %arg1 : i32, i32
  }
  func.func @transform_2(%arg0: i32, %arg1: i32, %arg2: i32) -> (i32, i32) {
    %c0_i32 = arith.constant 0 : i32
    %c0_i32_0 = arith.constant 0 : i32
    return %c0_i32, %arg1 : i32, i32
  }
  func.func @transform_3(%arg0: i32, %arg1: i32, %arg2: i32) -> (i32, i32) {
    %c0_i32 = arith.constant 0 : i32
    return %arg0, %arg1 : i32, i32
  }
}

</mosaic_0001>

<bundles_post_ra>
// kernel: resnet_forward.15
= control target key start
LH: loop header
LB: loop body
LE: loop exit
PB: predicated region body
PF: predicated region fallthrough
CT: control target
= control target key end

     0   :  { %s214_s0 = inlined_call_operand.vmem [shape: bf16[9,16,512], index: 0, kind: input, shape index: {}]   ;;  %s215_s1 = inlined_call_operand.vmem [shape: bf16[16,512], index: 1, kind: output, shape index: {}]  }
   0x1   :  { %v8_v0 = vld [vmem:[%s214_s0] sm:$0xff]  ;;  %v9_v6 = vld [vmem:[%s214_s0 + $0x8] sm:$0xff]  ;;  %v10_v15 = vld [vmem:[%s214_s0 + $0x10] sm:$0xff] }
   0x2   :  { %v12_v1 = vld [vmem:[%s214_s0 + $0x20] sm:$0xff]  ;;  %v13_v7 = vld [vmem:[%s214_s0 + $0x28] sm:$0xff]  ;;  %v14_v16 = vld [vmem:[%s214_s0 + $0x30] sm:$0xff] }
   0x3   :  { %v16_v2 = vld [vmem:[%s214_s0 + $0x40] sm:$0xff]  ;;  %v44_v3 = vmax.bf16 %v12_v1, %v8_v0  ;;  %v17_v8 = vld [vmem:[%s214_s0 + $0x48] sm:$0xff]  ;;  %v52_v10 = vmax.bf16 %v13_v7, %v9_v6  ;;  %v18_v17 = vld [vmem:[%s214_s0 + $0x50] sm:$0xff]  ;;  %v60_v20 = vmax.bf16 %v14_v16, %v10_v15 }
   0x4   :  { %v20_v4 = vld [vmem:[%s214_s0 + $0x60] sm:$0xff]  ;;  %v21_v13 = vld [vmem:[%s214_s0 + $0x68] sm:$0xff]  ;;  %v22_v24 = vld [vmem:[%s214_s0 + $0x70] sm:$0xff] }
   0x5   :  { %v45_v5 = vmax.bf16 %v44_v3, %v16_v2  ;;  %v24_v9 = vld [vmem:[%s214_s0 + $0x80] sm:$0xff]  ;;  %v53_v14 = vmax.bf16 %v52_v10, %v17_v8  ;;  %v25_v19 = vld [vmem:[%s214_s0 + $0x88] sm:$0xff]  ;;  %v61_v26 = vmax.bf16 %v60_v20, %v18_v17  ;;  %v11_v27 = vld [vmem:[%s214_s0 + $0x18] sm:$0xff] }
   0x6   :  { %v28_v11 = vld [vmem:[%s214_s0 + $0xa0] sm:$0xff]  ;;  %v29_v22 = vld [vmem:[%s214_s0 + $0xa8] sm:$0xff]  ;;  %v15_v28 = vld [vmem:[%s214_s0 + $0x38] sm:$0xff] }
   0x7   :  { %v46_v12 = vmax.bf16 %v45_v5, %v20_v4  ;;  %v32_v21 = vld [vmem:[%s214_s0 + $0xc0] sm:$0xff]  ;;  %v54_v23 = vmax.bf16 %v53_v14, %v21_v13  ;;  %v19_v29 = vld [vmem:[%s214_s0 + $0x58] sm:$0xff]  ;;  %v26_v32 = vld [vmem:[%s214_s0 + $0x90] sm:$0xff]  ;;  %v68_v33 = vmax.bf16 %v15_v28, %v11_v27  ;;  %v62_v36 = vmax.bf16 %v61_v26, %v22_v24 }
   0x8   :  { %v36_v30 = vld [vmem:[%s214_s0 + $0xe0] sm:$0xff]  ;;  %v33_v35 = vld [vmem:[%s214_s0 + $0xc8] sm:$0xff]  ;;  %v23_v37 = vld [vmem:[%s214_s0 + $0x78] sm:$0xff] }
   0x9   :  { %v47_v18 = vmax.bf16 %v46_v12, %v24_v9  ;;  %v55_v31 = vmax.bf16 %v54_v23, %v25_v19  ;;  %v40_v38 = vld [vmem:[%s214_s0 + $0x100] sm:$0xff]  ;;  %v30_v40 = vld [vmem:[%s214_s0 + $0xb0] sm:$0xff]  ;;  %v69_v41 = vmax.bf16 %v68_v33, %v19_v29  ;;  %v37_v43 = vld [vmem:[%s214_s0 + $0xe8] sm:$0xff]  ;;  %v63_v44 = vmax.bf16 %v62_v36, %v26_v32 }
   0xa   :  { %v27_v45 = vld [vmem:[%s214_s0 + $0x98] sm:$0xff]  ;;  %v34_v47 = vld [vmem:[%s214_s0 + $0xd0] sm:$0xff]  ;;  %v41_v50 = vld [vmem:[%s214_s0 + $0x108] sm:$0xff] }
   0xb   :  { %v48_v25 = vmax.bf16 %v47_v18, %v28_v11  ;;  %v56_v39 = vmax.bf16 %v55_v31, %v29_v22  ;;  %v70_v48 = vmax.bf16 %v69_v41, %v23_v37  ;;  %v64_v51 = vmax.bf16 %v63_v44, %v30_v40  ;;  %v31_v52 = vld [vmem:[%s214_s0 + $0xb8] sm:$0xff]  ;;  %v38_v54 = vld [vmem:[%s214_s0 + $0xf0] sm:$0xff] }
   0xc   :  { %v35_v57 = vld [vmem:[%s214_s0 + $0xd8] sm:$0xff]  ;;  %v42_v59 = vld [vmem:[%s214_s0 + $0x110] sm:$0xff] }
   0xd   :  { %v49_v34 = vmax.bf16 %v48_v25, %v32_v21  ;;  %v57_v46 = vmax.bf16 %v56_v39, %v33_v35  ;;  %v71_v55 = vmax.bf16 %v70_v48, %v27_v45  ;;  %v65_v56 = vmax.bf16 %v64_v51, %v34_v47  ;;  %v39_v62 = vld [vmem:[%s214_s0 + $0xf8] sm:$0xff] }
   0xe   :  { %v43_v1 = vld [vmem:[%s214_s0 + $0x118] sm:$0xff] }
   0xf   :  { %v50_v42 = vmax.bf16 %v49_v34, %v36_v30  ;;  %v58_v53 = vmax.bf16 %v57_v46, %v37_v43  ;;  %v72_v60 = vmax.bf16 %v71_v55, %v31_v52  ;;  %v66_v61 = vmax.bf16 %v65_v56, %v38_v54 }
  0x11   :  { %v51_v49 = vmax.bf16 %v50_v42, %v40_v38  ;;  %v59_v58 = vmax.bf16 %v58_v53, %v41_v50  ;;  %v73_v63 = vmax.bf16 %v72_v60, %v35_v57  ;;  %v67_v0 = vmax.bf16 %v66_v61, %v42_v59 }
  0x13   :  { %76 = vst [vmem:[%s215_s1] sm:$0xff] %v51_v49  ;;  %77 = vst [vmem:[%s215_s1 + $0x8] sm:$0xff] %v59_v58  ;;  %v74_v2 = vmax.bf16 %v73_v63, %v39_v62 }
  0x14   :  { %78 = vst [vmem:[%s215_s1 + $0x10] sm:$0xff] %v67_v0 }
  0x15   :  { %v75_v3 = vmax.bf16 %v74_v2, %v43_v1 }
  0x17   :  { %79 = vst [vmem:[%s215_s1 + $0x18] sm:$0xff] %v75_v3 }

// kernel: resnet_forward.14
= control target key start
LH: loop header
LB: loop body
LE: loop exit
PB: predicated region body
PF: predicated region fallthrough
CT: control target
= control target key end

     0   :  { %s1499_s12 = smov 0   ;;  %s1501_s13 = smov 0   ;;  %s1636_s0 = inlined_call_operand.vmem [shape: bf16[512,128], index: 0, kind: input, shape index: {}]   ;;  %s1637_s1 = inlined_call_operand.vmem [shape: bf16[128,128], index: 1, kind: input, shape index: {}]   ;;  %s1638_s2 = inlined_call_operand.vmem [shape: f32[1,128], index: 2, kind: input, shape index: {}]   ;;  %s1639_s3 = inlined_call_operand.vmem [shape: bf16[512,128], index: 3, kind: output, shape index: {}]  }
   0x1   :  { %s1503_s14 = smov 0  }
   0x2 LB: > { %s32_s15 = sadd.s32 1, %s1473_s13  ;;  %p1128_p0 = scmp.ge.s32.totalorder %s1477_s14, 1  ;;  %s1477_s14 = sphi %s1503_s14, %s13_s14   ;;  %s1473_s13 = sphi %s1501_s13, %s1641_s13   ;;  %s1469_s12 = sphi %s1499_s12, %s1640_s12  }
   0x3   : > { %p34_p1 = scmp.ge.s32.totalorder %s32_s15, 2  ;;  %p188_p2 = scmp.lt.s32.totalorder %s1477_s14, 3 }
   0x5   : > { %s1643_s15 = smov (%p34_p1, %s32_s15), 0  ;;  %p189_p3 = pnand %p1128_p0, %p188_p2 }
   0x6   : > { %s1129_s18 = sshll.u32 (!%p189_p3), %s1469_s12, 5 }
   0x7   : > { %192 = sbr.rel (%p189_p3) target bundleno = 275 (0x113), region = 32  ;;  %p230_p4 = scmp.lt.s32.totalorder (!%p189_p3), %s1129_s18, 63 }
   0xc   : > { %v1431_v0 = vld [vmem:[%s1637_s1 + $0x38] sm:$0xff]   ;;  %v1432_v1 = vld [vmem:[%s1637_s1 + $0x30] sm:$0xff]   ;;  %s1645_s18 = smov (!%p230_p4, %s1129_s18), 63  ;;  %v1433_v2 = vld [vmem:[%s1637_s1 + $0x28] sm:$0xff]  }
   0xd   : > { %1343 = vmatprep.subr.bf16.mxu0 %v1431_v0  ;;  %1391 = vmatprep.subr.bf16.mxu1 %v1431_v0  ;;  %s1130_s23 = sshll.u32 %s1645_s18, 2  ;;  %v1434_v3 = vld [vmem:[%s1637_s1 + $0x20] sm:$0xff]   ;;  %v1435_v6 = vld [vmem:[%s1637_s1 + $0x18] sm:$0xff]   ;;  %v1436_v7 = vld [vmem:[%s1637_s1 + $0x10] sm:$0xff]  }
   0xe   : > { %1344 = vmatpush3.bf16.msra.mxu0 %v1431_v0  ;;  %1399 = vmatpush3.bf16.msra.mxu1 %v1431_v0  ;;  %s1534_s26 = scalar_lea.vmem %s1636_s0, %s1130_s23  ;;  %v1437_v8 = vld [vmem:[%s1637_s1 + $0x8] sm:$0xff]   ;;  %v1438_v9 = vld [vmem:[%s1637_s1] sm:$0xff]   ;;  %s1585_s17 = scalar_lea.vmem %s1639_s3, %s1130_s23 }
   0xf   : > { %1345 = vmatprep.subr.bf16.mxu0 %v1432_v1  ;;  %1392 = vmatprep.subr.bf16.mxu1 %v1432_v1  ;;  %v1439_v4 = vld [vmem:[%s1534_s26] sm:$0xff]   ;;  %v1441_v10 = vld [vmem:[%s1534_s26 + $0x8] sm:$0xff]   ;;  %v1443_v12 = vld [vmem:[%s1534_s26 + $0x10] sm:$0xff]  }
  0x10   : > { %v1440_v5 = vld [vmem:[%s1534_s26 + $0x40] sm:$0xff]   ;;  %1359 = vmatprep.mubr.bf16.mxu0 %v1439_v4  ;;  %v1442_v11 = vld [vmem:[%s1534_s26 + $0x48] sm:$0xff]   ;;  %v1444_v13 = vld [vmem:[%s1534_s26 + $0x50] sm:$0xff]  }
  0x11   : > { %1375 = vmatprep.mubr.bf16.mxu1 %v1440_v5  ;;  %v1445_v14 = vld [vmem:[%s1534_s26 + $0x18] sm:$0xff]   ;;  %v1447_v16 = vld [vmem:[%s1534_s26 + $0x20] sm:$0xff]   ;;  %v1449_v18 = vld [vmem:[%s1534_s26 + $0x28] sm:$0xff]  }
  0x12   : > { %1346 = vmatpush3.bf16.msra.mxu0 %v1432_v1  ;;  %1400 = vmatpush3.bf16.msra.mxu1 %v1432_v1  ;;  %v1446_v15 = vld [vmem:[%s1534_s26 + $0x58] sm:$0xff]   ;;  %v1448_v17 = vld [vmem:[%s1534_s26 + $0x60] sm:$0xff]   ;;  %v1450_v19 = vld [vmem:[%s1534_s26 + $0x68] sm:$0xff]  }
  0x13   : > { %1347 = vmatprep.subr.bf16.mxu0 %v1433_v2  ;;  %1393 = vmatprep.subr.bf16.mxu1 %v1433_v2  ;;  %v1451_v20 = vld [vmem:[%s1534_s26 + $0x30] sm:$0xff]   ;;  %v1453_v22 = vld [vmem:[%s1534_s26 + $0x38] sm:$0xff]   ;;  %v1570_v24 = vld [vmem:[%s1638_s2] ss:$0 sm:$0xff] }
  0x14   : > { %v1452_v21 = vld [vmem:[%s1534_s26 + $0x70] sm:$0xff]   ;;  %v1454_v23 = vld [vmem:[%s1534_s26 + $0x78] sm:$0xff]  }
  0x16   : > { %1348 = vmatpush3.bf16.msra.mxu0 %v1433_v2  ;;  %1401 = vmatpush3.bf16.msra.mxu1 %v1433_v2 }
  0x17   : > { %1349 = vmatprep.subr.bf16.mxu0 %v1434_v3  ;;  %1394 = vmatprep.subr.bf16.mxu1 %v1434_v3 }
  0x1a   : > { %1350 = vmatpush3.bf16.msra.mxu0 %v1434_v3  ;;  %1402 = vmatpush3.bf16.msra.mxu1 %v1434_v3 }
  0x1b   : > { %1351 = vmatprep.subr.bf16.mxu0 %v1435_v6  ;;  %1395 = vmatprep.subr.bf16.mxu1 %v1435_v6 }
  0x1e   : > { %1352 = vmatpush3.bf16.msra.mxu0 %v1435_v6  ;;  %1403 = vmatpush3.bf16.msra.mxu1 %v1435_v6 }
  0x1f   : > { %1353 = vmatprep.subr.bf16.mxu0 %v1436_v7  ;;  %1396 = vmatprep.subr.bf16.mxu1 %v1436_v7 }
  0x22   : > { %1354 = vmatpush3.bf16.msra.mxu0 %v1436_v7  ;;  %1404 = vmatpush3.bf16.msra.mxu1 %v1436_v7 }
  0x23   : > { %1355 = vmatprep.subr.bf16.mxu0 %v1437_v8  ;;  %1397 = vmatprep.subr.bf16.mxu1 %v1437_v8 }
  0x26   : > { %1356 = vmatpush3.bf16.msra.mxu0 %v1437_v8  ;;  %1405 = vmatpush3.bf16.msra.mxu1 %v1437_v8 }
  0x27   : > { %1357 = vmatprep.subr.bf16.mxu0 %v1438_v9  ;;  %1398 = vmatprep.subr.bf16.mxu1 %v1438_v9 }
  0x2a   : > { %1358 = vmatpush3.bf16.msra.mxu0 %v1438_v9  ;;  %1406 = vmatpush3.bf16.msra.mxu1 %v1438_v9 }
  0x2d   : > { %1360 = vmatmul.mubr.bf16.vlgmr.msra.gmra.mxu0 %v1441_v10  ;;  %1376 = vmatmul.mubr.bf16.vlgmr.msra.gmra.mxu1 %v1442_v11 }
  0x2e   : > { %1363 = vmatprep.mubr.bf16.mxu0 %v1443_v12  ;;  %1379 = vmatprep.mubr.bf16.mxu1 %v1444_v13 }
  0x35   : > { %1364 = vmatmul.mubr.bf16.gmra.mxu0 %v1445_v14  ;;  %1380 = vmatmul.mubr.bf16.gmra.mxu1 %v1446_v15 }
  0x36   : > { %1367 = vmatprep.mubr.bf16.mxu0 %v1447_v16  ;;  %1383 = vmatprep.mubr.bf16.mxu1 %v1448_v17 }
  0x3d   : > { %1368 = vmatmul.mubr.bf16.gmra.mxu0 %v1449_v18  ;;  %1384 = vmatmul.mubr.bf16.gmra.mxu1 %v1450_v19 }
  0x3e   : > { %1371 = vmatprep.mubr.bf16.mxu0 %v1451_v20  ;;  %1387 = vmatprep.mubr.bf16.mxu1 %v1452_v21 }
  0x45   : > { %1372 = vmatmul.mubr.bf16.gmra.mxu0 %v1453_v22  ;;  %1388 = vmatmul.mubr.bf16.gmra.mxu1 %v1454_v23 }
  0xed   : > { %v1361_v25 = vpop.f32.mrf.mxu0  ;;  %v1377_v26 = vpop.f32.mrf.mxu1 }
  0xee   : > { %v789_v27 = vadd.f32 %v1361_v25, %v1570_v24  ;;  %v805_v28 = vadd.f32 %v1377_v26, %v1570_v24 }
  0xef   : > { %v554_v29 = vpop.f32.mrf.mxu0  ;;  %v618_v30 = vpop.f32.mrf.mxu1 }
  0xf0   : > { %v787_v31 = vadd.f32 %v1570_v24, %v554_v29  ;;  %v803_v32 = vadd.f32 %v1570_v24, %v618_v30  ;;  %v821_v37 = vmax.f32 %v789_v27, 0.0  ;;  %v837_v38 = vmax.f32 %v805_v28, 0.0 }
  0xf1   : > { %v1362_v33 = vpop.f32.mrf.mxu0  ;;  %v1378_v34 = vpop.f32.mrf.mxu1 }
  0xf2   : > { %v790_v35 = vadd.f32 %v1362_v33, %v1570_v24  ;;  %v806_v36 = vadd.f32 %v1378_v34, %v1570_v24  ;;  %v819_v45 = vmax.f32 %v787_v31, 0.0  ;;  %v835_v46 = vmax.f32 %v803_v32, 0.0 }
  0xf3   : > { %v557_v39 = vpop.f32.mrf.mxu0  ;;  %v621_v40 = vpop.f32.mrf.mxu1 }
  0xf4   : > { %v822_v41 = vmax.f32 %v790_v35, 0.0  ;;  %v838_v42 = vmax.f32 %v806_v36, 0.0  ;;  %v788_v43 = vadd.f32 %v1570_v24, %v557_v39  ;;  %v804_v44 = vadd.f32 %v1570_v24, %v621_v40 }
  0xf5   : > { %v1365_v47 = vpop.f32.mrf.mxu0  ;;  %v1381_v48 = vpop.f32.mrf.mxu1 }
  0xf6   : > { %v1232_v49 = vpack.c.bf16 %v822_v41, %v821_v37  ;;  %v1272_v50 = vpack.c.bf16 %v838_v42, %v837_v38  ;;  %v820_v51 = vmax.f32 %v788_v43, 0.0  ;;  %v836_v52 = vmax.f32 %v804_v44, 0.0 }
  0xf7   : > { %v793_v53 = vadd.f32 %v1365_v47, %v1570_v24  ;;  %v809_v54 = vadd.f32 %v1381_v48, %v1570_v24  ;;  %v570_v55 = vpop.f32.mrf.mxu0  ;;  %v634_v56 = vpop.f32.mrf.mxu1 }
  0xf8   : > { %1304 = vst [vmem:[%s1585_s17 + $0x8] sm:$0xff] %v1232_v49   ;;  %1312 = vst [vmem:[%s1585_s17 + $0x48] sm:$0xff] %v1272_v50   ;;  %v1227_v57 = vpack.c.bf16 %v820_v51, %v819_v45  ;;  %v1267_v58 = vpack.c.bf16 %v836_v52, %v835_v46  ;;  %v791_v59 = vadd.f32 %v1570_v24, %v570_v55 }
  0xf9   : > { %v807_v60 = vadd.f32 %v1570_v24, %v634_v56  ;;  %v1366_v61 = vpop.f32.mrf.mxu0  ;;  %v1382_v62 = vpop.f32.mrf.mxu1  ;;  %v825_v1 = vmax.f32 %v793_v53, 0.0  ;;  %v841_v2 = vmax.f32 %v809_v54, 0.0 }
  0xfa   : > { %1228 = vst [vmem:[%s1585_s17] sm:$0xff] %v1227_v57   ;;  %1311 = vst [vmem:[%s1585_s17 + $0x40] sm:$0xff] %v1267_v58   ;;  %v794_v63 = vadd.f32 %v1366_v61, %v1570_v24  ;;  %v810_v0 = vadd.f32 %v1382_v62, %v1570_v24  ;;  %v823_v9 = vmax.f32 %v791_v59, 0.0 }
  0xfb   : > { %v573_v3 = vpop.f32.mrf.mxu0  ;;  %v637_v4 = vpop.f32.mrf.mxu1  ;;  %v839_v10 = vmax.f32 %v807_v60, 0.0 }
  0xfc   : > { %v826_v5 = vmax.f32 %v794_v63, 0.0  ;;  %v842_v6 = vmax.f32 %v810_v0, 0.0  ;;  %v792_v7 = vadd.f32 %v1570_v24, %v573_v3  ;;  %v808_v8 = vadd.f32 %v1570_v24, %v637_v4 }
  0xfd   : > { %v1369_v11 = vpop.f32.mrf.mxu0  ;;  %v1385_v12 = vpop.f32.mrf.mxu1 }
  0xfe   : > { %v1242_v13 = vpack.c.bf16 %v826_v5, %v825_v1  ;;  %v1282_v14 = vpack.c.bf16 %v842_v6, %v841_v2  ;;  %v824_v15 = vmax.f32 %v792_v7, 0.0  ;;  %v840_v16 = vmax.f32 %v808_v8, 0.0 }
  0xff   : > { %v797_v17 = vadd.f32 %v1369_v11, %v1570_v24  ;;  %v813_v18 = vadd.f32 %v1385_v12, %v1570_v24  ;;  %v586_v19 = vpop.f32.mrf.mxu0  ;;  %v650_v20 = vpop.f32.mrf.mxu1 }
 0x100   : > { %1306 = vst [vmem:[%s1585_s17 + $0x18] sm:$0xff] %v1242_v13   ;;  %1314 = vst [vmem:[%s1585_s17 + $0x58] sm:$0xff] %v1282_v14   ;;  %v1237_v21 = vpack.c.bf16 %v824_v15, %v823_v9  ;;  %v1277_v22 = vpack.c.bf16 %v840_v16, %v839_v10  ;;  %v795_v23 = vadd.f32 %v1570_v24, %v586_v19 }
 0x101   : > { %v811_v25 = vadd.f32 %v1570_v24, %v650_v20  ;;  %v1370_v26 = vpop.f32.mrf.mxu0  ;;  %v1386_v27 = vpop.f32.mrf.mxu1  ;;  %v829_v30 = vmax.f32 %v797_v17, 0.0  ;;  %v845_v31 = vmax.f32 %v813_v18, 0.0 }
 0x102   : > { %1305 = vst [vmem:[%s1585_s17 + $0x10] sm:$0xff] %v1237_v21   ;;  %1313 = vst [vmem:[%s1585_s17 + $0x50] sm:$0xff] %v1277_v22   ;;  %v798_v28 = vadd.f32 %v1370_v26, %v1570_v24  ;;  %v814_v29 = vadd.f32 %v1386_v27, %v1570_v24  ;;  %v827_v38 = vmax.f32 %v795_v23, 0.0 }
 0x103   : > { %v589_v32 = vpop.f32.mrf.mxu0  ;;  %v653_v33 = vpop.f32.mrf.mxu1  ;;  %v843_v39 = vmax.f32 %v811_v25, 0.0 }
 0x104   : > { %v830_v34 = vmax.f32 %v798_v28, 0.0  ;;  %v846_v35 = vmax.f32 %v814_v29, 0.0  ;;  %v796_v36 = vadd.f32 %v1570_v24, %v589_v32  ;;  %v812_v37 = vadd.f32 %v1570_v24, %v653_v33 }
 0x105   : > { %v1373_v40 = vpop.f32.mrf.mxu0  ;;  %v1389_v41 = vpop.f32.mrf.mxu1 }
 0x106   : > { %v1252_v42 = vpack.c.bf16 %v830_v34, %v829_v30  ;;  %v1292_v43 = vpack.c.bf16 %v846_v35, %v845_v31  ;;  %v828_v44 = vmax.f32 %v796_v36, 0.0  ;;  %v844_v45 = vmax.f32 %v812_v37, 0.0 }
 0x107   : > { %v801_v46 = vadd.f32 %v1373_v40, %v1570_v24  ;;  %v817_v47 = vadd.f32 %v1389_v41, %v1570_v24  ;;  %v602_v48 = vpop.f32.mrf.mxu0  ;;  %v666_v49 = vpop.f32.mrf.mxu1 }
 0x108   : > { %1308 = vst [vmem:[%s1585_s17 + $0x28] sm:$0xff] %v1252_v42   ;;  %1316 = vst [vmem:[%s1585_s17 + $0x68] sm:$0xff] %v1292_v43   ;;  %v1247_v50 = vpack.c.bf16 %v828_v44, %v827_v38  ;;  %v1287_v51 = vpack.c.bf16 %v844_v45, %v843_v39  ;;  %v799_v52 = vadd.f32 %v1570_v24, %v602_v48 }
 0x109   : > { %v815_v53 = vadd.f32 %v1570_v24, %v666_v49  ;;  %v1374_v54 = vpop.f32.mrf.mxu0  ;;  %v1390_v55 = vpop.f32.mrf.mxu1  ;;  %v833_v58 = vmax.f32 %v801_v46, 0.0  ;;  %v849_v59 = vmax.f32 %v817_v47, 0.0 }
 0x10a   : > { %1307 = vst [vmem:[%s1585_s17 + $0x20] sm:$0xff] %v1247_v50   ;;  %1315 = vst [vmem:[%s1585_s17 + $0x60] sm:$0xff] %v1287_v51   ;;  %v802_v56 = vadd.f32 %v1374_v54, %v1570_v24  ;;  %v818_v57 = vadd.f32 %v1390_v55, %v1570_v24  ;;  %v831_v2 = vmax.f32 %v799_v52, 0.0 }
 0x10b   : > { %v605_v60 = vpop.f32.mrf.mxu0  ;;  %v669_v61 = vpop.f32.mrf.mxu1  ;;  %v847_v3 = vmax.f32 %v815_v53, 0.0 }
 0x10c   : > { %v834_v62 = vmax.f32 %v802_v56, 0.0  ;;  %v850_v63 = vmax.f32 %v818_v57, 0.0  ;;  %v800_v0 = vadd.f32 %v1570_v24, %v605_v60  ;;  %v816_v1 = vadd.f32 %v1570_v24, %v669_v61 }
 0x10e   : > { %v1262_v4 = vpack.c.bf16 %v834_v62, %v833_v58  ;;  %v1302_v5 = vpack.c.bf16 %v850_v63, %v849_v59  ;;  %v832_v6 = vmax.f32 %v800_v0, 0.0  ;;  %v848_v7 = vmax.f32 %v816_v1, 0.0 }
 0x110   : > { %1310 = vst [vmem:[%s1585_s17 + $0x38] sm:$0xff] %v1262_v4   ;;  %1318 = vst [vmem:[%s1585_s17 + $0x78] sm:$0xff] %v1302_v5   ;;  %v1257_v8 = vpack.c.bf16 %v832_v6, %v831_v2  ;;  %v1297_v9 = vpack.c.bf16 %v848_v7, %v847_v3 }
 0x112   : > { %1309 = vst [vmem:[%s1585_s17 + $0x30] sm:$0xff] %v1257_v8   ;;  %1317 = vst [vmem:[%s1585_s17 + $0x70] sm:$0xff] %v1297_v9  }
 0x113 PF: > { %s13_s14 = sadd.s32 1, %s1477_s14   ;;  %s1640_s12 = smov %s1473_s13 }
 0x114   : > { %p10_p5 = scmp.ge.s32.totalorder %s13_s14, 4   ;;  %s1641_s13 = smov %s1643_s15 }
 0x116   :  { %12 = sbr.rel (!%p10_p5) target bundleno = 2 (0x2), region = 76 }

// kernel: resnet_forward.16
= control target key start
LH: loop header
LB: loop body
LE: loop exit
PB: predicated region body
PF: predicated region fallthrough
CT: control target
= control target key end

     0   :  { %s1192_s12 = smov 0   ;;  %s1194_s13 = smov 0   ;;  %s1324_s0 = inlined_call_operand.vmem [shape: bf16[128,640], index: 0, kind: input, shape index: {}]   ;;  %s1325_s1 = inlined_call_operand.vmem [shape: bf16[640,128], index: 1, kind: input, shape index: {}]   ;;  %s1326_s2 = inlined_call_operand.vmem [shape: f32[1,128], index: 2, kind: input, shape index: {}]   ;;  %s1327_s3 = inlined_call_operand.vmem [shape: bf16[128,128], index: 3, kind: output, shape index: {}]  }
   0x1   :  { %s1196_s14 = smov 0   ;;  %s1198_s15 = smov 0  }
   0x2   :  { %s1200_s16 = smov 0  }
   0x3 LB: > { %s25_s17 = sadd.s32 1, %s1165_s15  ;;  %p48_p1 = scmp.ne.s32.totalorder %s1157_s13, %s1153_s12  ;;  %s1169_s16 = sphi %s1200_s16, %s13_s16   ;;  %s1165_s15 = sphi %s1198_s15, %s1331_s15   ;;  %s1161_s14 = sphi %s1196_s14, %s1330_s14   ;;  %s1157_s13 = sphi %s1194_s13, %s1329_s13   ;;  %s1153_s12 = sphi %s1192_s12, %s1328_s12  }
   0x4   : > { %p26_p0 = scmp.ge.s32.totalorder %s25_s17, 5  ;;  %p49_p2 = scmp.eq.s32.totalorder %s1169_s16, 0 }
   0x5   : > { %s41_s19 = sadd.s32 1, %s1157_s13  ;;  %p901_p5 = scmp.ge.s32.totalorder %s1169_s16, 5 }
   0x6   : > { %s1333_s17 = smov (%p26_p0, %s25_s17), 0  ;;  %p50_p3 = por %p49_p2, %p48_p1 }
   0x7   : > { %s37_s18 = ssub.s32 %s1165_s15, %s1333_s17  ;;  %162 = sbr.rel (%p901_p5) target bundleno = 26 (0x1a), region = 20 }
   0x8   : > { %p39_p4 = scmp.eq.s32.totalorder %s37_s18, 0 }
   0xa   : > { %s1227_s20 = scalar_select %p39_p4, %s1157_s13, %s41_s19  }
   0xc   : > { %165 = sbr.rel (!%p50_p3) target bundleno = 26 (0x1a), region = 24  ;;  %s167_s21 = sand.u32 (%p50_p3), 1, %s1157_s13  }
   0xd   : > { %s903_s22 = sshll.u32 (%p50_p3), %s1165_s15, 2  ;;  %s902_s23 = sshll.u32 (%p50_p3), %s167_s21, 6 }
   0xe   : > { %s1235_s26 = scalar_lea.vmem (%p50_p3), %s1324_s0, %s903_s22  ;;  %s169_s27 = scalar_lea.vmem (%p50_p3), [#allocation3], %s902_s23 }
   0xf   : > { %v191_v0 = vld [vmem:[%s1235_s26] sm:$0xf] (%p50_p3)  ;;  %v193_v1 = vld [vmem:[%s1235_s26 + $0x14] sm:$0xf] (%p50_p3)  ;;  %v195_v2 = vld [vmem:[%s1235_s26 + $0x28] sm:$0xf] (%p50_p3) }
  0x10   : > { %192 = vst [vmem:[%s169_s27] sm:$0xf] (%p50_p3), %v191_v0  ;;  %194 = vst [vmem:[%s169_s27 + $0x4] sm:$0xf] (%p50_p3), %v193_v1  ;;  %v197_v3 = vld [vmem:[%s1235_s26 + $0x3c] sm:$0xf] (%p50_p3) }
  0x11   : > { %v199_v4 = vld [vmem:[%s1235_s26 + $0x50] sm:$0xf]  ;;  %196 = vst [vmem:[%s169_s27 + $0x8] sm:$0xf] %v195_v2  ;;  %198 = vst [vmem:[%s169_s27 + $0xc] sm:$0xf] %v197_v3 }
  0x12   : > { %200 = vst [vmem:[%s169_s27 + $0x10] sm:$0xf] %v199_v4  ;;  %v201_v5 = vld [vmem:[%s1235_s26 + $0x64] sm:$0xf]  ;;  %v203_v6 = vld [vmem:[%s1235_s26 + $0x78] sm:$0xf] }
  0x13   : > { %v205_v7 = vld [vmem:[%s1235_s26 + $0x8c] sm:$0xf]  ;;  %202 = vst [vmem:[%s169_s27 + $0x14] sm:$0xf] %v201_v5  ;;  %204 = vst [vmem:[%s169_s27 + $0x18] sm:$0xf] %v203_v6 }
  0x14   : > { %206 = vst [vmem:[%s169_s27 + $0x1c] sm:$0xf] %v205_v7  ;;  %v207_v8 = vld [vmem:[%s1235_s26 + $0xa0] sm:$0xf]  ;;  %v209_v9 = vld [vmem:[%s1235_s26 + $0xb4] sm:$0xf] }
  0x15   : > { %v211_v10 = vld [vmem:[%s1235_s26 + $0xc8] sm:$0xf]  ;;  %208 = vst [vmem:[%s169_s27 + $0x20] sm:$0xf] %v207_v8  ;;  %210 = vst [vmem:[%s169_s27 + $0x24] sm:$0xf] %v209_v9 }
  0x16   : > { %212 = vst [vmem:[%s169_s27 + $0x28] sm:$0xf] %v211_v10  ;;  %v213_v11 = vld [vmem:[%s1235_s26 + $0xdc] sm:$0xf]  ;;  %v215_v12 = vld [vmem:[%s1235_s26 + $0xf0] sm:$0xf] }
  0x17   : > { %v217_v13 = vld [vmem:[%s1235_s26 + $0x104] sm:$0xf]  ;;  %214 = vst [vmem:[%s169_s27 + $0x2c] sm:$0xf] %v213_v11  ;;  %216 = vst [vmem:[%s169_s27 + $0x30] sm:$0xf] %v215_v12 }
  0x18   : > { %218 = vst [vmem:[%s169_s27 + $0x34] sm:$0xf] %v217_v13  ;;  %v219_v14 = vld [vmem:[%s1235_s26 + $0x118] sm:$0xf]  ;;  %v221_v15 = vld [vmem:[%s1235_s26 + $0x12c] sm:$0xf] }
  0x19   : > { %220 = vst [vmem:[%s169_s27 + $0x38] sm:$0xf] %v219_v14  ;;  %222 = vst [vmem:[%s169_s27 + $0x3c] sm:$0xf] %v221_v15 }
  0x1a PF: > { %p904_p6 = scmp.ge.s32.totalorder %s1169_s16, 1  ;;  %p289_p7 = scmp.lt.s32.totalorder %s1169_s16, 6 }
  0x1c   : > { %p290_p8 = pnand %p904_p6, %p289_p7 }
  0x1d   : > { %s296_s28 = sand.u32 (!%p290_p8), 1, %s1153_s12   ;;  %s906_s29 = sshll.u32 (!%p290_p8), %s1161_s14, 4 }
  0x1e   : > { %293 = sbr.rel (%p290_p8) target bundleno = 308 (0x134), region = 69  ;;  %s905_s30 = sshll.u32 (!%p290_p8), %s296_s28, 6 }
  0x1f   : > { %p335_p9 = scmp.lt.s32.totalorder (!%p290_p8), %s906_s29, 79  ;;  %s1262_s8 = scalar_lea.vmem (!%p290_p8), [#allocation3], %s905_s30 }
  0x20   : > { %p908_p10 = scmp.ne.s32.totalorder (!%p290_p8), %s1161_s14, 0 }
  0x23   : > { %s1335_s29 = smov (!%p335_p9, %s906_s29), 79  ;;  %359 = sbr.rel (%p908_p10) target bundleno = 49 (0x31), region = 77 }
  0x24   : > { %s907_s4 = sshll.u32 %s1335_s29, 2 }
  0x25   : > { %s1260_s7 = scalar_lea.vmem %s1325_s1, %s907_s4 }
  0x28   : > { %v1171_v16 = vmov 0.0  }
  0x29   : > { %360 = vst [vmem:[#allocation2 + $0x30] sm:$0xff] %v1171_v16  ;;  %361 = vst [vmem:[#allocation2] sm:$0xff] %v1171_v16 }
  0x2a   : > { %362 = vst [vmem:[#allocation2 + $0x58] sm:$0xff] %v1171_v16  ;;  %363 = vst [vmem:[#allocation2 + $0x18] sm:$0xff] %v1171_v16 }
  0x2b   : > { %364 = vst [vmem:[#allocation2 + $0x50] sm:$0xff] %v1171_v16  ;;  %365 = vst [vmem:[#allocation2 + $0x68] sm:$0xff] %v1171_v16 }
  0x2c   : > { %366 = vst [vmem:[#allocation2 + $0x8] sm:$0xff] %v1171_v16  ;;  %367 = vst [vmem:[#allocation2 + $0x48] sm:$0xff] %v1171_v16 }
  0x2d   : > { %368 = vst [vmem:[#allocation2 + $0x40] sm:$0xff] %v1171_v16  ;;  %369 = vst [vmem:[#allocation2 + $0x20] sm:$0xff] %v1171_v16 }
  0x2e   : > { %370 = vst [vmem:[#allocation2 + $0x10] sm:$0xff] %v1171_v16  ;;  %371 = vst [vmem:[#allocation2 + $0x38] sm:$0xff] %v1171_v16 }
  0x2f   : > { %372 = vst [vmem:[#allocation2 + $0x60] sm:$0xff] %v1171_v16  ;;  %373 = vst [vmem:[#allocation2 + $0x70] sm:$0xff] %v1171_v16 }
  0x30   : > { %374 = vst [vmem:[#allocation2 + $0x78] sm:$0xff] %v1171_v16  ;;  %375 = vst [vmem:[#allocation2 + $0x28] sm:$0xff] %v1171_v16 }
  0x31 PF: > { %v1115_v17 = vld [vmem:[%s1260_s7 + $0x38] sm:$0xff]   ;;  %v1116_v18 = vld [vmem:[%s1260_s7 + $0x30] sm:$0xff]   ;;  %v1117_v19 = vld [vmem:[%s1260_s7 + $0x28] sm:$0xff]   ;;  %p925_p11 = scmp.ne.s32.totalorder %s1161_s14, 4 }
  0x32   : > { %1026 = vmatprep.subr.bf16.mxu0 %v1115_v17  ;;  %1058 = vmatprep.subr.bf16.mxu1 %v1115_v17  ;;  %v1118_v20 = vld [vmem:[%s1260_s7 + $0x20] sm:$0xff]   ;;  %v1119_v23 = vld [vmem:[%s1260_s7 + $0x18] sm:$0xff]   ;;  %v1120_v24 = vld [vmem:[%s1260_s7 + $0x10] sm:$0xff]  }
  0x33   : > { %1027 = vmatpush3.bf16.msra.mxu0 %v1115_v17  ;;  %1066 = vmatpush3.bf16.msra.mxu1 %v1115_v17  ;;  %v1123_v21 = vld [vmem:[%s1262_s8] sm:$0xff]   ;;  %v1121_v25 = vld [vmem:[%s1260_s7 + $0x8] sm:$0xff]   ;;  %v1127_v29 = vld [vmem:[%s1262_s8 + $0x10] sm:$0xff]  }
  0x34   : > { %1028 = vmatprep.subr.bf16.mxu0 %v1116_v18  ;;  %1059 = vmatprep.subr.bf16.mxu1 %v1116_v18  ;;  %v1124_v22 = vld [vmem:[%s1262_s8 + $0x20] sm:$0xff]   ;;  %v1125_v27 = vld [vmem:[%s1262_s8 + $0x8] sm:$0xff]   ;;  %v1128_v30 = vld [vmem:[%s1262_s8 + $0x30] sm:$0xff]  }
  0x35   : > { %1042 = vmatprep.mubr.bf16.mxu0 %v1123_v21  ;;  %1050 = vmatprep.mubr.bf16.mxu1 %v1124_v22  ;;  %v1122_v26 = vld [vmem:[%s1260_s7] sm:$0xff]   ;;  %v1126_v28 = vld [vmem:[%s1262_s8 + $0x28] sm:$0xff]   ;;  %v1129_v31 = vld [vmem:[%s1262_s8 + $0x18] sm:$0xff]  }
  0x36   : > { %v1130_v32 = vld [vmem:[%s1262_s8 + $0x38] sm:$0xff]   ;;  %v386_v34 = vld [vmem:[#allocation2 + $0x10] sm:$0xff]  ;;  %v384_v38 = vld [vmem:[#allocation2 + $0x40] sm:$0xff] }
  0x37   : > { %1029 = vmatpush3.bf16.msra.mxu0 %v1116_v18  ;;  %1067 = vmatpush3.bf16.msra.mxu1 %v1116_v18  ;;  %v378_v33 = vld [vmem:[#allocation2 + $0x58] sm:$0xff]  ;;  %v376_v37 = vld [vmem:[#allocation2 + $0x30] sm:$0xff]  ;;  %v377_v49 = vld [vmem:[#allocation2] sm:$0xff] }
  0x38   : > { %1030 = vmatprep.subr.bf16.mxu0 %v1117_v19  ;;  %1060 = vmatprep.subr.bf16.mxu1 %v1117_v19  ;;  %v379_v43 = vld [vmem:[#allocation2 + $0x18] sm:$0xff]  ;;  %v385_v50 = vld [vmem:[#allocation2 + $0x20] sm:$0xff]  ;;  %v382_v55 = vld [vmem:[#allocation2 + $0x8] sm:$0xff] }
  0x39   : > { %v387_v44 = vld [vmem:[#allocation2 + $0x38] sm:$0xff]  ;;  %v380_v61 = vld [vmem:[#allocation2 + $0x50] sm:$0xff]  ;;  %v388_v62 = vld [vmem:[#allocation2 + $0x60] sm:$0xff] }
  0x3a   : > { %v390_v56 = vld [vmem:[#allocation2 + $0x78] sm:$0xff]  ;;  %v383_v3 = vld [vmem:[#allocation2 + $0x48] sm:$0xff]  ;;  %v389_v10 = vld [vmem:[#allocation2 + $0x70] sm:$0xff] }
  0x3b   : > { %1031 = vmatpush3.bf16.msra.mxu0 %v1117_v19  ;;  %1068 = vmatpush3.bf16.msra.mxu1 %v1117_v19  ;;  %v391_v4 = vld [vmem:[#allocation2 + $0x28] sm:$0xff] }
  0x3c   : > { %1032 = vmatprep.subr.bf16.mxu0 %v1118_v20  ;;  %1061 = vmatprep.subr.bf16.mxu1 %v1118_v20  ;;  %v381_v9 = vld [vmem:[#allocation2 + $0x68] sm:$0xff] }
  0x3f   : > { %1033 = vmatpush3.bf16.msra.mxu0 %v1118_v20  ;;  %1069 = vmatpush3.bf16.msra.mxu1 %v1118_v20 }
  0x40   : > { %1034 = vmatprep.subr.bf16.mxu0 %v1119_v23  ;;  %1062 = vmatprep.subr.bf16.mxu1 %v1119_v23 }
  0x43   : > { %1035 = vmatpush3.bf16.msra.mxu0 %v1119_v23  ;;  %1070 = vmatpush3.bf16.msra.mxu1 %v1119_v23 }
  0x44   : > { %1036 = vmatprep.subr.bf16.mxu0 %v1120_v24  ;;  %1063 = vmatprep.subr.bf16.mxu1 %v1120_v24 }
  0x47   : > { %1037 = vmatpush3.bf16.msra.mxu0 %v1120_v24  ;;  %1071 = vmatpush3.bf16.msra.mxu1 %v1120_v24 }
  0x48   : > { %1038 = vmatprep.subr.bf16.mxu0 %v1121_v25  ;;  %1064 = vmatprep.subr.bf16.mxu1 %v1121_v25 }
  0x4b   : > { %1039 = vmatpush3.bf16.msra.mxu0 %v1121_v25  ;;  %1072 = vmatpush3.bf16.msra.mxu1 %v1121_v25 }
  0x4c   : > { %1040 = vmatprep.subr.bf16.mxu0 %v1122_v26  ;;  %1065 = vmatprep.subr.bf16.mxu1 %v1122_v26 }
  0x4f   : > { %1041 = vmatpush3.bf16.msra.mxu0 %v1122_v26  ;;  %1073 = vmatpush3.bf16.msra.mxu1 %v1122_v26 }
  0x52   : > { %1043 = vmatmul.mubr.bf16.vlgmr.msra.gmra.mxu0 %v1125_v27  ;;  %1051 = vmatmul.mubr.bf16.vlgmr.msra.gmra.mxu1 %v1126_v28 }
  0x53   : > { %1046 = vmatprep.mubr.bf16.mxu0 %v1127_v29  ;;  %1054 = vmatprep.mubr.bf16.mxu1 %v1128_v30 }
  0x5a   : > { %1047 = vmatmul.mubr.bf16.gmra.mxu0 %v1129_v31  ;;  %1055 = vmatmul.mubr.bf16.gmra.mxu1 %v1130_v32 }
 0x112   : > { %v1044_v35 = vpop.f32.mrf.mxu0  ;;  %v1052_v36 = vpop.f32.mrf.mxu1 }
 0x113   : > { %v619_v39 = vadd.f32 %v1044_v35, %v378_v33  ;;  %v627_v40 = vadd.f32 %v1052_v36, %v386_v34 }
 0x114   : > { %v554_v41 = vpop.f32.mrf.mxu0  ;;  %v586_v42 = vpop.f32.mrf.mxu1 }
 0x115   : > { %635 = vst [vmem:[#allocation2 + $0x58] sm:$0xff] %v619_v39  ;;  %643 = vst [vmem:[#allocation2 + $0x10] sm:$0xff] %v627_v40  ;;  %v617_v45 = vadd.f32 %v554_v41, %v376_v37  ;;  %v625_v46 = vadd.f32 %v586_v42, %v384_v38 }
 0x116   : > { %v1045_v47 = vpop.f32.mrf.mxu0  ;;  %v1053_v48 = vpop.f32.mrf.mxu1 }
 0x117   : > { %633 = vst [vmem:[#allocation2 + $0x30] sm:$0xff] %v617_v45  ;;  %641 = vst [vmem:[#allocation2 + $0x40] sm:$0xff] %v625_v46  ;;  %v620_v51 = vadd.f32 %v1045_v47, %v379_v43  ;;  %v628_v52 = vadd.f32 %v1053_v48, %v387_v44 }
 0x118   : > { %v557_v53 = vpop.f32.mrf.mxu0  ;;  %v589_v54 = vpop.f32.mrf.mxu1 }
 0x119   : > { %636 = vst [vmem:[#allocation2 + $0x18] sm:$0xff] %v620_v51  ;;  %644 = vst [vmem:[#allocation2 + $0x38] sm:$0xff] %v628_v52  ;;  %v618_v57 = vadd.f32 %v557_v53, %v377_v49  ;;  %v626_v58 = vadd.f32 %v589_v54, %v385_v50 }
 0x11a   : > { %v1048_v59 = vpop.f32.mrf.mxu0  ;;  %v1056_v60 = vpop.f32.mrf.mxu1 }
 0x11b   : > { %634 = vst [vmem:[#allocation2] sm:$0xff] %v618_v57  ;;  %642 = vst [vmem:[#allocation2 + $0x20] sm:$0xff] %v626_v58  ;;  %v623_v63 = vadd.f32 %v1048_v59, %v382_v55  ;;  %v631_v0 = vadd.f32 %v1056_v60, %v390_v56 }
 0x11c   : > { %v570_v1 = vpop.f32.mrf.mxu0  ;;  %v602_v2 = vpop.f32.mrf.mxu1 }
 0x11d   : > { %639 = vst [vmem:[#allocation2 + $0x8] sm:$0xff] %v623_v63  ;;  %647 = vst [vmem:[#allocation2 + $0x78] sm:$0xff] %v631_v0  ;;  %v621_v5 = vadd.f32 %v570_v1, %v380_v61  ;;  %v629_v6 = vadd.f32 %v602_v2, %v388_v62 }
 0x11e   : > { %v1049_v7 = vpop.f32.mrf.mxu0  ;;  %v1057_v8 = vpop.f32.mrf.mxu1 }
 0x11f   : > { %637 = vst [vmem:[#allocation2 + $0x50] sm:$0xff] %v621_v5  ;;  %645 = vst [vmem:[#allocation2 + $0x60] sm:$0xff] %v629_v6  ;;  %v624_v11 = vadd.f32 %v1049_v7, %v383_v3  ;;  %v632_v12 = vadd.f32 %v1057_v8, %v391_v4  ;;  %652 = sbr.rel (%p925_p11) target bundleno = 308 (0x134), region = 81 }
 0x120   : > { %v573_v13 = vpop.f32.mrf.mxu0  ;;  %v605_v14 = vpop.f32.mrf.mxu1 }
 0x121   : > { %640 = vst [vmem:[#allocation2 + $0x48] sm:$0xff] %v624_v11  ;;  %648 = vst [vmem:[#allocation2 + $0x28] sm:$0xff] %v632_v12  ;;  %v622_v15 = vadd.f32 %v573_v13, %v381_v9  ;;  %v630_v16 = vadd.f32 %v605_v14, %v389_v10 }
 0x123   : > { %638 = vst [vmem:[#allocation2 + $0x68] sm:$0xff] %v622_v15  ;;  %646 = vst [vmem:[#allocation2 + $0x70] sm:$0xff] %v630_v16 }
 0x124   : > { %v653_v17 = vld [vmem:[#allocation2 + $0x30] sm:$0xff]  ;;  %v654_v18 = vld [vmem:[#allocation2] sm:$0xff]  ;;  %v655_v22 = vld [vmem:[#allocation2 + $0x58] sm:$0xff] }
 0x125   : > { %v926_v19 = vld [vmem:[%s1326_s2] ss:$0 sm:$0xff]  ;;  %v656_v23 = vld [vmem:[#allocation2 + $0x18] sm:$0xff]  ;;  %v659_v29 = vld [vmem:[#allocation2 + $0x8] sm:$0xff] }
 0x126   : > { %v676_v20 = vadd.f32 %v926_v19, %v653_v17  ;;  %v677_v21 = vadd.f32 %v926_v19, %v654_v18  ;;  %v657_v24 = vld [vmem:[#allocation2 + $0x50] sm:$0xff]  ;;  %v678_v25 = vadd.f32 %v926_v19, %v655_v22  ;;  %v679_v26 = vadd.f32 %v926_v19, %v656_v23  ;;  %v661_v35 = vld [vmem:[#allocation2 + $0x40] sm:$0xff]  ;;  %v664_v42 = vld [vmem:[#allocation2 + $0x38] sm:$0xff] }
 0x127   : > { %v680_v28 = vadd.f32 %v926_v19, %v657_v24  ;;  %v682_v34 = vadd.f32 %v926_v19, %v659_v29  ;;  %v662_v36 = vld [vmem:[#allocation2 + $0x20] sm:$0xff]  ;;  %v663_v37 = vld [vmem:[#allocation2 + $0x10] sm:$0xff]  ;;  %v684_v47 = vadd.f32 %v926_v19, %v661_v35  ;;  %v667_v53 = vld [vmem:[#allocation2 + $0x78] sm:$0xff]  ;;  %v687_v57 = vadd.f32 %v926_v19, %v664_v42 }
 0x128   : > { %v660_v30 = vld [vmem:[#allocation2 + $0x48] sm:$0xff]  ;;  %v692_v31 = vmax.f32 %v676_v20, 0.0  ;;  %v693_v32 = vmax.f32 %v677_v21, 0.0  ;;  %v694_v38 = vmax.f32 %v678_v25, 0.0  ;;  %v695_v39 = vmax.f32 %v679_v26, 0.0  ;;  %v665_v43 = vld [vmem:[#allocation2 + $0x60] sm:$0xff] }
 0x129   : > { %v696_v40 = vmax.f32 %v680_v28, 0.0  ;;  %v683_v41 = vadd.f32 %v926_v19, %v660_v30  ;;  %v698_v46 = vmax.f32 %v682_v34, 0.0  ;;  %v685_v51 = vadd.f32 %v926_v19, %v662_v36  ;;  %v668_v54 = vld [vmem:[#allocation2 + $0x28] sm:$0xff] }
 0x12a   : > { %v658_v27 = vld [vmem:[#allocation2 + $0x68] sm:$0xff]  ;;  %v966_v44 = vpack.c.bf16 %v693_v32, %v692_v31  ;;  %v666_v48 = vld [vmem:[#allocation2 + $0x70] sm:$0xff]  ;;  %v971_v49 = vpack.c.bf16 %v695_v39, %v694_v38  ;;  %v686_v52 = vadd.f32 %v926_v19, %v663_v37  ;;  %v700_v56 = vmax.f32 %v684_v47, 0.0 }
 0x12b   : > { %v681_v33 = vadd.f32 %v926_v19, %v658_v27  ;;  %v699_v50 = vmax.f32 %v683_v41, 0.0  ;;  %v688_v58 = vadd.f32 %v926_v19, %v665_v43  ;;  %v701_v60 = vmax.f32 %v685_v51, 0.0 }
 0x12c   : > { %967 = vst [vmem:[%s1327_s3] sm:$0xff] %v966_v44   ;;  %1003 = vst [vmem:[%s1327_s3 + $0x8] sm:$0xff] %v971_v49   ;;  %v702_v61 = vmax.f32 %v686_v52, 0.0  ;;  %v689_v62 = vadd.f32 %v926_v19, %v666_v48  ;;  %v703_v63 = vmax.f32 %v687_v57, 0.0  ;;  %v690_v1 = vadd.f32 %v926_v19, %v667_v53 }
 0x12d   : > { %v697_v45 = vmax.f32 %v681_v33, 0.0  ;;  %v981_v59 = vpack.c.bf16 %v699_v50, %v698_v46  ;;  %v704_v0 = vmax.f32 %v688_v58, 0.0  ;;  %v691_v2 = vadd.f32 %v926_v19, %v668_v54 }
 0x12e   : > { %v986_v3 = vpack.c.bf16 %v701_v60, %v700_v56  ;;  %v705_v4 = vmax.f32 %v689_v62, 0.0  ;;  %v991_v5 = vpack.c.bf16 %v703_v63, %v702_v61  ;;  %v706_v6 = vmax.f32 %v690_v1, 0.0 }
 0x12f   : > { %v976_v55 = vpack.c.bf16 %v697_v45, %v696_v40  ;;  %1005 = vst [vmem:[%s1327_s3 + $0x18] sm:$0xff] %v981_v59   ;;  %v707_v7 = vmax.f32 %v691_v2, 0.0 }
 0x130   : > { %1006 = vst [vmem:[%s1327_s3 + $0x20] sm:$0xff] %v986_v3   ;;  %v996_v8 = vpack.c.bf16 %v705_v4, %v704_v0  ;;  %1007 = vst [vmem:[%s1327_s3 + $0x28] sm:$0xff] %v991_v5  }
 0x131   : > { %1004 = vst [vmem:[%s1327_s3 + $0x10] sm:$0xff] %v976_v55   ;;  %v1001_v9 = vpack.c.bf16 %v707_v7, %v706_v6 }
 0x132   : > { %1008 = vst [vmem:[%s1327_s3 + $0x30] sm:$0xff] %v996_v8  }
 0x133   : > { %1009 = vst [vmem:[%s1327_s3 + $0x38] sm:$0xff] %v1001_v9  }
 0x134 PF: > { %s13_s16 = sadd.s32 1, %s1169_s16   ;;  %s1328_s12 = smov %s1157_s13 }
 0x135   : > { %p10_p12 = scmp.ge.s32.totalorder %s13_s16, 7   ;;  %s1329_s13 = smov %s1227_s20 }
 0x136   : > { %s1330_s14 = smov %s1165_s15  ;;  %s1331_s15 = smov %s1333_s17 }
 0x137   :  { %12 = sbr.rel (!%p10_p12) target bundleno = 3 (0x3), region = 122 }

// kernel: resnet_forward.17
= control target key start
LH: loop header
LB: loop body
LE: loop exit
PB: predicated region body
PF: predicated region fallthrough
CT: control target
= control target key end

     0   :  { %s1363_s15 = smov 0   ;;  %s1365_s16 = smov 0   ;;  %s1537_s0 = inlined_call_operand.vmem [shape: bf16[128,640], index: 0, kind: input, shape index: {}]   ;;  %s1538_s1 = inlined_call_operand.vmem [shape: bf16[640,128], index: 1, kind: input, shape index: {}]   ;;  %s1539_s2 = inlined_call_operand.vmem [shape: f32[1,128], index: 2, kind: input, shape index: {}]   ;;  %s1540_s3 = inlined_call_operand.vmem [shape: bf16[128,128], index: 3, kind: input, shape index: {}]   ;;  %s1541_s4 = inlined_call_operand.vmem [shape: bf16[128,128], index: 4, kind: output, shape index: {}]  }
   0x1   :  { %s1367_s17 = smov 0   ;;  %s1369_s18 = smov 0  }
   0x2   :  { %s1371_s19 = smov 0  }
   0x3 LB: > { %s26_s20 = sadd.s32 1, %s1331_s18  ;;  %p49_p1 = scmp.ne.s32.totalorder %s1323_s16, %s1319_s15  ;;  %s1335_s19 = sphi %s1371_s19, %s14_s19   ;;  %s1331_s18 = sphi %s1369_s18, %s1545_s18   ;;  %s1327_s17 = sphi %s1367_s17, %s1544_s17   ;;  %s1323_s16 = sphi %s1365_s16, %s1543_s16   ;;  %s1319_s15 = sphi %s1363_s15, %s1542_s15  }
   0x4   : > { %p27_p0 = scmp.ge.s32.totalorder %s26_s20, 5  ;;  %p50_p2 = scmp.eq.s32.totalorder %s1335_s19, 0 }
   0x5   : > { %s42_s22 = sadd.s32 1, %s1323_s16  ;;  %p1028_p5 = scmp.ge.s32.totalorder %s1335_s19, 5 }
   0x6   : > { %s1547_s20 = smov (%p27_p0, %s26_s20), 0  ;;  %p51_p3 = por %p50_p2, %p49_p1 }
   0x7   : > { %s38_s21 = ssub.s32 %s1331_s18, %s1547_s20  ;;  %203 = sbr.rel (%p1028_p5) target bundleno = 26 (0x1a), region = 24 }
   0x8   : > { %p40_p4 = scmp.eq.s32.totalorder %s38_s21, 0 }
   0xa   : > { %s1398_s23 = scalar_select %p40_p4, %s1323_s16, %s42_s22  }
   0xc   : > { %206 = sbr.rel (!%p51_p3) target bundleno = 26 (0x1a), region = 28  ;;  %s208_s24 = sand.u32 (%p51_p3), 1, %s1323_s16  }
   0xd   : > { %s1030_s25 = sshll.u32 (%p51_p3), %s1331_s18, 2  ;;  %s1029_s26 = sshll.u32 (%p51_p3), %s208_s24, 6 }
   0xe   : > { %s1406_s29 = scalar_lea.vmem (%p51_p3), %s1537_s0, %s1030_s25  ;;  %s210_s30 = scalar_lea.vmem (%p51_p3), [#allocation3], %s1029_s26 }
   0xf   : > { %v232_v0 = vld [vmem:[%s1406_s29] sm:$0xf] (%p51_p3)  ;;  %v234_v1 = vld [vmem:[%s1406_s29 + $0x14] sm:$0xf] (%p51_p3)  ;;  %v236_v2 = vld [vmem:[%s1406_s29 + $0x28] sm:$0xf] (%p51_p3) }
  0x10   : > { %233 = vst [vmem:[%s210_s30] sm:$0xf] (%p51_p3), %v232_v0  ;;  %235 = vst [vmem:[%s210_s30 + $0x4] sm:$0xf] (%p51_p3), %v234_v1  ;;  %v238_v3 = vld [vmem:[%s1406_s29 + $0x3c] sm:$0xf] (%p51_p3) }
  0x11   : > { %v240_v4 = vld [vmem:[%s1406_s29 + $0x50] sm:$0xf]  ;;  %237 = vst [vmem:[%s210_s30 + $0x8] sm:$0xf] %v236_v2  ;;  %239 = vst [vmem:[%s210_s30 + $0xc] sm:$0xf] %v238_v3 }
  0x12   : > { %241 = vst [vmem:[%s210_s30 + $0x10] sm:$0xf] %v240_v4  ;;  %v242_v5 = vld [vmem:[%s1406_s29 + $0x64] sm:$0xf]  ;;  %v244_v6 = vld [vmem:[%s1406_s29 + $0x78] sm:$0xf] }
  0x13   : > { %v246_v7 = vld [vmem:[%s1406_s29 + $0x8c] sm:$0xf]  ;;  %243 = vst [vmem:[%s210_s30 + $0x14] sm:$0xf] %v242_v5  ;;  %245 = vst [vmem:[%s210_s30 + $0x18] sm:$0xf] %v244_v6 }
  0x14   : > { %247 = vst [vmem:[%s210_s30 + $0x1c] sm:$0xf] %v246_v7  ;;  %v248_v8 = vld [vmem:[%s1406_s29 + $0xa0] sm:$0xf]  ;;  %v250_v9 = vld [vmem:[%s1406_s29 + $0xb4] sm:$0xf] }
  0x15   : > { %v252_v10 = vld [vmem:[%s1406_s29 + $0xc8] sm:$0xf]  ;;  %249 = vst [vmem:[%s210_s30 + $0x20] sm:$0xf] %v248_v8  ;;  %251 = vst [vmem:[%s210_s30 + $0x24] sm:$0xf] %v250_v9 }
  0x16   : > { %253 = vst [vmem:[%s210_s30 + $0x28] sm:$0xf] %v252_v10  ;;  %v254_v11 = vld [vmem:[%s1406_s29 + $0xdc] sm:$0xf]  ;;  %v256_v12 = vld [vmem:[%s1406_s29 + $0xf0] sm:$0xf] }
  0x17   : > { %v258_v13 = vld [vmem:[%s1406_s29 + $0x104] sm:$0xf]  ;;  %255 = vst [vmem:[%s210_s30 + $0x2c] sm:$0xf] %v254_v11  ;;  %257 = vst [vmem:[%s210_s30 + $0x30] sm:$0xf] %v256_v12 }
  0x18   : > { %259 = vst [vmem:[%s210_s30 + $0x34] sm:$0xf] %v258_v13  ;;  %v260_v14 = vld [vmem:[%s1406_s29 + $0x118] sm:$0xf]  ;;  %v262_v15 = vld [vmem:[%s1406_s29 + $0x12c] sm:$0xf] }
  0x19   : > { %261 = vst [vmem:[%s210_s30 + $0x38] sm:$0xf] %v260_v14  ;;  %263 = vst [vmem:[%s210_s30 + $0x3c] sm:$0xf] %v262_v15 }
  0x1a PF: > { %p1031_p6 = scmp.ge.s32.totalorder %s1335_s19, 1  ;;  %p330_p7 = scmp.lt.s32.totalorder %s1335_s19, 6 }
  0x1c   : > { %p331_p8 = pnand %p1031_p6, %p330_p7 }
  0x1d   : > { %s337_s5 = sand.u32 (!%p331_p8), 1, %s1319_s15   ;;  %s1033_s6 = sshll.u32 (!%p331_p8), %s1327_s17, 4 }
  0x1e   : > { %334 = sbr.rel (%p331_p8) target bundleno = 318 (0x13e), region = 73  ;;  %s1032_s7 = sshll.u32 (!%p331_p8), %s337_s5, 6 }
  0x1f   : > { %p386_p9 = scmp.lt.s32.totalorder (!%p331_p8), %s1033_s6, 79  ;;  %s1433_s12 = scalar_lea.vmem (!%p331_p8), [#allocation3], %s1032_s7 }
  0x20   : > { %p1035_p10 = scmp.ne.s32.totalorder (!%p331_p8), %s1327_s17, 0 }
  0x23   : > { %s1549_s6 = smov (!%p386_p9, %s1033_s6), 79  ;;  %419 = sbr.rel (%p1035_p10) target bundleno = 49 (0x31), region = 81 }
  0x24   : > { %s1034_s8 = sshll.u32 %s1549_s6, 2 }
  0x25   : > { %s1431_s11 = scalar_lea.vmem %s1538_s1, %s1034_s8 }
  0x28   : > { %v1337_v16 = vmov 0.0  }
  0x29   : > { %420 = vst [vmem:[#allocation2 + $0x30] sm:$0xff] %v1337_v16  ;;  %421 = vst [vmem:[#allocation2] sm:$0xff] %v1337_v16 }
  0x2a   : > { %422 = vst [vmem:[#allocation2 + $0x58] sm:$0xff] %v1337_v16  ;;  %423 = vst [vmem:[#allocation2 + $0x18] sm:$0xff] %v1337_v16 }
  0x2b   : > { %424 = vst [vmem:[#allocation2 + $0x50] sm:$0xff] %v1337_v16  ;;  %425 = vst [vmem:[#allocation2 + $0x68] sm:$0xff] %v1337_v16 }
  0x2c   : > { %426 = vst [vmem:[#allocation2 + $0x8] sm:$0xff] %v1337_v16  ;;  %427 = vst [vmem:[#allocation2 + $0x48] sm:$0xff] %v1337_v16 }
  0x2d   : > { %428 = vst [vmem:[#allocation2 + $0x40] sm:$0xff] %v1337_v16  ;;  %429 = vst [vmem:[#allocation2 + $0x20] sm:$0xff] %v1337_v16 }
  0x2e   : > { %430 = vst [vmem:[#allocation2 + $0x10] sm:$0xff] %v1337_v16  ;;  %431 = vst [vmem:[#allocation2 + $0x38] sm:$0xff] %v1337_v16 }
  0x2f   : > { %432 = vst [vmem:[#allocation2 + $0x60] sm:$0xff] %v1337_v16  ;;  %433 = vst [vmem:[#allocation2 + $0x70] sm:$0xff] %v1337_v16 }
  0x30   : > { %434 = vst [vmem:[#allocation2 + $0x78] sm:$0xff] %v1337_v16  ;;  %435 = vst [vmem:[#allocation2 + $0x28] sm:$0xff] %v1337_v16 }
  0x31 PF: > { %v1281_v17 = vld [vmem:[%s1431_s11 + $0x38] sm:$0xff]   ;;  %v1282_v18 = vld [vmem:[%s1431_s11 + $0x30] sm:$0xff]   ;;  %v1283_v19 = vld [vmem:[%s1431_s11 + $0x28] sm:$0xff]   ;;  %p1052_p11 = scmp.ne.s32.totalorder %s1327_s17, 4 }
  0x32   : > { %1192 = vmatprep.subr.bf16.mxu0 %v1281_v17  ;;  %1224 = vmatprep.subr.bf16.mxu1 %v1281_v17  ;;  %v1284_v20 = vld [vmem:[%s1431_s11 + $0x20] sm:$0xff]   ;;  %v1285_v23 = vld [vmem:[%s1431_s11 + $0x18] sm:$0xff]   ;;  %v1286_v24 = vld [vmem:[%s1431_s11 + $0x10] sm:$0xff]  }
  0x33   : > { %1193 = vmatpush3.bf16.msra.mxu0 %v1281_v17  ;;  %1232 = vmatpush3.bf16.msra.mxu1 %v1281_v17  ;;  %v1289_v21 = vld [vmem:[%s1433_s12] sm:$0xff]   ;;  %v1287_v25 = vld [vmem:[%s1431_s11 + $0x8] sm:$0xff]   ;;  %v1293_v29 = vld [vmem:[%s1433_s12 + $0x10] sm:$0xff]  }
  0x34   : > { %1194 = vmatprep.subr.bf16.mxu0 %v1282_v18  ;;  %1225 = vmatprep.subr.bf16.mxu1 %v1282_v18  ;;  %v1290_v22 = vld [vmem:[%s1433_s12 + $0x20] sm:$0xff]   ;;  %v1291_v27 = vld [vmem:[%s1433_s12 + $0x8] sm:$0xff]   ;;  %v1294_v30 = vld [vmem:[%s1433_s12 + $0x30] sm:$0xff]  }
  0x35   : > { %1208 = vmatprep.mubr.bf16.mxu0 %v1289_v21  ;;  %1216 = vmatprep.mubr.bf16.mxu1 %v1290_v22  ;;  %v1288_v26 = vld [vmem:[%s1431_s11] sm:$0xff]   ;;  %v1292_v28 = vld [vmem:[%s1433_s12 + $0x28] sm:$0xff]   ;;  %v1295_v31 = vld [vmem:[%s1433_s12 + $0x18] sm:$0xff]  }
  0x36   : > { %v1296_v32 = vld [vmem:[%s1433_s12 + $0x38] sm:$0xff]   ;;  %v446_v34 = vld [vmem:[#allocation2 + $0x10] sm:$0xff]  ;;  %v444_v38 = vld [vmem:[#allocation2 + $0x40] sm:$0xff] }
  0x37   : > { %1195 = vmatpush3.bf16.msra.mxu0 %v1282_v18  ;;  %1233 = vmatpush3.bf16.msra.mxu1 %v1282_v18  ;;  %v438_v33 = vld [vmem:[#allocation2 + $0x58] sm:$0xff]  ;;  %v436_v37 = vld [vmem:[#allocation2 + $0x30] sm:$0xff]  ;;  %v437_v49 = vld [vmem:[#allocation2] sm:$0xff] }
  0x38   : > { %1196 = vmatprep.subr.bf16.mxu0 %v1283_v19  ;;  %1226 = vmatprep.subr.bf16.mxu1 %v1283_v19  ;;  %v439_v43 = vld [vmem:[#allocation2 + $0x18] sm:$0xff]  ;;  %v445_v50 = vld [vmem:[#allocation2 + $0x20] sm:$0xff]  ;;  %v442_v55 = vld [vmem:[#allocation2 + $0x8] sm:$0xff] }
  0x39   : > { %v447_v44 = vld [vmem:[#allocation2 + $0x38] sm:$0xff]  ;;  %v440_v61 = vld [vmem:[#allocation2 + $0x50] sm:$0xff]  ;;  %v448_v62 = vld [vmem:[#allocation2 + $0x60] sm:$0xff] }
  0x3a   : > { %v450_v56 = vld [vmem:[#allocation2 + $0x78] sm:$0xff]  ;;  %v443_v3 = vld [vmem:[#allocation2 + $0x48] sm:$0xff]  ;;  %v449_v10 = vld [vmem:[#allocation2 + $0x70] sm:$0xff] }
  0x3b   : > { %1197 = vmatpush3.bf16.msra.mxu0 %v1283_v19  ;;  %1234 = vmatpush3.bf16.msra.mxu1 %v1283_v19  ;;  %v451_v4 = vld [vmem:[#allocation2 + $0x28] sm:$0xff] }
  0x3c   : > { %1198 = vmatprep.subr.bf16.mxu0 %v1284_v20  ;;  %1227 = vmatprep.subr.bf16.mxu1 %v1284_v20  ;;  %v441_v9 = vld [vmem:[#allocation2 + $0x68] sm:$0xff] }
  0x3f   : > { %1199 = vmatpush3.bf16.msra.mxu0 %v1284_v20  ;;  %1235 = vmatpush3.bf16.msra.mxu1 %v1284_v20 }
  0x40   : > { %1200 = vmatprep.subr.bf16.mxu0 %v1285_v23  ;;  %1228 = vmatprep.subr.bf16.mxu1 %v1285_v23 }
  0x43   : > { %1201 = vmatpush3.bf16.msra.mxu0 %v1285_v23  ;;  %1236 = vmatpush3.bf16.msra.mxu1 %v1285_v23 }
  0x44   : > { %1202 = vmatprep.subr.bf16.mxu0 %v1286_v24  ;;  %1229 = vmatprep.subr.bf16.mxu1 %v1286_v24 }
  0x47   : > { %1203 = vmatpush3.bf16.msra.mxu0 %v1286_v24  ;;  %1237 = vmatpush3.bf16.msra.mxu1 %v1286_v24 }
  0x48   : > { %1204 = vmatprep.subr.bf16.mxu0 %v1287_v25  ;;  %1230 = vmatprep.subr.bf16.mxu1 %v1287_v25 }
  0x4b   : > { %1205 = vmatpush3.bf16.msra.mxu0 %v1287_v25  ;;  %1238 = vmatpush3.bf16.msra.mxu1 %v1287_v25 }
  0x4c   : > { %1206 = vmatprep.subr.bf16.mxu0 %v1288_v26  ;;  %1231 = vmatprep.subr.bf16.mxu1 %v1288_v26 }
  0x4f   : > { %1207 = vmatpush3.bf16.msra.mxu0 %v1288_v26  ;;  %1239 = vmatpush3.bf16.msra.mxu1 %v1288_v26 }
  0x52   : > { %1209 = vmatmul.mubr.bf16.vlgmr.msra.gmra.mxu0 %v1291_v27  ;;  %1217 = vmatmul.mubr.bf16.vlgmr.msra.gmra.mxu1 %v1292_v28 }
  0x53   : > { %1212 = vmatprep.mubr.bf16.mxu0 %v1293_v29  ;;  %1220 = vmatprep.mubr.bf16.mxu1 %v1294_v30 }
  0x5a   : > { %1213 = vmatmul.mubr.bf16.gmra.mxu0 %v1295_v31  ;;  %1221 = vmatmul.mubr.bf16.gmra.mxu1 %v1296_v32 }
 0x112   : > { %v1210_v35 = vpop.f32.mrf.mxu0  ;;  %v1218_v36 = vpop.f32.mrf.mxu1 }
 0x113   : > { %v679_v39 = vadd.f32 %v1210_v35, %v438_v33  ;;  %v687_v40 = vadd.f32 %v1218_v36, %v446_v34 }
 0x114   : > { %v614_v41 = vpop.f32.mrf.mxu0  ;;  %v646_v42 = vpop.f32.mrf.mxu1 }
 0x115   : > { %695 = vst [vmem:[#allocation2 + $0x58] sm:$0xff] %v679_v39  ;;  %703 = vst [vmem:[#allocation2 + $0x10] sm:$0xff] %v687_v40  ;;  %v677_v45 = vadd.f32 %v614_v41, %v436_v37  ;;  %v685_v46 = vadd.f32 %v646_v42, %v444_v38 }
 0x116   : > { %v1211_v47 = vpop.f32.mrf.mxu0  ;;  %v1219_v48 = vpop.f32.mrf.mxu1 }
 0x117   : > { %693 = vst [vmem:[#allocation2 + $0x30] sm:$0xff] %v677_v45  ;;  %701 = vst [vmem:[#allocation2 + $0x40] sm:$0xff] %v685_v46  ;;  %v680_v51 = vadd.f32 %v1211_v47, %v439_v43  ;;  %v688_v52 = vadd.f32 %v1219_v48, %v447_v44 }
 0x118   : > { %v617_v53 = vpop.f32.mrf.mxu0  ;;  %v649_v54 = vpop.f32.mrf.mxu1 }
 0x119   : > { %696 = vst [vmem:[#allocation2 + $0x18] sm:$0xff] %v680_v51  ;;  %704 = vst [vmem:[#allocation2 + $0x38] sm:$0xff] %v688_v52  ;;  %v678_v57 = vadd.f32 %v617_v53, %v437_v49  ;;  %v686_v58 = vadd.f32 %v649_v54, %v445_v50 }
 0x11a   : > { %v1214_v59 = vpop.f32.mrf.mxu0  ;;  %v1222_v60 = vpop.f32.mrf.mxu1 }
 0x11b   : > { %694 = vst [vmem:[#allocation2] sm:$0xff] %v678_v57  ;;  %702 = vst [vmem:[#allocation2 + $0x20] sm:$0xff] %v686_v58  ;;  %v683_v63 = vadd.f32 %v1214_v59, %v442_v55  ;;  %v691_v0 = vadd.f32 %v1222_v60, %v450_v56 }
 0x11c   : > { %v630_v1 = vpop.f32.mrf.mxu0  ;;  %v662_v2 = vpop.f32.mrf.mxu1 }
 0x11d   : > { %699 = vst [vmem:[#allocation2 + $0x8] sm:$0xff] %v683_v63  ;;  %707 = vst [vmem:[#allocation2 + $0x78] sm:$0xff] %v691_v0  ;;  %v681_v5 = vadd.f32 %v630_v1, %v440_v61  ;;  %v689_v6 = vadd.f32 %v662_v2, %v448_v62 }
 0x11e   : > { %v1215_v7 = vpop.f32.mrf.mxu0  ;;  %v1223_v8 = vpop.f32.mrf.mxu1 }
 0x11f   : > { %697 = vst [vmem:[#allocation2 + $0x50] sm:$0xff] %v681_v5  ;;  %705 = vst [vmem:[#allocation2 + $0x60] sm:$0xff] %v689_v6  ;;  %v684_v11 = vadd.f32 %v1215_v7, %v443_v3  ;;  %v692_v12 = vadd.f32 %v1223_v8, %v451_v4  ;;  %712 = sbr.rel (%p1052_p11) target bundleno = 318 (0x13e), region = 85 }
 0x120   : > { %v633_v13 = vpop.f32.mrf.mxu0  ;;  %v665_v14 = vpop.f32.mrf.mxu1 }
 0x121   : > { %700 = vst [vmem:[#allocation2 + $0x48] sm:$0xff] %v684_v11  ;;  %708 = vst [vmem:[#allocation2 + $0x28] sm:$0xff] %v692_v12  ;;  %v682_v15 = vadd.f32 %v633_v13, %v441_v9  ;;  %v690_v16 = vadd.f32 %v665_v14, %v449_v10 }
 0x123   : > { %698 = vst [vmem:[#allocation2 + $0x68] sm:$0xff] %v682_v15  ;;  %706 = vst [vmem:[#allocation2 + $0x70] sm:$0xff] %v690_v16 }
 0x124   : > { %v713_v17 = vld [vmem:[#allocation2 + $0x30] sm:$0xff]  ;;  %v714_v18 = vld [vmem:[#allocation2] sm:$0xff]  ;;  %v715_v23 = vld [vmem:[#allocation2 + $0x58] sm:$0xff] }
 0x125   : > { %v1456_v19 = vld [vmem:[%s1539_s2] ss:$0 sm:$0xff]  ;;  %v716_v24 = vld [vmem:[#allocation2 + $0x18] sm:$0xff]  ;;  %v1162_v29 = vld [vmem:[%s1540_s3 + $0x8] sm:$0xff]  }
 0x126   : > { %v736_v20 = vadd.f32 %v1456_v19, %v713_v17  ;;  %v737_v21 = vadd.f32 %v1456_v19, %v714_v18  ;;  %v1091_v22 = vld [vmem:[%s1540_s3] sm:$0xff]   ;;  %v738_v27 = vadd.f32 %v1456_v19, %v715_v23  ;;  %v739_v28 = vadd.f32 %v1456_v19, %v716_v24  ;;  %v717_v30 = vld [vmem:[#allocation2 + $0x50] sm:$0xff]  ;;  %v719_v37 = vld [vmem:[#allocation2 + $0x8] sm:$0xff] }
 0x127   : > { %v1092_v25 = vunpack.c.l.bf16 %v1091_v22  ;;  %v1093_v26 = vunpack.c.h.bf16 %v1091_v22  ;;  %v1096_v32 = vunpack.c.l.bf16 %v1162_v29  ;;  %v1097_v33 = vunpack.c.h.bf16 %v1162_v29  ;;  %v1163_v36 = vld [vmem:[%s1540_s3 + $0x10] sm:$0xff]   ;;  %v1164_v43 = vld [vmem:[%s1540_s3 + $0x18] sm:$0xff]   ;;  %v721_v48 = vld [vmem:[#allocation2 + $0x40] sm:$0xff] }
 0x128   : > { %v740_v34 = vadd.f32 %v1456_v19, %v717_v30  ;;  %v720_v38 = vld [vmem:[#allocation2 + $0x48] sm:$0xff]  ;;  %v1100_v41 = vunpack.c.l.bf16 %v1163_v36  ;;  %v1101_v42 = vunpack.c.h.bf16 %v1163_v36  ;;  %v742_v46 = vadd.f32 %v1456_v19, %v719_v37  ;;  %v722_v53 = vld [vmem:[#allocation2 + $0x20] sm:$0xff]  ;;  %v723_v59 = vld [vmem:[#allocation2 + $0x10] sm:$0xff] }
 0x129   : > { %v784_v39 = vadd.f32 %v1092_v25, %v736_v20  ;;  %v785_v40 = vadd.f32 %v1093_v26, %v737_v21  ;;  %v786_v44 = vadd.f32 %v1096_v32, %v738_v27  ;;  %v787_v45 = vadd.f32 %v1097_v33, %v739_v28  ;;  %v1165_v58 = vld [vmem:[%s1540_s3 + $0x20] sm:$0xff]   ;;  %v724_v0 = vld [vmem:[#allocation2 + $0x38] sm:$0xff]  ;;  %v1166_v1 = vld [vmem:[%s1540_s3 + $0x28] sm:$0xff]  }
 0x12a   : > { %v718_v31 = vld [vmem:[#allocation2 + $0x68] sm:$0xff]  ;;  %v743_v47 = vadd.f32 %v1456_v19, %v720_v38  ;;  %v788_v51 = vadd.f32 %v1100_v41, %v740_v34  ;;  %v1104_v56 = vunpack.c.l.bf16 %v1164_v43  ;;  %v1105_v57 = vunpack.c.h.bf16 %v1164_v43  ;;  %v725_v6 = vld [vmem:[#allocation2 + $0x60] sm:$0xff]  ;;  %v726_v11 = vld [vmem:[#allocation2 + $0x70] sm:$0xff] }
 0x12b   : > { %v741_v35 = vadd.f32 %v1456_v19, %v718_v31  ;;  %v800_v49 = vmax.f32 %v784_v39, 0.0  ;;  %v801_v50 = vmax.f32 %v785_v40, 0.0  ;;  %v802_v54 = vmax.f32 %v786_v44, 0.0  ;;  %v1167_v12 = vld [vmem:[%s1540_s3 + $0x30] sm:$0xff]   ;;  %v727_v22 = vld [vmem:[#allocation2 + $0x78] sm:$0xff]  ;;  %v728_v23 = vld [vmem:[#allocation2 + $0x28] sm:$0xff] }
 0x12c   : > { %v803_v55 = vmax.f32 %v787_v45, 0.0  ;;  %v804_v61 = vmax.f32 %v788_v51, 0.0  ;;  %v744_v63 = vadd.f32 %v1456_v19, %v721_v48  ;;  %v790_v3 = vadd.f32 %v1104_v56, %v742_v46  ;;  %v1168_v28 = vld [vmem:[%s1540_s3 + $0x38] sm:$0xff]  }
 0x12d   : > { %v789_v52 = vadd.f32 %v1101_v42, %v741_v35  ;;  %v1125_v60 = vpack.c.bf16 %v801_v50, %v800_v49  ;;  %v791_v4 = vadd.f32 %v1105_v57, %v743_v47  ;;  %v745_v5 = vadd.f32 %v1456_v19, %v722_v53 }
 0x12e   : > { %v1130_v2 = vpack.c.bf16 %v803_v55, %v802_v54  ;;  %v1108_v8 = vunpack.c.l.bf16 %v1165_v58  ;;  %v1109_v9 = vunpack.c.h.bf16 %v1165_v58  ;;  %v746_v10 = vadd.f32 %v1456_v19, %v723_v59 }
 0x12f   : > { %v805_v62 = vmax.f32 %v789_v52, 0.0  ;;  %1126 = vst [vmem:[%s1541_s4] sm:$0xff] %v1125_v60   ;;  %v806_v13 = vmax.f32 %v790_v3, 0.0  ;;  %v807_v14 = vmax.f32 %v791_v4, 0.0  ;;  %v747_v15 = vadd.f32 %v1456_v19, %v724_v0 }
 0x130   : > { %1169 = vst [vmem:[%s1541_s4 + $0x8] sm:$0xff] %v1130_v2   ;;  %v1112_v16 = vunpack.c.l.bf16 %v1166_v1  ;;  %v792_v17 = vadd.f32 %v1108_v8, %v744_v63  ;;  %v793_v18 = vadd.f32 %v1109_v9, %v745_v5  ;;  %v1113_v20 = vunpack.c.h.bf16 %v1166_v1 }
 0x131   : > { %v1135_v7 = vpack.c.bf16 %v805_v62, %v804_v61  ;;  %v748_v21 = vadd.f32 %v1456_v19, %v725_v6  ;;  %v1140_v24 = vpack.c.bf16 %v807_v14, %v806_v13  ;;  %v749_v26 = vadd.f32 %v1456_v19, %v726_v11 }
 0x132   : > { %v794_v25 = vadd.f32 %v1112_v16, %v746_v10  ;;  %v1116_v27 = vunpack.c.l.bf16 %v1167_v12  ;;  %v808_v29 = vmax.f32 %v792_v17, 0.0  ;;  %v809_v30 = vmax.f32 %v793_v18, 0.0 }
 0x133   : > { %1170 = vst [vmem:[%s1541_s4 + $0x10] sm:$0xff] %v1135_v7   ;;  %v795_v31 = vadd.f32 %v1113_v20, %v747_v15  ;;  %v1117_v32 = vunpack.c.h.bf16 %v1167_v12  ;;  %1171 = vst [vmem:[%s1541_s4 + $0x18] sm:$0xff] %v1140_v24   ;;  %v750_v35 = vadd.f32 %v1456_v19, %v727_v22  ;;  %v751_v36 = vadd.f32 %v1456_v19, %v728_v23 }
 0x134   : > { %v810_v33 = vmax.f32 %v794_v25, 0.0  ;;  %v796_v34 = vadd.f32 %v1116_v27, %v748_v21  ;;  %v1145_v37 = vpack.c.bf16 %v809_v30, %v808_v29  ;;  %v1120_v40 = vunpack.c.l.bf16 %v1168_v28 }
 0x135   : > { %v811_v38 = vmax.f32 %v795_v31, 0.0  ;;  %v797_v39 = vadd.f32 %v1117_v32, %v749_v26  ;;  %v1121_v42 = vunpack.c.h.bf16 %v1168_v28 }
 0x136   : > { %v812_v41 = vmax.f32 %v796_v34, 0.0  ;;  %1172 = vst [vmem:[%s1541_s4 + $0x20] sm:$0xff] %v1145_v37   ;;  %v798_v45 = vadd.f32 %v1120_v40, %v750_v35 }
 0x137   : > { %v1150_v43 = vpack.c.bf16 %v811_v38, %v810_v33  ;;  %v813_v44 = vmax.f32 %v797_v39, 0.0  ;;  %v799_v46 = vadd.f32 %v1121_v42, %v751_v36 }
 0x138   : > { %v814_v19 = vmax.f32 %v798_v45, 0.0 }
 0x139   : > { %1173 = vst [vmem:[%s1541_s4 + $0x28] sm:$0xff] %v1150_v43   ;;  %v1155_v47 = vpack.c.bf16 %v813_v44, %v812_v41  ;;  %v815_v48 = vmax.f32 %v799_v46, 0.0 }
 0x13b   : > { %1174 = vst [vmem:[%s1541_s4 + $0x30] sm:$0xff] %v1155_v47   ;;  %v1160_v49 = vpack.c.bf16 %v815_v48, %v814_v19 }
 0x13d   : > { %1175 = vst [vmem:[%s1541_s4 + $0x38] sm:$0xff] %v1160_v49  }
 0x13e PF: > { %s14_s19 = sadd.s32 1, %s1335_s19   ;;  %s1542_s15 = smov %s1323_s16 }
 0x13f   : > { %p11_p12 = scmp.ge.s32.totalorder %s14_s19, 7   ;;  %s1543_s16 = smov %s1398_s23 }
 0x140   : > { %s1544_s17 = smov %s1331_s18  ;;  %s1545_s18 = smov %s1547_s20 }
 0x141   :  { %13 = sbr.rel (!%p11_p12) target bundleno = 3 (0x3), region = 129 }

// kernel: resnet_forward.18
= control target key start
LH: loop header
LB: loop body
LE: loop exit
PB: predicated region body
PF: predicated region fallthrough
CT: control target
= control target key end

     0   :  { %s798_s12 = smov 0   ;;  %s800_s13 = smov 0   ;;  %s891_s0 = inlined_call_operand.vmem [shape: bf16[32,640], index: 0, kind: input, shape index: {}]   ;;  %s892_s1 = inlined_call_operand.vmem [shape: bf16[640,128], index: 1, kind: input, shape index: {}]   ;;  %s893_s2 = inlined_call_operand.vmem [shape: f32[1,128], index: 2, kind: input, shape index: {}]   ;;  %s894_s3 = inlined_call_operand.vmem [shape: bf16[32,128], index: 3, kind: output, shape index: {}]  }
   0x1   :  { %s802_s14 = smov 0   ;;  %s804_s15 = smov 0  }
   0x2   :  { %s806_s16 = smov 0  }
   0x3 LB: > { %s25_s17 = sadd.s32 1, %s771_s15  ;;  %p48_p1 = scmp.ne.s32.totalorder %s763_s13, %s759_s12  ;;  %s775_s16 = sphi %s806_s16, %s13_s16   ;;  %s771_s15 = sphi %s804_s15, %s898_s15   ;;  %s767_s14 = sphi %s802_s14, %s897_s14   ;;  %s763_s13 = sphi %s800_s13, %s896_s13   ;;  %s759_s12 = sphi %s798_s12, %s895_s12  }
   0x4   : > { %p26_p0 = scmp.ge.s32.totalorder %s25_s17, 5  ;;  %p49_p2 = scmp.eq.s32.totalorder %s775_s16, 0 }
   0x5   : > { %s41_s19 = sadd.s32 1, %s763_s13  ;;  %p613_p5 = scmp.ge.s32.totalorder %s775_s16, 5 }
   0x6   : > { %s900_s17 = smov (%p26_p0, %s25_s17), 0  ;;  %p50_p3 = por %p49_p2, %p48_p1 }
   0x7   : > { %s37_s18 = ssub.s32 %s771_s15, %s900_s17  ;;  %162 = sbr.rel (%p613_p5) target bundleno = 18 (0x12), region = 20 }
   0x8   : > { %p39_p4 = scmp.eq.s32.totalorder %s37_s18, 0 }
   0xa   : > { %s833_s20 = scalar_select %p39_p4, %s763_s13, %s41_s19  }
   0xc   : > { %165 = sbr.rel (!%p50_p3) target bundleno = 18 (0x12), region = 24  ;;  %s167_s21 = sand.u32 (%p50_p3), 1, %s763_s13  }
   0xd   : > { %s615_s22 = sshll.u32 (%p50_p3), %s771_s15, 2  ;;  %s614_s23 = sshll.u32 (%p50_p3), %s167_s21, 4 }
   0xe   : > { %s174_s26 = scalar_lea.vmem (%p50_p3), %s891_s0, %s615_s22  ;;  %s169_s27 = scalar_lea.vmem (%p50_p3), [#allocation3], %s614_s23 }
   0xf   : > { %v191_v0 = vld [vmem:[%s174_s26] sm:$0xf] (%p50_p3)  ;;  %v193_v1 = vld [vmem:[%s174_s26 + $0x14] sm:$0xf] (%p50_p3)  ;;  %v195_v2 = vld [vmem:[%s174_s26 + $0x28] sm:$0xf] (%p50_p3) }
  0x10   : > { %192 = vst [vmem:[%s169_s27] sm:$0xf] (%p50_p3), %v191_v0  ;;  %194 = vst [vmem:[%s169_s27 + $0x4] sm:$0xf] (%p50_p3), %v193_v1  ;;  %v197_v3 = vld [vmem:[%s174_s26 + $0x3c] sm:$0xf] (%p50_p3) }
  0x11   : > { %196 = vst [vmem:[%s169_s27 + $0x8] sm:$0xf] %v195_v2  ;;  %198 = vst [vmem:[%s169_s27 + $0xc] sm:$0xf] %v197_v3 }
  0x12 PF: > { %p616_p6 = scmp.ge.s32.totalorder %s775_s16, 1  ;;  %p241_p7 = scmp.lt.s32.totalorder %s775_s16, 6 }
  0x14   : > { %p242_p8 = pnand %p616_p6, %p241_p7 }
  0x15   : > { %s248_s28 = sand.u32 (!%p242_p8), 1, %s759_s12   ;;  %s618_s29 = sshll.u32 (!%p242_p8), %s767_s14, 4 }
  0x16   : > { %245 = sbr.rel (%p242_p8) target bundleno = 284 (0x11c), region = 69  ;;  %s845_s30 = sshll.u32 (!%p242_p8), %s248_s28, 4 }
  0x17   : > { %p287_p9 = scmp.lt.s32.totalorder (!%p242_p8), %s618_s29, 79  ;;  %s250_s8 = scalar_lea.vmem (!%p242_p8), [#allocation3], %s845_s30 }
  0x18   : > { %p620_p10 = scmp.ne.s32.totalorder (!%p242_p8), %s767_s14, 0 }
  0x1b   : > { %s902_s29 = smov (!%p287_p9, %s618_s29), 79  ;;  %311 = sbr.rel (%p620_p10) target bundleno = 35 (0x23), region = 77 }
  0x1c   : > { %s619_s4 = sshll.u32 %s902_s29, 2 }
  0x1d   : > { %s850_s7 = scalar_lea.vmem %s892_s1, %s619_s4 }
  0x20   : > { %v777_v4 = vmov 0.0  }
  0x21   : > { %312 = vst [vmem:[#allocation2 + $0x10] sm:$0xff] %v777_v4  ;;  %313 = vst [vmem:[#allocation2] sm:$0xff] %v777_v4 }
  0x22   : > { %314 = vst [vmem:[#allocation2 + $0x18] sm:$0xff] %v777_v4  ;;  %315 = vst [vmem:[#allocation2 + $0x8] sm:$0xff] %v777_v4 }
  0x23 PF: > { %v727_v5 = vld [vmem:[%s850_s7 + $0x38] sm:$0xff]   ;;  %v728_v6 = vld [vmem:[%s850_s7 + $0x30] sm:$0xff]   ;;  %v729_v7 = vld [vmem:[%s850_s7 + $0x28] sm:$0xff]   ;;  %p631_p11 = scmp.ne.s32.totalorder %s767_s14, 4 }
  0x24   : > { %666 = vmatprep.subr.bf16.mxu0 %v727_v5  ;;  %v730_v8 = vld [vmem:[%s850_s7 + $0x20] sm:$0xff]   ;;  %v731_v10 = vld [vmem:[%s850_s7 + $0x18] sm:$0xff]   ;;  %v732_v11 = vld [vmem:[%s850_s7 + $0x10] sm:$0xff]  }
  0x25   : > { %667 = vmatpush3.bf16.msra.mxu0 %v727_v5  ;;  %v735_v9 = vld [vmem:[%s250_s8] sm:$0xff]   ;;  %v733_v12 = vld [vmem:[%s850_s7 + $0x8] sm:$0xff]  }
  0x26   : > { %668 = vmatprep.subr.bf16.mxu0 %v728_v6  ;;  %682 = vmatprep.mubr.bf16.mxu0 %v735_v9  ;;  %v734_v13 = vld [vmem:[%s850_s7] sm:$0xff]   ;;  %v736_v14 = vld [vmem:[%s250_s8 + $0x8] sm:$0xff]  }
  0x28   : > { %v316_v17 = vld [vmem:[#allocation2 + $0x10] sm:$0xff]  ;;  %v317_v23 = vld [vmem:[#allocation2] sm:$0xff] }
  0x29   : > { %669 = vmatpush3.bf16.msra.mxu0 %v728_v6  ;;  %v318_v15 = vld [vmem:[#allocation2 + $0x18] sm:$0xff]  ;;  %v319_v20 = vld [vmem:[#allocation2 + $0x8] sm:$0xff] }
  0x2a   : > { %670 = vmatprep.subr.bf16.mxu0 %v729_v7 }
  0x2d   : > { %671 = vmatpush3.bf16.msra.mxu0 %v729_v7 }
  0x2e   : > { %672 = vmatprep.subr.bf16.mxu0 %v730_v8 }
  0x31   : > { %673 = vmatpush3.bf16.msra.mxu0 %v730_v8 }
  0x32   : > { %674 = vmatprep.subr.bf16.mxu0 %v731_v10 }
  0x35   : > { %675 = vmatpush3.bf16.msra.mxu0 %v731_v10 }
  0x36   : > { %676 = vmatprep.subr.bf16.mxu0 %v732_v11 }
  0x39   : > { %677 = vmatpush3.bf16.msra.mxu0 %v732_v11 }
  0x3a   : > { %678 = vmatprep.subr.bf16.mxu0 %v733_v12 }
  0x3d   : > { %679 = vmatpush3.bf16.msra.mxu0 %v733_v12 }
  0x3e   : > { %680 = vmatprep.subr.bf16.mxu0 %v734_v13 }
  0x41   : > { %681 = vmatpush3.bf16.msra.mxu0 %v734_v13 }
  0x44   : > { %683 = vmatmul.mubr.bf16.vlgmr.msra.gmra.mxu0 %v736_v14 }
 0x104   : > { %v684_v16 = vpop.f32.mrf.mxu0 }
 0x105   : > { %v451_v18 = vadd.f32 %v684_v16, %v318_v15 }
 0x106   : > { %v434_v19 = vpop.f32.mrf.mxu0 }
 0x107   : > { %455 = vst [vmem:[#allocation2 + $0x18] sm:$0xff] %v451_v18  ;;  %v449_v21 = vadd.f32 %v434_v19, %v316_v17 }
 0x108   : > { %v685_v22 = vpop.f32.mrf.mxu0 }
 0x109   : > { %453 = vst [vmem:[#allocation2 + $0x10] sm:$0xff] %v449_v21  ;;  %v452_v24 = vadd.f32 %v685_v22, %v319_v20  ;;  %460 = sbr.rel (%p631_p11) target bundleno = 284 (0x11c), region = 81 }
 0x10a   : > { %v437_v25 = vpop.f32.mrf.mxu0 }
 0x10b   : > { %456 = vst [vmem:[#allocation2 + $0x8] sm:$0xff] %v452_v24  ;;  %v450_v26 = vadd.f32 %v437_v25, %v317_v23 }
 0x10d   : > { %454 = vst [vmem:[#allocation2] sm:$0xff] %v450_v26 }
 0x10e   : > { %v632_v29 = vld [vmem:[%s893_s2] ss:$0 sm:$0xff]  ;;  %v463_v32 = vld [vmem:[#allocation2 + $0x18] sm:$0xff] }
 0x10f   : > { %v474_v34 = vadd.f32 %v632_v29, %v463_v32 }
 0x110   : > { %v461_v27 = vld [vmem:[#allocation2 + $0x10] sm:$0xff] }
 0x111   : > { %v472_v30 = vadd.f32 %v632_v29, %v461_v27  ;;  %v478_v38 = vmax.f32 %v474_v34, 0.0 }
 0x112   : > { %v464_v33 = vld [vmem:[#allocation2 + $0x8] sm:$0xff] }
 0x113   : > { %v475_v35 = vadd.f32 %v632_v29, %v464_v33  ;;  %v476_v36 = vmax.f32 %v472_v30, 0.0 }
 0x114   : > { %v462_v28 = vld [vmem:[#allocation2] sm:$0xff] }
 0x115   : > { %v473_v31 = vadd.f32 %v632_v29, %v462_v28  ;;  %v479_v39 = vmax.f32 %v475_v35, 0.0 }
 0x117   : > { %v477_v37 = vmax.f32 %v473_v31, 0.0  ;;  %v653_v41 = vpack.c.bf16 %v479_v39, %v478_v38 }
 0x119   : > { %v648_v40 = vpack.c.bf16 %v477_v37, %v476_v36  ;;  %655 = vst [vmem:[%s894_s3 + $0x8] sm:$0xff] %v653_v41  }
 0x11b   : > { %649 = vst [vmem:[%s894_s3] sm:$0xff] %v648_v40  }
 0x11c PF: > { %s13_s16 = sadd.s32 1, %s775_s16   ;;  %s895_s12 = smov %s763_s13 }
 0x11d   : > { %p10_p12 = scmp.ge.s32.totalorder %s13_s16, 7   ;;  %s896_s13 = smov %s833_s20 }
 0x11e   : > { %s897_s14 = smov %s771_s15  ;;  %s898_s15 = smov %s900_s17 }
 0x11f   :  { %12 = sbr.rel (!%p10_p12) target bundleno = 3 (0x3), region = 122 }

// kernel: resnet_forward.20
= control target key start
LH: loop header
LB: loop body
LE: loop exit
PB: predicated region body
PF: predicated region fallthrough
CT: control target
= control target key end

     0   :  { %s1177_s15 = smov 0   ;;  %s1179_s16 = smov 0   ;;  %s1293_s0 = inlined_call_operand.vmem [shape: bf16[32,1152], index: 0, kind: input, shape index: {}]   ;;  %s1294_s1 = inlined_call_operand.vmem [shape: bf16[1152,128], index: 1, kind: input, shape index: {}]   ;;  %s1295_s2 = inlined_call_operand.vmem [shape: f32[1,128], index: 2, kind: input, shape index: {}]   ;;  %s1296_s3 = inlined_call_operand.vmem [shape: bf16[32,128], index: 3, kind: input, shape index: {}]   ;;  %s1297_s4 = inlined_call_operand.vmem [shape: bf16[32,128], index: 4, kind: output, shape index: {}]  }
   0x1   :  { %s1181_s17 = smov 0   ;;  %s1183_s18 = smov 0  }
   0x2   :  { %s1185_s19 = smov 0  }
   0x3 LB: > { %s26_s20 = sadd.s32 1, %s1145_s18  ;;  %p49_p1 = scmp.ne.s32.totalorder %s1137_s16, %s1133_s15  ;;  %s1149_s19 = sphi %s1185_s19, %s14_s19   ;;  %s1145_s18 = sphi %s1183_s18, %s1301_s18   ;;  %s1141_s17 = sphi %s1181_s17, %s1300_s17   ;;  %s1137_s16 = sphi %s1179_s16, %s1299_s16   ;;  %s1133_s15 = sphi %s1177_s15, %s1298_s15  }
   0x4   : > { %p27_p0 = scmp.ge.s32.totalorder %s26_s20, 3  ;;  %p50_p2 = scmp.eq.s32.totalorder %s1149_s19, 0 }
   0x5   : > { %s42_s22 = sadd.s32 1, %s1137_s16  ;;  %p900_p5 = scmp.ge.s32.totalorder %s1149_s19, 3 }
   0x6   : > { %s1303_s20 = smov (%p27_p0, %s26_s20), 0  ;;  %p51_p3 = por %p50_p2, %p49_p1 }
   0x7   : > { %s38_s21 = ssub.s32 %s1145_s18, %s1303_s20  ;;  %203 = sbr.rel (%p900_p5) target bundleno = 21 (0x15), region = 24 }
   0x8   : > { %p40_p4 = scmp.eq.s32.totalorder %s38_s21, 0 }
   0xa   : > { %s1212_s23 = scalar_select %p40_p4, %s1137_s16, %s42_s22  }
   0xc   : > { %206 = sbr.rel (!%p51_p3) target bundleno = 21 (0x15), region = 28  ;;  %s208_s24 = sand.u32 (%p51_p3), 1, %s1137_s16  }
   0xd   : > { %s953_s25 = smul.u32 (%p51_p3), 12, %s1145_s18 }
   0xe   : > { %s1036_s26 = smul.u32 (%p51_p3), 48, %s208_s24 }
   0xf   : > { %s216_s29 = scalar_lea.vmem (%p51_p3), %s1293_s0, %s953_s25 }
  0x10   : > { %v231_v0 = vld [vmem:[%s216_s29] sm:$0xff] (%p51_p3)  ;;  %v235_v2 = vld [vmem:[%s216_s29 + $0x48] sm:$0xff] (%p51_p3)  ;;  %s210_s30 = scalar_lea.vmem (%p51_p3), [#allocation3], %s1036_s26  ;;  %v906_v6 = vld [vmem:[%s216_s29 + $0x50] sm:$0xf] (%p51_p3) }
  0x11   : > { %v233_v1 = vld [vmem:[%s216_s29 + $0x24] sm:$0xff]  ;;  %232 = vst [vmem:[%s210_s30] sm:$0xff] %v231_v0  ;;  %236 = vst [vmem:[%s210_s30 + $0x18] sm:$0xff] %v235_v2  ;;  %v237_v3 = vld [vmem:[%s216_s29 + $0x6c] sm:$0xff] }
  0x12   : > { %234 = vst [vmem:[%s210_s30 + $0xc] sm:$0xff] %v233_v1  ;;  %v902_v4 = vld [vmem:[%s216_s29 + $0x8] sm:$0xf]  ;;  %v904_v5 = vld [vmem:[%s216_s29 + $0x2c] sm:$0xf]  ;;  %238 = vst [vmem:[%s210_s30 + $0x24] sm:$0xff] %v237_v3 }
  0x13   : > { %903 = vst [vmem:[%s210_s30 + $0x8] sm:$0xf] %v902_v4  ;;  %905 = vst [vmem:[%s210_s30 + $0x14] sm:$0xf] %v904_v5  ;;  %v908_v7 = vld [vmem:[%s216_s29 + $0x74] sm:$0xf] }
  0x14   : > { %907 = vst [vmem:[%s210_s30 + $0x20] sm:$0xf] %v906_v6  ;;  %909 = vst [vmem:[%s210_s30 + $0x2c] sm:$0xf] %v908_v7 }
  0x15 PF: > { %p910_p6 = scmp.ge.s32.totalorder %s1149_s19, 1  ;;  %p271_p7 = scmp.lt.s32.totalorder %s1149_s19, 4 }
  0x17   : > { %p272_p8 = pnand %p910_p6, %p271_p7 }
  0x18   : > { %s278_s5 = sand.u32 (!%p272_p8), 1, %s1133_s15   ;;  %s327_s6 = smul.u32 (!%p272_p8), 48, %s1141_s17 }
  0x19   : > { %275 = sbr.rel (%p272_p8) target bundleno = 301 (0x12d), region = 58  ;;  %p912_p10 = scmp.ne.s32.totalorder (!%p272_p8), %s1141_s17, 0 }
  0x1a   : > { %s1037_s7 = smul.u32 (!%p272_p8), 48, %s278_s5  ;;  %p328_p9 = scmp.lt.s32.totalorder (!%p272_p8), %s327_s6, 143 }
  0x1c   : > { %s1229_s12 = scalar_lea.vmem (!%p272_p8), [#allocation3], %s1037_s7 }
  0x1e   : > { %s1305_s6 = smov (!%p328_p9, %s327_s6), 143  ;;  %361 = sbr.rel (%p912_p10) target bundleno = 38 (0x26), region = 66 }
  0x1f   : > { %s911_s8 = sshll.u32 %s1305_s6, 2 }
  0x20   : > { %s1227_s11 = scalar_lea.vmem %s1294_s1, %s911_s8 }
  0x23   : > { %v1151_v8 = vmov 0.0  }
  0x24   : > { %362 = vst [vmem:[#allocation2 + $0x10] sm:$0xff] %v1151_v8  ;;  %363 = vst [vmem:[#allocation2] sm:$0xff] %v1151_v8 }
  0x25   : > { %364 = vst [vmem:[#allocation2 + $0x18] sm:$0xff] %v1151_v8  ;;  %365 = vst [vmem:[#allocation2 + $0x8] sm:$0xff] %v1151_v8 }
  0x26 PF: > { %v1079_v9 = vld [vmem:[%s1227_s11 + $0x78] sm:$0xff]   ;;  %v1082_v12 = vld [vmem:[%s1227_s11 + $0x70] sm:$0xff]   ;;  %v1085_v15 = vld [vmem:[%s1227_s11 + $0x68] sm:$0xff]   ;;  %p943_p11 = scmp.ne.s32.totalorder %s1141_s17, 2 }
  0x27   : > { %v1080_v10 = vld [vmem:[%s1227_s11 + $0x38] sm:$0xff]   ;;  %978 = vmatprep.subr.bf16.mxu0 %v1079_v9  ;;  %v1083_v13 = vld [vmem:[%s1227_s11 + $0x30] sm:$0xff]   ;;  %v1086_v16 = vld [vmem:[%s1227_s11 + $0x28] sm:$0xff]  }
  0x28   : > { %v1081_v11 = vld [vmem:[%s1227_s11 + $0xb8] sm:$0xff]   ;;  %979 = vmatpush3.bf16.msra.mxu0 %v1080_v10  ;;  %v1084_v14 = vld [vmem:[%s1227_s11 + $0xb0] sm:$0xff]   ;;  %v1087_v17 = vld [vmem:[%s1227_s11 + $0xa8] sm:$0xff]  }
  0x29   : > { %1016 = vmatprep.subr.bf16.mxu1 %v1081_v11  ;;  %980 = vmatprep.subr.bf16.mxu0 %v1082_v12  ;;  %v1088_v18 = vld [vmem:[%s1227_s11 + $0x60] sm:$0xff]   ;;  %v1091_v21 = vld [vmem:[%s1227_s11 + $0x58] sm:$0xff]   ;;  %v1094_v24 = vld [vmem:[%s1227_s11 + $0x50] sm:$0xff]  }
  0x2a   : > { %1017 = vmatpush3.bf16.msra.mxu1 %v1081_v11  ;;  %v1089_v19 = vld [vmem:[%s1227_s11 + $0x20] sm:$0xff]   ;;  %v1093_v22 = vld [vmem:[%s1227_s11 + $0x98] sm:$0xff]   ;;  %v1096_v25 = vld [vmem:[%s1227_s11 + $0x90] sm:$0xff]  }
  0x2b   : > { %1018 = vmatprep.subr.bf16.mxu1 %v1084_v14  ;;  %v1090_v20 = vld [vmem:[%s1227_s11 + $0xa0] sm:$0xff]   ;;  %v1092_v23 = vld [vmem:[%s1227_s11 + $0x18] sm:$0xff]   ;;  %v1095_v26 = vld [vmem:[%s1227_s11 + $0x10] sm:$0xff]  }
  0x2c   : > { %981 = vmatpush3.bf16.msra.mxu0 %v1083_v13  ;;  %v1097_v27 = vld [vmem:[%s1227_s11 + $0x48] sm:$0xff]   ;;  %v1100_v30 = vld [vmem:[%s1227_s11 + $0x40] sm:$0xff]   ;;  %v366_v44 = vld [vmem:[#allocation2 + $0x10] sm:$0xff] }
  0x2d   : > { %982 = vmatprep.subr.bf16.mxu0 %v1085_v15  ;;  %v1098_v28 = vld [vmem:[%s1227_s11 + $0x8] sm:$0xff]   ;;  %v1102_v31 = vld [vmem:[%s1227_s11 + $0x80] sm:$0xff]   ;;  %v368_v58 = vld [vmem:[#allocation2 + $0x18] sm:$0xff] }
  0x2e   : > { %1019 = vmatpush3.bf16.msra.mxu1 %v1084_v14  ;;  %v1099_v29 = vld [vmem:[%s1227_s11 + $0x88] sm:$0xff]   ;;  %v1105_v32 = vld [vmem:[%s1229_s12 + $0x4] ss:$12 sps:$4 sm:$0xff]  }
  0x2f   : > { %1020 = vmatprep.subr.bf16.mxu1 %v1087_v17  ;;  %v1106_v33 = vld [vmem:[%s1229_s12 + $0x8] ss:$12 sps:$4 sm:$0xff]   ;;  %634 = vmatprep.mubr.bf16.mxu0 %v1105_v32  ;;  %v1103_v35 = vld [vmem:[%s1229_s12] ss:$12 sps:$4 sm:$0xff]   ;;  %v1110_v38 = vld [vmem:[%s1229_s12 + $0x18] ss:$12 sps:$4 sm:$0xff]  }
  0x30   : > { %983 = vmatpush3.bf16.msra.mxu0 %v1086_v16  ;;  %v1101_v34 = vld [vmem:[%s1227_s11] sm:$0xff]   ;;  %1032 = vmatprep.mubr.bf16.mxu1 %v1106_v33  ;;  %v1108_v36 = vld [vmem:[%s1229_s12 + $0x1c] ss:$12 sps:$4 sm:$0xff]  }
  0x31   : > { %984 = vmatprep.subr.bf16.mxu0 %v1088_v18  ;;  %v1107_v37 = vld [vmem:[%s1229_s12 + $0x20] ss:$12 sps:$4 sm:$0xff]  }
  0x32   : > { %1021 = vmatpush3.bf16.msra.mxu1 %v1087_v17  ;;  %v367_v52 = vld [vmem:[#allocation2] sm:$0xff]  ;;  %v369_v0 = vld [vmem:[#allocation2 + $0x8] sm:$0xff] }
  0x33   : > { %1022 = vmatprep.subr.bf16.mxu1 %v1090_v20 }
  0x34   : > { %985 = vmatpush3.bf16.msra.mxu0 %v1089_v19 }
  0x35   : > { %986 = vmatprep.subr.bf16.mxu0 %v1091_v21 }
  0x36   : > { %1023 = vmatpush3.bf16.msra.mxu1 %v1090_v20 }
  0x37   : > { %1024 = vmatprep.subr.bf16.mxu1 %v1093_v22 }
  0x38   : > { %987 = vmatpush3.bf16.msra.mxu0 %v1092_v23 }
  0x39   : > { %988 = vmatprep.subr.bf16.mxu0 %v1094_v24 }
  0x3a   : > { %1025 = vmatpush3.bf16.msra.mxu1 %v1093_v22 }
  0x3b   : > { %1026 = vmatprep.subr.bf16.mxu1 %v1096_v25 }
  0x3c   : > { %989 = vmatpush3.bf16.msra.mxu0 %v1095_v26 }
  0x3d   : > { %990 = vmatprep.subr.bf16.mxu0 %v1097_v27 }
  0x3e   : > { %1027 = vmatpush3.bf16.msra.mxu1 %v1096_v25 }
  0x3f   : > { %1028 = vmatprep.subr.bf16.mxu1 %v1099_v29 }
  0x40   : > { %991 = vmatpush3.bf16.msra.mxu0 %v1098_v28 }
  0x41   : > { %992 = vmatprep.subr.bf16.mxu0 %v1100_v30 }
  0x42   : > { %1029 = vmatpush3.bf16.msra.mxu1 %v1099_v29 }
  0x43   : > { %1030 = vmatprep.subr.bf16.mxu1 %v1102_v31 }
  0x44   : > { %993 = vmatpush3.bf16.msra.mxu0 %v1101_v34 }
  0x46   : > { %1031 = vmatpush3.bf16.msra.mxu1 %v1102_v31 }
  0x47   : > { %635 = vmatmul.mubr.bf16.vlgmr.msra.gmra.mxu0 %v1103_v35 }
  0x48   : > { %642 = vmatprep.mubr.bf16.mxu0 %v1108_v36 }
  0x49   : > { %1033 = vmatmul.mubr.bf16.vlgmr.msra.gmra.mxu1 %v1107_v37 }
  0x4f   : > { %643 = vmatmul.mubr.bf16.gmra.mxu0 %v1110_v38 }
 0x107   : > { %v994_v39 = vpop.f32.mrf.mxu0 }
 0x109   : > { %v995_v40 = vpop.f32.mrf.mxu0  ;;  %v1034_v41 = vpop.f32.mrf.mxu1 }
 0x10a   : > { %v996_v42 = vadd.f32 %v995_v40, %v994_v39 }
 0x10b   : > { %v997_v43 = vpop.f32.mrf.mxu0  ;;  %v685_v45 = vpop.f32.mrf.mxu1 }
 0x10c   : > { %v686_v46 = vadd.f32 %v996_v42, %v685_v45 }
 0x10d   : > { %v998_v47 = vpop.f32.mrf.mxu0  ;;  %v1035_v48 = vpop.f32.mrf.mxu1 }
 0x10e   : > { %v700_v49 = vadd.f32 %v686_v46, %v366_v44  ;;  %v999_v50 = vadd.f32 %v998_v47, %v997_v43 }
 0x10f   : > { %v1000_v51 = vpop.f32.mrf.mxu0  ;;  %v688_v53 = vpop.f32.mrf.mxu1 }
 0x110   : > { %704 = vst [vmem:[#allocation2 + $0x10] sm:$0xff] %v700_v49  ;;  %v689_v54 = vadd.f32 %v999_v50, %v688_v53 }
 0x111   : > { %v1001_v55 = vpop.f32.mrf.mxu0 }
 0x112   : > { %v701_v56 = vadd.f32 %v689_v54, %v367_v52  ;;  %v1002_v57 = vadd.f32 %v1001_v55, %v1000_v51 }
 0x113   : > { %v1003_v59 = vpop.f32.mrf.mxu0 }
 0x114   : > { %705 = vst [vmem:[#allocation2] sm:$0xff] %v701_v56  ;;  %v694_v60 = vadd.f32 %v1034_v41, %v1002_v57 }
 0x115   : > { %v1004_v61 = vpop.f32.mrf.mxu0 }
 0x116   : > { %v702_v62 = vadd.f32 %v694_v60, %v368_v58  ;;  %v1005_v63 = vadd.f32 %v1004_v61, %v1003_v59 }
 0x118   : > { %706 = vst [vmem:[#allocation2 + $0x18] sm:$0xff] %v702_v62  ;;  %v697_v1 = vadd.f32 %v1035_v48, %v1005_v63  ;;  %711 = sbr.rel (%p943_p11) target bundleno = 301 (0x12d), region = 70 }
 0x11a   : > { %v703_v2 = vadd.f32 %v697_v1, %v369_v0 }
 0x11c   : > { %707 = vst [vmem:[#allocation2 + $0x8] sm:$0xff] %v703_v2 }
 0x11d   : > { %v712_v3 = vld [vmem:[#allocation2 + $0x10] sm:$0xff]  ;;  %v713_v4 = vld [vmem:[#allocation2] sm:$0xff]  ;;  %v976_v15 = vld [vmem:[%s1296_s3 + $0x8] sm:$0xff]  }
 0x11e   : > { %v944_v5 = vld [vmem:[%s1295_s2] ss:$0 sm:$0xff]  ;;  %v964_v16 = vunpack.c.l.bf16 %v976_v15  ;;  %v965_v17 = vunpack.c.h.bf16 %v976_v15 }
 0x11f   : > { %v723_v6 = vadd.f32 %v944_v5, %v712_v3  ;;  %v724_v7 = vadd.f32 %v944_v5, %v713_v4  ;;  %v959_v8 = vld [vmem:[%s1296_s3] sm:$0xff]   ;;  %v714_v9 = vld [vmem:[#allocation2 + $0x18] sm:$0xff] }
 0x120   : > { %v960_v11 = vunpack.c.l.bf16 %v959_v8  ;;  %v961_v12 = vunpack.c.h.bf16 %v959_v8  ;;  %v725_v13 = vadd.f32 %v944_v5, %v714_v9 }
 0x122   : > { %v735_v18 = vadd.f32 %v960_v11, %v723_v6  ;;  %v736_v19 = vadd.f32 %v961_v12, %v724_v7  ;;  %v737_v20 = vadd.f32 %v964_v16, %v725_v13 }
 0x123   : > { %v715_v10 = vld [vmem:[#allocation2 + $0x8] sm:$0xff] }
 0x124   : > { %v726_v14 = vadd.f32 %v944_v5, %v715_v10  ;;  %v739_v22 = vmax.f32 %v735_v18, 0.0  ;;  %v740_v23 = vmax.f32 %v736_v19, 0.0  ;;  %v741_v24 = vmax.f32 %v737_v20, 0.0 }
 0x126   : > { %v738_v21 = vadd.f32 %v965_v17, %v726_v14  ;;  %v969_v26 = vpack.c.bf16 %v740_v23, %v739_v22 }
 0x128   : > { %v742_v25 = vmax.f32 %v738_v21, 0.0  ;;  %970 = vst [vmem:[%s1297_s4] sm:$0xff] %v969_v26  }
 0x12a   : > { %v974_v27 = vpack.c.bf16 %v742_v25, %v741_v24 }
 0x12c   : > { %977 = vst [vmem:[%s1297_s4 + $0x8] sm:$0xff] %v974_v27  }
 0x12d PF: > { %s14_s19 = sadd.s32 1, %s1149_s19   ;;  %s1298_s15 = smov %s1137_s16 }
 0x12e   : > { %p11_p12 = scmp.ge.s32.totalorder %s14_s19, 5   ;;  %s1299_s16 = smov %s1212_s23 }
 0x12f   : > { %s1300_s17 = smov %s1145_s18  ;;  %s1301_s18 = smov %s1303_s20 }
 0x130   :  { %13 = sbr.rel (!%p11_p12) target bundleno = 3 (0x3), region = 120 }

// kernel: resnet_forward.19
= control target key start
LH: loop header
LB: loop body
LE: loop exit
PB: predicated region body
PF: predicated region fallthrough
CT: control target
= control target key end

     0   :  { %s335_s1 = inlined_call_operand.vmem [shape: bf16[128,128], index: 1, kind: input, shape index: {}]   ;;  %s336_s0 = inlined_call_operand.vmem [shape: bf16[32,128], index: 0, kind: input, shape index: {}]   ;;  %s337_s2 = inlined_call_operand.vmem [shape: f32[1,128], index: 2, kind: input, shape index: {}]   ;;  %s338_s3 = inlined_call_operand.vmem [shape: bf16[32,128], index: 3, kind: output, shape index: {}]  }
   0x1   :  { %v266_v0 = vld [vmem:[%s335_s1 + $0x38] sm:$0xff]   ;;  %v267_v1 = vld [vmem:[%s335_s1 + $0x30] sm:$0xff]   ;;  %v268_v2 = vld [vmem:[%s335_s1 + $0x28] sm:$0xff]  }
   0x2   :  { %246 = vmatprep.subr.bf16.mxu0 %v266_v0  ;;  %v269_v3 = vld [vmem:[%s335_s1 + $0x20] sm:$0xff]   ;;  %v270_v5 = vld [vmem:[%s335_s1 + $0x18] sm:$0xff]   ;;  %v271_v6 = vld [vmem:[%s335_s1 + $0x10] sm:$0xff]  }
   0x3   :  { %247 = vmatpush3.bf16.msra.mxu0 %v266_v0  ;;  %v274_v4 = vld [vmem:[%s336_s0] sm:$0xff]   ;;  %v272_v7 = vld [vmem:[%s335_s1 + $0x8] sm:$0xff]  }
   0x4   :  { %248 = vmatprep.subr.bf16.mxu0 %v267_v1  ;;  %262 = vmatprep.mubr.bf16.mxu0 %v274_v4  ;;  %v273_v8 = vld [vmem:[%s335_s1] sm:$0xff]   ;;  %v275_v9 = vld [vmem:[%s336_s0 + $0x8] sm:$0xff]  }
   0x5   :  { %v216_v11 = vld [vmem:[%s337_s2] ss:$0 sm:$0xff] }
   0x7   :  { %249 = vmatpush3.bf16.msra.mxu0 %v267_v1 }
   0x8   :  { %250 = vmatprep.subr.bf16.mxu0 %v268_v2 }
   0xb   :  { %251 = vmatpush3.bf16.msra.mxu0 %v268_v2 }
   0xc   :  { %252 = vmatprep.subr.bf16.mxu0 %v269_v3 }
   0xf   :  { %253 = vmatpush3.bf16.msra.mxu0 %v269_v3 }
  0x10   :  { %254 = vmatprep.subr.bf16.mxu0 %v270_v5 }
  0x13   :  { %255 = vmatpush3.bf16.msra.mxu0 %v270_v5 }
  0x14   :  { %256 = vmatprep.subr.bf16.mxu0 %v271_v6 }
  0x17   :  { %257 = vmatpush3.bf16.msra.mxu0 %v271_v6 }
  0x18   :  { %258 = vmatprep.subr.bf16.mxu0 %v272_v7 }
  0x1b   :  { %259 = vmatpush3.bf16.msra.mxu0 %v272_v7 }
  0x1c   :  { %260 = vmatprep.subr.bf16.mxu0 %v273_v8 }
  0x1f   :  { %261 = vmatpush3.bf16.msra.mxu0 %v273_v8 }
  0x22   :  { %263 = vmatmul.mubr.bf16.vlgmr.msra.gmra.mxu0 %v275_v9 }
  0xe2   :  { %v264_v10 = vpop.f32.mrf.mxu0 }
  0xe3   :  { %v180_v14 = vadd.f32 %v264_v10, %v216_v11 }
  0xe4   :  { %v141_v12 = vpop.f32.mrf.mxu0 }
  0xe5   :  { %v178_v17 = vadd.f32 %v216_v11, %v141_v12 }
  0xe6   :  { %v265_v13 = vpop.f32.mrf.mxu0 }
  0xe7   :  { %v181_v15 = vadd.f32 %v265_v13, %v216_v11 }
  0xe8   :  { %v144_v16 = vpop.f32.mrf.mxu0 }
  0xe9   :  { %v233_v18 = vpack.c.bf16 %v181_v15, %v180_v14  ;;  %v179_v19 = vadd.f32 %v216_v11, %v144_v16 }
  0xeb   :  { %235 = vst [vmem:[%s338_s3 + $0x8] sm:$0xff] %v233_v18   ;;  %v228_v20 = vpack.c.bf16 %v179_v19, %v178_v17 }
  0xed   :  { %229 = vst [vmem:[%s338_s3] sm:$0xff] %v228_v20  }

// kernel: resnet_forward.21
= control target key start
LH: loop header
LB: loop body
LE: loop exit
PB: predicated region body
PF: predicated region fallthrough
CT: control target
= control target key end

     0   :  { %s1148_s12 = smov 0   ;;  %s1150_s13 = smov 0   ;;  %s1279_s0 = inlined_call_operand.vmem [shape: bf16[16,1152], index: 0, kind: input, shape index: {}]   ;;  %s1280_s1 = inlined_call_operand.vmem [shape: bf16[1152,256], index: 1, kind: input, shape index: {}]   ;;  %s1281_s2 = inlined_call_operand.vmem [shape: f32[1,256], index: 2, kind: input, shape index: {}]   ;;  %s1282_s3 = inlined_call_operand.vmem [shape: bf16[16,256], index: 3, kind: output, shape index: {}]  }
   0x1   :  { %s1152_s14 = smov 0   ;;  %s1154_s15 = smov 0  }
   0x2   :  { %s1156_s16 = smov 0  }
   0x3 LB: > { %s25_s17 = sadd.s32 1, %s1120_s15  ;;  %p48_p1 = scmp.ne.s32.totalorder %s1112_s13, %s1108_s12  ;;  %s1124_s16 = sphi %s1156_s16, %s13_s16   ;;  %s1120_s15 = sphi %s1154_s15, %s1286_s15   ;;  %s1116_s14 = sphi %s1152_s14, %s1285_s14   ;;  %s1112_s13 = sphi %s1150_s13, %s1284_s13   ;;  %s1108_s12 = sphi %s1148_s12, %s1283_s12  }
   0x4   : > { %p26_p0 = scmp.ge.s32.totalorder %s25_s17, 3  ;;  %p49_p2 = scmp.eq.s32.totalorder %s1124_s16, 0 }
   0x5   : > { %s41_s19 = sadd.s32 1, %s1112_s13  ;;  %p894_p5 = scmp.ge.s32.totalorder %s1124_s16, 3 }
   0x6   : > { %s1288_s17 = smov (%p26_p0, %s25_s17), 0  ;;  %p50_p3 = por %p49_p2, %p48_p1 }
   0x7   : > { %s37_s18 = ssub.s32 %s1120_s15, %s1288_s17  ;;  %164 = sbr.rel (%p894_p5) target bundleno = 19 (0x13), region = 20 }
   0x8   : > { %p39_p4 = scmp.eq.s32.totalorder %s37_s18, 0 }
   0xa   : > { %s1183_s20 = scalar_select %p39_p4, %s1112_s13, %s41_s19  }
   0xc   : > { %167 = sbr.rel (!%p50_p3) target bundleno = 19 (0x13), region = 24  ;;  %s169_s21 = sand.u32 (%p50_p3), 1, %s1112_s13  }
   0xd   : > { %s962_s22 = smul.u32 (%p50_p3), 12, %s1120_s15 }
   0xe   : > { %s966_s23 = smul.u32 (%p50_p3), 24, %s169_s21 }
   0xf   : > { %s177_s26 = scalar_lea.vmem (%p50_p3), %s1279_s0, %s962_s22 }
  0x10   : > { %v192_v0 = vld [vmem:[%s177_s26] sm:$0xff] (%p50_p3)  ;;  %v896_v2 = vld [vmem:[%s177_s26 + $0x8] sm:$0xf] (%p50_p3)  ;;  %s171_s27 = scalar_lea.vmem (%p50_p3), [#allocation3], %s966_s23  ;;  %v898_v3 = vld [vmem:[%s177_s26 + $0x2c] sm:$0xf] (%p50_p3) }
  0x11   : > { %v194_v1 = vld [vmem:[%s177_s26 + $0x24] sm:$0xff]  ;;  %193 = vst [vmem:[%s171_s27] sm:$0xff] %v192_v0  ;;  %897 = vst [vmem:[%s171_s27 + $0x8] sm:$0xf] %v896_v2 }
  0x12   : > { %195 = vst [vmem:[%s171_s27 + $0xc] sm:$0xff] %v194_v1  ;;  %899 = vst [vmem:[%s171_s27 + $0x14] sm:$0xf] %v898_v3 }
  0x13 PF: > { %p900_p6 = scmp.ge.s32.totalorder %s1124_s16, 1  ;;  %p227_p7 = scmp.lt.s32.totalorder %s1124_s16, 4 }
  0x15   : > { %p228_p8 = pnand %p900_p6, %p227_p7 }
  0x16   : > { %s234_s28 = sand.u32 (!%p228_p8), 1, %s1108_s12   ;;  %s278_s29 = smul.u32 (!%p228_p8), 48, %s1116_s14 }
  0x17   : > { %231 = sbr.rel (%p228_p8) target bundleno = 320 (0x140), region = 54  ;;  %p903_p10 = scmp.ne.s32.totalorder (!%p228_p8), %s1116_s14, 0 }
  0x18   : > { %s967_s30 = smul.u32 (!%p228_p8), 24, %s234_s28  ;;  %p280_p9 = scmp.lt.s32.totalorder (!%p228_p8), %s278_s29, 143 }
  0x1a   : > { %s1200_s8 = scalar_lea.vmem (!%p228_p8), [#allocation3], %s967_s30 }
  0x1c   : > { %s1290_s29 = smov (!%p280_p9, %s278_s29), 143  ;;  %311 = sbr.rel (%p903_p10) target bundleno = 36 (0x24), region = 62 }
  0x1d   : > { %s963_s4 = sshll.u32 %s1290_s29, 3 }
  0x1e   : > { %s1198_s7 = scalar_lea.vmem %s1280_s1, %s963_s4 }
  0x21   : > { %v1126_v4 = vmov 0.0  }
  0x22   : > { %312 = vst [vmem:[#allocation2 + $0x10] sm:$0xff] %v1126_v4  ;;  %313 = vst [vmem:[#allocation2] sm:$0xff] %v1126_v4 }
  0x23   : > { %314 = vst [vmem:[#allocation2 + $0x18] sm:$0xff] %v1126_v4  ;;  %315 = vst [vmem:[#allocation2 + $0x8] sm:$0xff] %v1126_v4 }
  0x24 PF: > { %v1010_v5 = vld [vmem:[%s1198_s7 + $0x74] ss:$8 sps:$4 sm:$0xff]   ;;  %v1012_v6 = vld [vmem:[%s1198_s7 + $0x70] ss:$8 sps:$4 sm:$0xff]   ;;  %v1127_v7 = vmov 0   ;;  %p955_p11 = scmp.ne.s32.totalorder %s1116_s14, 2 }
  0x25   : > { %703 = vmatprep.mubr.bf16.mxu1 %v1127_v7  ;;  %628 = vmatprep.subr.bf16.mxu0 %v1010_v5  ;;  %v1013_v8 = vld [vmem:[%s1198_s7 + $0x64] ss:$8 sps:$4 sm:$0xff]   ;;  %v1015_v9 = vld [vmem:[%s1198_s7 + $0x60] ss:$8 sps:$4 sm:$0xff]   ;;  %v1016_v10 = vld [vmem:[%s1198_s7 + $0x54] ss:$8 sps:$4 sm:$0xff]  }
  0x26   : > { %629 = vmatpush1.bf16.msra.mxu0 %v1012_v6  ;;  %v1018_v11 = vld [vmem:[%s1198_s7 + $0x50] ss:$8 sps:$4 sm:$0xff]   ;;  %v1019_v12 = vld [vmem:[%s1198_s7 + $0x44] ss:$8 sps:$4 sm:$0xff]   ;;  %v1031_v13 = vld [vmem:[%s1198_s7 + $0x174] ss:$8 sps:$4 sm:$0xff]  }
  0x27   : > { %630 = vmatprep.subr.bf16.mxu0 %v1013_v8  ;;  %v1033_v14 = vld [vmem:[%s1198_s7 + $0x170] ss:$8 sps:$4 sm:$0xff]   ;;  %v1021_v15 = vld [vmem:[%s1198_s7 + $0x40] ss:$8 sps:$4 sm:$0xff]   ;;  %v1022_v16 = vld [vmem:[%s1198_s7 + $0x34] ss:$8 sps:$4 sm:$0xff]   ;;  %671 = vmatprep.subr.bf16.mxu1 %v1031_v13 }
  0x28   : > { %v1037_v17 = vld [vmem:[%s1198_s7 + $0x164] ss:$8 sps:$4 sm:$0xff]   ;;  %672 = vmatpush1.bf16.msra.mxu1 %v1033_v14  ;;  %v1039_v18 = vld [vmem:[%s1198_s7 + $0x160] ss:$8 sps:$4 sm:$0xff]   ;;  %v1024_v19 = vld [vmem:[%s1198_s7 + $0x30] ss:$8 sps:$4 sm:$0xff]  }
  0x29   : > { %673 = vmatprep.subr.bf16.mxu1 %v1037_v17  ;;  %v1043_v20 = vld [vmem:[%s1198_s7 + $0x154] ss:$8 sps:$4 sm:$0xff]   ;;  %v1025_v21 = vld [vmem:[%s1198_s7 + $0x24] ss:$8 sps:$4 sm:$0xff]   ;;  %v1045_v22 = vld [vmem:[%s1198_s7 + $0x150] ss:$8 sps:$4 sm:$0xff]  }
  0x2a   : > { %631 = vmatpush1.bf16.msra.mxu0 %v1015_v9  ;;  %v1049_v23 = vld [vmem:[%s1198_s7 + $0x144] ss:$8 sps:$4 sm:$0xff]   ;;  %v1027_v24 = vld [vmem:[%s1198_s7 + $0x20] ss:$8 sps:$4 sm:$0xff]   ;;  %v1028_v25 = vld [vmem:[%s1198_s7 + $0x14] ss:$8 sps:$4 sm:$0xff]  }
  0x2b   : > { %632 = vmatprep.subr.bf16.mxu0 %v1016_v10  ;;  %v1051_v26 = vld [vmem:[%s1198_s7 + $0x140] ss:$8 sps:$4 sm:$0xff]   ;;  %v1055_v27 = vld [vmem:[%s1198_s7 + $0x134] ss:$8 sps:$4 sm:$0xff]   ;;  %v1030_v28 = vld [vmem:[%s1198_s7 + $0x10] ss:$8 sps:$4 sm:$0xff]  }
  0x2c   : > { %674 = vmatpush1.bf16.msra.mxu1 %v1039_v18  ;;  %v1034_v29 = vld [vmem:[%s1198_s7 + $0x4] ss:$8 sps:$4 sm:$0xff]   ;;  %v1057_v30 = vld [vmem:[%s1198_s7 + $0x130] ss:$8 sps:$4 sm:$0xff]   ;;  %v1036_v32 = vld [vmem:[%s1198_s7] ss:$8 sps:$4 sm:$0xff]  }
  0x2d   : > { %675 = vmatprep.subr.bf16.mxu1 %v1043_v20  ;;  %v1061_v31 = vld [vmem:[%s1198_s7 + $0x124] ss:$8 sps:$4 sm:$0xff]   ;;  %v1040_v33 = vld [vmem:[%s1198_s7 + $0xf4] ss:$8 sps:$4 sm:$0xff]   ;;  %v1063_v34 = vld [vmem:[%s1198_s7 + $0x120] ss:$8 sps:$4 sm:$0xff]  }
  0x2e   : > { %633 = vmatpush1.bf16.msra.mxu0 %v1018_v11  ;;  %v1067_v35 = vld [vmem:[%s1198_s7 + $0x114] ss:$8 sps:$4 sm:$0xff]   ;;  %v1042_v36 = vld [vmem:[%s1198_s7 + $0xf0] ss:$8 sps:$4 sm:$0xff]   ;;  %v1046_v37 = vld [vmem:[%s1198_s7 + $0xe4] ss:$8 sps:$4 sm:$0xff]  }
  0x2f   : > { %634 = vmatprep.subr.bf16.mxu0 %v1019_v12  ;;  %v1069_v38 = vld [vmem:[%s1198_s7 + $0x110] ss:$8 sps:$4 sm:$0xff]   ;;  %v1073_v39 = vld [vmem:[%s1198_s7 + $0x104] ss:$8 sps:$4 sm:$0xff]   ;;  %v1048_v41 = vld [vmem:[%s1198_s7 + $0xe0] ss:$8 sps:$4 sm:$0xff]  }
  0x30   : > { %676 = vmatpush1.bf16.msra.mxu1 %v1045_v22  ;;  %v1085_v40 = vld [vmem:[%s1200_s8 + $0x4] ss:$12 sps:$4 sm:$0xff]   ;;  %v1079_v46 = vld [vmem:[%s1200_s8 + $0x8] ss:$12 sps:$4 sm:$0xff]   ;;  %v1083_v56 = vld [vmem:[%s1200_s8] ss:$12 sps:$4 sm:$0xff]  }
  0x31   : > { %677 = vmatprep.subr.bf16.mxu1 %v1049_v23  ;;  %v1052_v42 = vld [vmem:[%s1198_s7 + $0xd4] ss:$8 sps:$4 sm:$0xff]   ;;  %660 = vmatprep.mubr.bf16.mxu0 %v1085_v40  ;;  %v1075_v43 = vld [vmem:[%s1198_s7 + $0x100] ss:$8 sps:$4 sm:$0xff]   ;;  %v1054_v44 = vld [vmem:[%s1198_s7 + $0xd0] ss:$8 sps:$4 sm:$0xff]  }
  0x32   : > { %635 = vmatpush1.bf16.msra.mxu0 %v1021_v15  ;;  %v1058_v45 = vld [vmem:[%s1198_s7 + $0xc4] ss:$8 sps:$4 sm:$0xff]   ;;  %v1060_v47 = vld [vmem:[%s1198_s7 + $0xc0] ss:$8 sps:$4 sm:$0xff]   ;;  %v1064_v48 = vld [vmem:[%s1198_s7 + $0xb4] ss:$8 sps:$4 sm:$0xff]  }
  0x33   : > { %636 = vmatprep.subr.bf16.mxu0 %v1022_v16  ;;  %v1066_v49 = vld [vmem:[%s1198_s7 + $0xb0] ss:$8 sps:$4 sm:$0xff]   ;;  %v1070_v50 = vld [vmem:[%s1198_s7 + $0xa4] ss:$8 sps:$4 sm:$0xff]   ;;  %v1072_v51 = vld [vmem:[%s1198_s7 + $0xa0] ss:$8 sps:$4 sm:$0xff]  }
  0x34   : > { %678 = vmatpush1.bf16.msra.mxu1 %v1051_v26  ;;  %v1076_v52 = vld [vmem:[%s1198_s7 + $0x94] ss:$8 sps:$4 sm:$0xff]   ;;  %v1078_v53 = vld [vmem:[%s1198_s7 + $0x90] ss:$8 sps:$4 sm:$0xff]   ;;  %v1080_v54 = vld [vmem:[%s1198_s7 + $0x84] ss:$8 sps:$4 sm:$0xff]  }
  0x35   : > { %679 = vmatprep.subr.bf16.mxu1 %v1055_v27  ;;  %v1082_v55 = vld [vmem:[%s1198_s7 + $0x80] ss:$8 sps:$4 sm:$0xff]   ;;  %v316_v59 = vld [vmem:[#allocation2 + $0x10] sm:$0xff]  ;;  %v318_v3 = vld [vmem:[#allocation2 + $0x18] sm:$0xff] }
  0x36   : > { %637 = vmatpush1.bf16.msra.mxu0 %v1024_v19  ;;  %v317_v63 = vld [vmem:[#allocation2] sm:$0xff]  ;;  %v319_v8 = vld [vmem:[#allocation2 + $0x8] sm:$0xff] }
  0x37   : > { %638 = vmatprep.subr.bf16.mxu0 %v1025_v21 }
  0x38   : > { %680 = vmatpush1.bf16.msra.mxu1 %v1057_v30 }
  0x39   : > { %681 = vmatprep.subr.bf16.mxu1 %v1061_v31 }
  0x3a   : > { %639 = vmatpush1.bf16.msra.mxu0 %v1027_v24 }
  0x3b   : > { %640 = vmatprep.subr.bf16.mxu0 %v1028_v25 }
  0x3c   : > { %682 = vmatpush1.bf16.msra.mxu1 %v1063_v34 }
  0x3d   : > { %683 = vmatprep.subr.bf16.mxu1 %v1067_v35 }
  0x3e   : > { %641 = vmatpush1.bf16.msra.mxu0 %v1030_v28 }
  0x3f   : > { %642 = vmatprep.subr.bf16.mxu0 %v1034_v29 }
  0x40   : > { %684 = vmatpush1.bf16.msra.mxu1 %v1069_v38 }
  0x41   : > { %685 = vmatprep.subr.bf16.mxu1 %v1073_v39 }
  0x42   : > { %643 = vmatpush1.bf16.msra.mxu0 %v1036_v32 }
  0x43   : > { %644 = vmatprep.subr.bf16.mxu0 %v1040_v33 }
  0x44   : > { %686 = vmatpush1.bf16.msra.mxu1 %v1075_v43 }
  0x46   : > { %645 = vmatpush2.bf16.msra.mxu0 %v1042_v36 }
  0x47   : > { %646 = vmatprep.subr.bf16.mxu0 %v1046_v37  ;;  %704 = vmatmul.mubr.bf16.vlgmr.msra.gmra.mxu1 %v1079_v46 }
  0x4a   : > { %647 = vmatpush2.bf16.msra.mxu0 %v1048_v41 }
  0x4b   : > { %648 = vmatprep.subr.bf16.mxu0 %v1052_v42 }
  0x4e   : > { %649 = vmatpush2.bf16.msra.mxu0 %v1054_v44 }
  0x4f   : > { %650 = vmatprep.subr.bf16.mxu0 %v1058_v45 }
  0x52   : > { %651 = vmatpush2.bf16.msra.mxu0 %v1060_v47 }
  0x53   : > { %652 = vmatprep.subr.bf16.mxu0 %v1064_v48 }
  0x56   : > { %653 = vmatpush2.bf16.msra.mxu0 %v1066_v49 }
  0x57   : > { %654 = vmatprep.subr.bf16.mxu0 %v1070_v50 }
  0x5a   : > { %655 = vmatpush2.bf16.msra.mxu0 %v1072_v51 }
  0x5b   : > { %656 = vmatprep.subr.bf16.mxu0 %v1076_v52 }
  0x5e   : > { %657 = vmatpush2.bf16.msra.mxu0 %v1078_v53 }
  0x5f   : > { %658 = vmatprep.subr.bf16.mxu0 %v1080_v54 }
  0x62   : > { %659 = vmatpush2.bf16.msra.mxu0 %v1082_v55 }
  0x65   : > { %661 = vmatmul.mubr.bf16.vlgmr.msra.gmra.mxu0 %v1083_v56 }
 0x107   : > { %v705_v57 = vpop.f32.mrf.mxu1 }
 0x109   : > { %v707_v58 = vpop.f32.mrf.mxu1 }
 0x10b   : > { %v709_v62 = vpop.f32.mrf.mxu1 }
 0x10d   : > { %v711_v7 = vpop.f32.mrf.mxu1 }
 0x125   : > { %v662_v60 = vpop.f32.mrf.mxu0 }
 0x126   : > { %v706_v61 = vadd.f32 %v705_v57, %v662_v60 }
 0x127   : > { %v664_v0 = vpop.f32.mrf.mxu0 }
 0x128   : > { %v714_v1 = vadd.f32 %v706_v61, %v316_v59  ;;  %v708_v2 = vadd.f32 %v707_v58, %v664_v0 }
 0x129   : > { %v666_v4 = vpop.f32.mrf.mxu0 }
 0x12a   : > { %718 = vst [vmem:[#allocation2 + $0x10] sm:$0xff] %v714_v1  ;;  %v715_v5 = vadd.f32 %v708_v2, %v317_v63  ;;  %v710_v6 = vadd.f32 %v709_v62, %v666_v4 }
 0x12b   : > { %v668_v9 = vpop.f32.mrf.mxu0 }
 0x12c   : > { %719 = vst [vmem:[#allocation2] sm:$0xff] %v715_v5  ;;  %v716_v10 = vadd.f32 %v710_v6, %v318_v3  ;;  %v712_v11 = vadd.f32 %v711_v7, %v668_v9  ;;  %725 = sbr.rel (%p955_p11) target bundleno = 320 (0x140), region = 66 }
 0x12e   : > { %720 = vst [vmem:[#allocation2 + $0x18] sm:$0xff] %v716_v10  ;;  %v717_v12 = vadd.f32 %v712_v11, %v319_v8 }
 0x130   : > { %721 = vst [vmem:[#allocation2 + $0x8] sm:$0xff] %v717_v12 }
 0x131   : > { %v732_v13 = vlaneseq  ;;  %v730_v15 = vld [vmem:[%s1281_s2] sm:$0x3]  ;;  %v726_v16 = vld [vmem:[#allocation2 + $0x10] sm:$0xff] }
 0x133   : > { %v733_v14 = vshrl.u32 %v732_v13, 7  ;;  %v727_v19 = vld [vmem:[#allocation2] sm:$0xff] }
 0x135   : > { %v734_v17 = vsub.s32 0, %v733_v14  ;;  %v738_v18 = vsub.s32 1, %v733_v14  ;;  %v728_v20 = vld [vmem:[#allocation2 + $0x18] sm:$0xff] }
 0x137   : > { %v729_v21 = vld [vmem:[#allocation2 + $0x8] sm:$0xff]  ;;  %v735_v22 = vrot.slane %v730_v15, %v734_v17  ;;  %v739_v23 = vrot.slane %v730_v15, %v738_v18 }
 0x139   : > { %v742_v24 = vadd.f32 %v735_v22, %v726_v16  ;;  %v743_v25 = vadd.f32 %v739_v23, %v727_v19  ;;  %v744_v26 = vadd.f32 %v735_v22, %v728_v20  ;;  %v745_v27 = vadd.f32 %v739_v23, %v729_v21 }
 0x13b   : > { %v746_v28 = vmax.f32 %v742_v24, 0.0  ;;  %v747_v29 = vmax.f32 %v743_v25, 0.0  ;;  %v748_v30 = vmax.f32 %v744_v26, 0.0  ;;  %v749_v31 = vmax.f32 %v745_v27, 0.0 }
 0x13d   : > { %v964_v32 = vpack.c.bf16 %v747_v29, %v746_v28  ;;  %v965_v33 = vpack.c.bf16 %v749_v31, %v748_v30 }
 0x13f   : > { %762 = vst [vmem:[%s1282_s3] sm:$0xff] %v964_v32  ;;  %763 = vst [vmem:[%s1282_s3 + $0x8] sm:$0xff] %v965_v33 }
 0x140 PF: > { %s13_s16 = sadd.s32 1, %s1124_s16   ;;  %s1283_s12 = smov %s1112_s13 }
 0x141   : > { %p10_p12 = scmp.ge.s32.totalorder %s13_s16, 5   ;;  %s1284_s13 = smov %s1183_s20 }
 0x142   : > { %s1285_s14 = smov %s1120_s15  ;;  %s1286_s15 = smov %s1288_s17 }
 0x143   :  { %12 = sbr.rel (!%p10_p12) target bundleno = 3 (0x3), region = 113 }

// kernel: resnet_forward.23
= control target key start
LH: loop header
LB: loop body
LE: loop exit
PB: predicated region body
PF: predicated region fallthrough
CT: control target
= control target key end

     0   :  { %s1253_s15 = smov 0   ;;  %s1255_s16 = smov 0   ;;  %s1390_s0 = inlined_call_operand.vmem [shape: bf16[16,2304], index: 0, kind: input, shape index: {}]   ;;  %s1391_s1 = inlined_call_operand.vmem [shape: bf16[2304,256], index: 1, kind: input, shape index: {}]   ;;  %s1392_s2 = inlined_call_operand.vmem [shape: f32[1,256], index: 2, kind: input, shape index: {}]   ;;  %s1393_s3 = inlined_call_operand.vmem [shape: bf16[16,256], index: 3, kind: input, shape index: {}]   ;;  %s1394_s4 = inlined_call_operand.vmem [shape: bf16[16,256], index: 4, kind: output, shape index: {}]  }
   0x1   :  { %s1257_s17 = smov 0   ;;  %s1259_s18 = smov 0  }
   0x2   :  { %s1261_s19 = smov 0  }
   0x3 LB: > { %s26_s20 = sadd.s32 1, %s1220_s18  ;;  %p49_p1 = scmp.ne.s32.totalorder %s1212_s16, %s1208_s15  ;;  %s1224_s19 = sphi %s1261_s19, %s14_s19   ;;  %s1220_s18 = sphi %s1259_s18, %s1398_s18   ;;  %s1216_s17 = sphi %s1257_s17, %s1397_s17   ;;  %s1212_s16 = sphi %s1255_s16, %s1396_s16   ;;  %s1208_s15 = sphi %s1253_s15, %s1395_s15  }
   0x4   : > { %p27_p0 = scmp.ge.s32.totalorder %s26_s20, 6  ;;  %p50_p2 = scmp.eq.s32.totalorder %s1224_s19, 0 }
   0x5   : > { %s42_s22 = sadd.s32 1, %s1212_s16  ;;  %p994_p5 = scmp.ge.s32.totalorder %s1224_s19, 6 }
   0x6   : > { %s1400_s20 = smov (%p27_p0, %s26_s20), 0  ;;  %p51_p3 = por %p50_p2, %p49_p1 }
   0x7   : > { %s38_s21 = ssub.s32 %s1220_s18, %s1400_s20  ;;  %208 = sbr.rel (%p994_p5) target bundleno = 19 (0x13), region = 24 }
   0x8   : > { %p40_p4 = scmp.eq.s32.totalorder %s38_s21, 0 }
   0xa   : > { %s1288_s23 = scalar_select %p40_p4, %s1212_s16, %s42_s22  }
   0xc   : > { %211 = sbr.rel (!%p51_p3) target bundleno = 19 (0x13), region = 28  ;;  %s213_s24 = sand.u32 (%p51_p3), 1, %s1212_s16  }
   0xd   : > { %s1062_s25 = smul.u32 (%p51_p3), 12, %s1220_s18 }
   0xe   : > { %s1066_s26 = smul.u32 (%p51_p3), 24, %s213_s24 }
   0xf   : > { %s221_s29 = scalar_lea.vmem (%p51_p3), %s1390_s0, %s1062_s25 }
  0x10   : > { %v236_v0 = vld [vmem:[%s221_s29] sm:$0xff] (%p51_p3)  ;;  %v238_v1 = vld [vmem:[%s221_s29 + $0x48] sm:$0xff] (%p51_p3)  ;;  %s215_s30 = scalar_lea.vmem (%p51_p3), [#allocation3], %s1066_s26  ;;  %v998_v3 = vld [vmem:[%s221_s29 + $0x50] sm:$0xf] (%p51_p3) }
  0x11   : > { %v996_v2 = vld [vmem:[%s221_s29 + $0x8] sm:$0xf]  ;;  %237 = vst [vmem:[%s215_s30] sm:$0xff] %v236_v0  ;;  %239 = vst [vmem:[%s215_s30 + $0xc] sm:$0xff] %v238_v1 }
  0x12   : > { %997 = vst [vmem:[%s215_s30 + $0x8] sm:$0xf] %v996_v2  ;;  %999 = vst [vmem:[%s215_s30 + $0x14] sm:$0xf] %v998_v3 }
  0x13 PF: > { %p1000_p6 = scmp.ge.s32.totalorder %s1224_s19, 1  ;;  %p271_p7 = scmp.lt.s32.totalorder %s1224_s19, 7 }
  0x15   : > { %p272_p8 = pnand %p1000_p6, %p271_p7 }
  0x16   : > { %s278_s5 = sand.u32 (!%p272_p8), 1, %s1208_s15   ;;  %s334_s6 = smul.u32 (!%p272_p8), 48, %s1216_s17 }
  0x17   : > { %275 = sbr.rel (%p272_p8) target bundleno = 322 (0x142), region = 58  ;;  %p1003_p10 = scmp.ne.s32.totalorder (!%p272_p8), %s1216_s17, 0 }
  0x18   : > { %s1067_s7 = smul.u32 (!%p272_p8), 24, %s278_s5  ;;  %p336_p9 = scmp.lt.s32.totalorder (!%p272_p8), %s334_s6, 287 }
  0x1a   : > { %s1305_s12 = scalar_lea.vmem (!%p272_p8), [#allocation3], %s1067_s7 }
  0x1c   : > { %s1402_s6 = smov (!%p336_p9, %s334_s6), 287  ;;  %379 = sbr.rel (%p1003_p10) target bundleno = 36 (0x24), region = 66 }
  0x1d   : > { %s1063_s8 = sshll.u32 %s1402_s6, 3 }
  0x1e   : > { %s1303_s11 = scalar_lea.vmem %s1391_s1, %s1063_s8 }
  0x21   : > { %v1226_v4 = vmov 0.0  }
  0x22   : > { %380 = vst [vmem:[#allocation2 + $0x10] sm:$0xff] %v1226_v4  ;;  %381 = vst [vmem:[#allocation2] sm:$0xff] %v1226_v4 }
  0x23   : > { %382 = vst [vmem:[#allocation2 + $0x18] sm:$0xff] %v1226_v4  ;;  %383 = vst [vmem:[#allocation2 + $0x8] sm:$0xff] %v1226_v4 }
  0x24 PF: > { %v1110_v5 = vld [vmem:[%s1303_s11 + $0x74] ss:$8 sps:$4 sm:$0xff]   ;;  %v1112_v6 = vld [vmem:[%s1303_s11 + $0x70] ss:$8 sps:$4 sm:$0xff]   ;;  %v1227_v7 = vmov 0   ;;  %p1055_p11 = scmp.ne.s32.totalorder %s1216_s17, 5 }
  0x25   : > { %771 = vmatprep.mubr.bf16.mxu1 %v1227_v7  ;;  %696 = vmatprep.subr.bf16.mxu0 %v1110_v5  ;;  %v1113_v8 = vld [vmem:[%s1303_s11 + $0x64] ss:$8 sps:$4 sm:$0xff]   ;;  %v1115_v9 = vld [vmem:[%s1303_s11 + $0x60] ss:$8 sps:$4 sm:$0xff]   ;;  %v1116_v10 = vld [vmem:[%s1303_s11 + $0x54] ss:$8 sps:$4 sm:$0xff]  }
  0x26   : > { %697 = vmatpush1.bf16.msra.mxu0 %v1112_v6  ;;  %v1118_v11 = vld [vmem:[%s1303_s11 + $0x50] ss:$8 sps:$4 sm:$0xff]   ;;  %v1119_v12 = vld [vmem:[%s1303_s11 + $0x44] ss:$8 sps:$4 sm:$0xff]   ;;  %v1131_v13 = vld [vmem:[%s1303_s11 + $0x174] ss:$8 sps:$4 sm:$0xff]  }
  0x27   : > { %698 = vmatprep.subr.bf16.mxu0 %v1113_v8  ;;  %v1133_v14 = vld [vmem:[%s1303_s11 + $0x170] ss:$8 sps:$4 sm:$0xff]   ;;  %v1121_v15 = vld [vmem:[%s1303_s11 + $0x40] ss:$8 sps:$4 sm:$0xff]   ;;  %v1122_v16 = vld [vmem:[%s1303_s11 + $0x34] ss:$8 sps:$4 sm:$0xff]   ;;  %739 = vmatprep.subr.bf16.mxu1 %v1131_v13 }
  0x28   : > { %v1137_v17 = vld [vmem:[%s1303_s11 + $0x164] ss:$8 sps:$4 sm:$0xff]   ;;  %740 = vmatpush1.bf16.msra.mxu1 %v1133_v14  ;;  %v1139_v18 = vld [vmem:[%s1303_s11 + $0x160] ss:$8 sps:$4 sm:$0xff]   ;;  %v1124_v19 = vld [vmem:[%s1303_s11 + $0x30] ss:$8 sps:$4 sm:$0xff]  }
  0x29   : > { %741 = vmatprep.subr.bf16.mxu1 %v1137_v17  ;;  %v1143_v20 = vld [vmem:[%s1303_s11 + $0x154] ss:$8 sps:$4 sm:$0xff]   ;;  %v1125_v21 = vld [vmem:[%s1303_s11 + $0x24] ss:$8 sps:$4 sm:$0xff]   ;;  %v1145_v22 = vld [vmem:[%s1303_s11 + $0x150] ss:$8 sps:$4 sm:$0xff]  }
  0x2a   : > { %699 = vmatpush1.bf16.msra.mxu0 %v1115_v9  ;;  %v1149_v23 = vld [vmem:[%s1303_s11 + $0x144] ss:$8 sps:$4 sm:$0xff]   ;;  %v1127_v24 = vld [vmem:[%s1303_s11 + $0x20] ss:$8 sps:$4 sm:$0xff]   ;;  %v1128_v25 = vld [vmem:[%s1303_s11 + $0x14] ss:$8 sps:$4 sm:$0xff]  }
  0x2b   : > { %700 = vmatprep.subr.bf16.mxu0 %v1116_v10  ;;  %v1151_v26 = vld [vmem:[%s1303_s11 + $0x140] ss:$8 sps:$4 sm:$0xff]   ;;  %v1155_v27 = vld [vmem:[%s1303_s11 + $0x134] ss:$8 sps:$4 sm:$0xff]   ;;  %v1130_v28 = vld [vmem:[%s1303_s11 + $0x10] ss:$8 sps:$4 sm:$0xff]  }
  0x2c   : > { %742 = vmatpush1.bf16.msra.mxu1 %v1139_v18  ;;  %v1134_v29 = vld [vmem:[%s1303_s11 + $0x4] ss:$8 sps:$4 sm:$0xff]   ;;  %v1157_v30 = vld [vmem:[%s1303_s11 + $0x130] ss:$8 sps:$4 sm:$0xff]   ;;  %v1136_v32 = vld [vmem:[%s1303_s11] ss:$8 sps:$4 sm:$0xff]  }
  0x2d   : > { %743 = vmatprep.subr.bf16.mxu1 %v1143_v20  ;;  %v1161_v31 = vld [vmem:[%s1303_s11 + $0x124] ss:$8 sps:$4 sm:$0xff]   ;;  %v1140_v33 = vld [vmem:[%s1303_s11 + $0xf4] ss:$8 sps:$4 sm:$0xff]   ;;  %v1163_v34 = vld [vmem:[%s1303_s11 + $0x120] ss:$8 sps:$4 sm:$0xff]  }
  0x2e   : > { %701 = vmatpush1.bf16.msra.mxu0 %v1118_v11  ;;  %v1167_v35 = vld [vmem:[%s1303_s11 + $0x114] ss:$8 sps:$4 sm:$0xff]   ;;  %v1142_v36 = vld [vmem:[%s1303_s11 + $0xf0] ss:$8 sps:$4 sm:$0xff]   ;;  %v1146_v37 = vld [vmem:[%s1303_s11 + $0xe4] ss:$8 sps:$4 sm:$0xff]  }
  0x2f   : > { %702 = vmatprep.subr.bf16.mxu0 %v1119_v12  ;;  %v1169_v38 = vld [vmem:[%s1303_s11 + $0x110] ss:$8 sps:$4 sm:$0xff]   ;;  %v1173_v39 = vld [vmem:[%s1303_s11 + $0x104] ss:$8 sps:$4 sm:$0xff]   ;;  %v1148_v41 = vld [vmem:[%s1303_s11 + $0xe0] ss:$8 sps:$4 sm:$0xff]  }
  0x30   : > { %744 = vmatpush1.bf16.msra.mxu1 %v1145_v22  ;;  %v1185_v40 = vld [vmem:[%s1305_s12 + $0x4] ss:$12 sps:$4 sm:$0xff]   ;;  %v1179_v46 = vld [vmem:[%s1305_s12 + $0x8] ss:$12 sps:$4 sm:$0xff]   ;;  %v1183_v56 = vld [vmem:[%s1305_s12] ss:$12 sps:$4 sm:$0xff]  }
  0x31   : > { %745 = vmatprep.subr.bf16.mxu1 %v1149_v23  ;;  %v1152_v42 = vld [vmem:[%s1303_s11 + $0xd4] ss:$8 sps:$4 sm:$0xff]   ;;  %728 = vmatprep.mubr.bf16.mxu0 %v1185_v40  ;;  %v1175_v43 = vld [vmem:[%s1303_s11 + $0x100] ss:$8 sps:$4 sm:$0xff]   ;;  %v1154_v44 = vld [vmem:[%s1303_s11 + $0xd0] ss:$8 sps:$4 sm:$0xff]  }
  0x32   : > { %703 = vmatpush1.bf16.msra.mxu0 %v1121_v15  ;;  %v1158_v45 = vld [vmem:[%s1303_s11 + $0xc4] ss:$8 sps:$4 sm:$0xff]   ;;  %v1160_v47 = vld [vmem:[%s1303_s11 + $0xc0] ss:$8 sps:$4 sm:$0xff]   ;;  %v1164_v48 = vld [vmem:[%s1303_s11 + $0xb4] ss:$8 sps:$4 sm:$0xff]  }
  0x33   : > { %704 = vmatprep.subr.bf16.mxu0 %v1122_v16  ;;  %v1166_v49 = vld [vmem:[%s1303_s11 + $0xb0] ss:$8 sps:$4 sm:$0xff]   ;;  %v1170_v50 = vld [vmem:[%s1303_s11 + $0xa4] ss:$8 sps:$4 sm:$0xff]   ;;  %v1172_v51 = vld [vmem:[%s1303_s11 + $0xa0] ss:$8 sps:$4 sm:$0xff]  }
  0x34   : > { %746 = vmatpush1.bf16.msra.mxu1 %v1151_v26  ;;  %v1176_v52 = vld [vmem:[%s1303_s11 + $0x94] ss:$8 sps:$4 sm:$0xff]   ;;  %v1178_v53 = vld [vmem:[%s1303_s11 + $0x90] ss:$8 sps:$4 sm:$0xff]   ;;  %v1180_v54 = vld [vmem:[%s1303_s11 + $0x84] ss:$8 sps:$4 sm:$0xff]  }
  0x35   : > { %747 = vmatprep.subr.bf16.mxu1 %v1155_v27  ;;  %v1182_v55 = vld [vmem:[%s1303_s11 + $0x80] ss:$8 sps:$4 sm:$0xff]   ;;  %v384_v59 = vld [vmem:[#allocation2 + $0x10] sm:$0xff]  ;;  %v386_v3 = vld [vmem:[#allocation2 + $0x18] sm:$0xff] }
  0x36   : > { %705 = vmatpush1.bf16.msra.mxu0 %v1124_v19  ;;  %v385_v63 = vld [vmem:[#allocation2] sm:$0xff]  ;;  %v387_v8 = vld [vmem:[#allocation2 + $0x8] sm:$0xff] }
  0x37   : > { %706 = vmatprep.subr.bf16.mxu0 %v1125_v21 }
  0x38   : > { %748 = vmatpush1.bf16.msra.mxu1 %v1157_v30 }
  0x39   : > { %749 = vmatprep.subr.bf16.mxu1 %v1161_v31 }
  0x3a   : > { %707 = vmatpush1.bf16.msra.mxu0 %v1127_v24 }
  0x3b   : > { %708 = vmatprep.subr.bf16.mxu0 %v1128_v25 }
  0x3c   : > { %750 = vmatpush1.bf16.msra.mxu1 %v1163_v34 }
  0x3d   : > { %751 = vmatprep.subr.bf16.mxu1 %v1167_v35 }
  0x3e   : > { %709 = vmatpush1.bf16.msra.mxu0 %v1130_v28 }
  0x3f   : > { %710 = vmatprep.subr.bf16.mxu0 %v1134_v29 }
  0x40   : > { %752 = vmatpush1.bf16.msra.mxu1 %v1169_v38 }
  0x41   : > { %753 = vmatprep.subr.bf16.mxu1 %v1173_v39 }
  0x42   : > { %711 = vmatpush1.bf16.msra.mxu0 %v1136_v32 }
  0x43   : > { %712 = vmatprep.subr.bf16.mxu0 %v1140_v33 }
  0x44   : > { %754 = vmatpush1.bf16.msra.mxu1 %v1175_v43 }
  0x46   : > { %713 = vmatpush2.bf16.msra.mxu0 %v1142_v36 }
  0x47   : > { %714 = vmatprep.subr.bf16.mxu0 %v1146_v37  ;;  %772 = vmatmul.mubr.bf16.vlgmr.msra.gmra.mxu1 %v1179_v46 }
  0x4a   : > { %715 = vmatpush2.bf16.msra.mxu0 %v1148_v41 }
  0x4b   : > { %716 = vmatprep.subr.bf16.mxu0 %v1152_v42 }
  0x4e   : > { %717 = vmatpush2.bf16.msra.mxu0 %v1154_v44 }
  0x4f   : > { %718 = vmatprep.subr.bf16.mxu0 %v1158_v45 }
  0x52   : > { %719 = vmatpush2.bf16.msra.mxu0 %v1160_v47 }
  0x53   : > { %720 = vmatprep.subr.bf16.mxu0 %v1164_v48 }
  0x56   : > { %721 = vmatpush2.bf16.msra.mxu0 %v1166_v49 }
  0x57   : > { %722 = vmatprep.subr.bf16.mxu0 %v1170_v50 }
  0x5a   : > { %723 = vmatpush2.bf16.msra.mxu0 %v1172_v51 }
  0x5b   : > { %724 = vmatprep.subr.bf16.mxu0 %v1176_v52 }
  0x5e   : > { %725 = vmatpush2.bf16.msra.mxu0 %v1178_v53 }
  0x5f   : > { %726 = vmatprep.subr.bf16.mxu0 %v1180_v54 }
  0x62   : > { %727 = vmatpush2.bf16.msra.mxu0 %v1182_v55 }
  0x65   : > { %729 = vmatmul.mubr.bf16.vlgmr.msra.gmra.mxu0 %v1183_v56 }
 0x107   : > { %v773_v57 = vpop.f32.mrf.mxu1 }
 0x109   : > { %v775_v58 = vpop.f32.mrf.mxu1 }
 0x10b   : > { %v777_v62 = vpop.f32.mrf.mxu1 }
 0x10d   : > { %v779_v7 = vpop.f32.mrf.mxu1 }
 0x125   : > { %v730_v60 = vpop.f32.mrf.mxu0 }
 0x126   : > { %v774_v61 = vadd.f32 %v773_v57, %v730_v60 }
 0x127   : > { %v732_v0 = vpop.f32.mrf.mxu0 }
 0x128   : > { %v782_v1 = vadd.f32 %v774_v61, %v384_v59  ;;  %v776_v2 = vadd.f32 %v775_v58, %v732_v0 }
 0x129   : > { %v734_v4 = vpop.f32.mrf.mxu0 }
 0x12a   : > { %786 = vst [vmem:[#allocation2 + $0x10] sm:$0xff] %v782_v1  ;;  %v783_v5 = vadd.f32 %v776_v2, %v385_v63  ;;  %v778_v6 = vadd.f32 %v777_v62, %v734_v4 }
 0x12b   : > { %v736_v9 = vpop.f32.mrf.mxu0 }
 0x12c   : > { %787 = vst [vmem:[#allocation2] sm:$0xff] %v783_v5  ;;  %v784_v10 = vadd.f32 %v778_v6, %v386_v3  ;;  %v780_v11 = vadd.f32 %v779_v7, %v736_v9  ;;  %793 = sbr.rel (%p1055_p11) target bundleno = 322 (0x142), region = 70 }
 0x12e   : > { %788 = vst [vmem:[#allocation2 + $0x18] sm:$0xff] %v784_v10  ;;  %v785_v12 = vadd.f32 %v780_v11, %v387_v8 }
 0x130   : > { %789 = vst [vmem:[#allocation2 + $0x8] sm:$0xff] %v785_v12 }
 0x131   : > { %v800_v13 = vlaneseq  ;;  %v814_v15 = vld [vmem:[%s1393_s3] sm:$0xff]  ;;  %v815_v17 = vld [vmem:[%s1393_s3 + $0x8] sm:$0xff]  ;;  %v794_v18 = vld [vmem:[#allocation2 + $0x10] sm:$0xff] }
 0x132   : > { %v798_v16 = vld [vmem:[%s1392_s2] sm:$0x3]  ;;  %v816_v22 = vunpack.c.l.bf16 %v814_v15  ;;  %v817_v23 = vunpack.c.h.bf16 %v814_v15  ;;  %v818_v28 = vunpack.c.l.bf16 %v815_v17  ;;  %v819_v29 = vunpack.c.h.bf16 %v815_v17 }
 0x133   : > { %v801_v14 = vshrl.u32 %v800_v13, 7  ;;  %v795_v21 = vld [vmem:[#allocation2] sm:$0xff] }
 0x135   : > { %v802_v19 = vsub.s32 0, %v801_v14  ;;  %v806_v20 = vsub.s32 1, %v801_v14  ;;  %v796_v24 = vld [vmem:[#allocation2 + $0x18] sm:$0xff] }
 0x137   : > { %v797_v25 = vld [vmem:[#allocation2 + $0x8] sm:$0xff]  ;;  %v803_v26 = vrot.slane %v798_v16, %v802_v19  ;;  %v807_v27 = vrot.slane %v798_v16, %v806_v20 }
 0x139   : > { %v810_v30 = vadd.f32 %v803_v26, %v794_v18  ;;  %v811_v31 = vadd.f32 %v807_v27, %v795_v21  ;;  %v812_v32 = vadd.f32 %v803_v26, %v796_v24  ;;  %v813_v33 = vadd.f32 %v807_v27, %v797_v25 }
 0x13b   : > { %v820_v34 = vadd.f32 %v816_v22, %v810_v30  ;;  %v821_v35 = vadd.f32 %v817_v23, %v811_v31  ;;  %v822_v36 = vadd.f32 %v818_v28, %v812_v32  ;;  %v823_v37 = vadd.f32 %v819_v29, %v813_v33 }
 0x13d   : > { %v824_v38 = vmax.f32 %v820_v34, 0.0  ;;  %v825_v39 = vmax.f32 %v821_v35, 0.0  ;;  %v826_v40 = vmax.f32 %v822_v36, 0.0  ;;  %v827_v41 = vmax.f32 %v823_v37, 0.0 }
 0x13f   : > { %v1064_v42 = vpack.c.bf16 %v825_v39, %v824_v38  ;;  %v1065_v43 = vpack.c.bf16 %v827_v41, %v826_v40 }
 0x141   : > { %840 = vst [vmem:[%s1394_s4] sm:$0xff] %v1064_v42  ;;  %841 = vst [vmem:[%s1394_s4 + $0x8] sm:$0xff] %v1065_v43 }
 0x142 PF: > { %s14_s19 = sadd.s32 1, %s1224_s19   ;;  %s1395_s15 = smov %s1212_s16 }
 0x143   : > { %p11_p12 = scmp.ge.s32.totalorder %s14_s19, 8   ;;  %s1396_s16 = smov %s1288_s23 }
 0x144   : > { %s1397_s17 = smov %s1220_s18  ;;  %s1398_s18 = smov %s1400_s20 }
 0x145   :  { %13 = sbr.rel (!%p11_p12) target bundleno = 3 (0x3), region = 120 }

// kernel: resnet_forward.22
= control target key start
LH: loop header
LB: loop body
LE: loop exit
PB: predicated region body
PF: predicated region fallthrough
CT: control target
= control target key end

     0   :  { %v270_v1 = vmov 0   ;;  %v191_v18 = vlaneseq  ;;  %s351_s1 = inlined_call_operand.vmem [shape: bf16[128,256], index: 1, kind: input, shape index: {}]   ;;  %s352_s0 = inlined_call_operand.vmem [shape: bf16[16,128], index: 0, kind: input, shape index: {}]   ;;  %s353_s2 = inlined_call_operand.vmem [shape: f32[1,256], index: 2, kind: input, shape index: {}]   ;;  %s354_s3 = inlined_call_operand.vmem [shape: bf16[16,256], index: 3, kind: output, shape index: {}]  }
   0x1   :  { %v245_v0 = vld [vmem:[%s351_s1 + $0x74] ss:$8 sps:$4 sm:$0xff]   ;;  %163 = vmatprep.mubr.bf16.mxu0 %v270_v1  ;;  %v247_v2 = vld [vmem:[%s351_s1 + $0x70] ss:$8 sps:$4 sm:$0xff]   ;;  %v248_v3 = vld [vmem:[%s351_s1 + $0x64] ss:$8 sps:$4 sm:$0xff]  }
   0x2   :  { %131 = vmatprep.subr.bf16.mxu0 %v245_v0  ;;  %v250_v4 = vld [vmem:[%s351_s1 + $0x60] ss:$8 sps:$4 sm:$0xff]   ;;  %v251_v5 = vld [vmem:[%s351_s1 + $0x54] ss:$8 sps:$4 sm:$0xff]   ;;  %v253_v6 = vld [vmem:[%s351_s1 + $0x50] ss:$8 sps:$4 sm:$0xff]  }
   0x3   :  { %132 = vmatpush1.bf16.msra.mxu0 %v247_v2  ;;  %v254_v7 = vld [vmem:[%s351_s1 + $0x44] ss:$8 sps:$4 sm:$0xff]   ;;  %v256_v8 = vld [vmem:[%s351_s1 + $0x40] ss:$8 sps:$4 sm:$0xff]   ;;  %v257_v9 = vld [vmem:[%s351_s1 + $0x34] ss:$8 sps:$4 sm:$0xff]  }
   0x4   :  { %133 = vmatprep.subr.bf16.mxu0 %v248_v3  ;;  %v259_v10 = vld [vmem:[%s351_s1 + $0x30] ss:$8 sps:$4 sm:$0xff]   ;;  %v260_v11 = vld [vmem:[%s351_s1 + $0x24] ss:$8 sps:$4 sm:$0xff]   ;;  %v262_v12 = vld [vmem:[%s351_s1 + $0x20] ss:$8 sps:$4 sm:$0xff]  }
   0x5   :  { %v263_v13 = vld [vmem:[%s351_s1 + $0x14] ss:$8 sps:$4 sm:$0xff]   ;;  %v265_v14 = vld [vmem:[%s351_s1 + $0x10] ss:$8 sps:$4 sm:$0xff]   ;;  %v266_v15 = vld [vmem:[%s351_s1 + $0x4] ss:$8 sps:$4 sm:$0xff]  }
   0x6   :  { %v268_v16 = vld [vmem:[%s351_s1] ss:$8 sps:$4 sm:$0xff]   ;;  %v192_v19 = vshrl.u32 %v191_v18, 7 }
   0x7   :  { %134 = vmatpush1.bf16.msra.mxu0 %v250_v4  ;;  %v269_v17 = vld [vmem:[%s352_s0] sm:$0xff]  }
   0x8   :  { %135 = vmatprep.subr.bf16.mxu0 %v251_v5  ;;  %v193_v20 = vsub.s32 0, %v192_v19  ;;  %v197_v21 = vsub.s32 1, %v192_v19  ;;  %v189_v22 = vld [vmem:[%s353_s2] sm:$0x3] }
   0xa   :  { %v194_v23 = vrot.slane %v189_v22, %v193_v20  ;;  %v198_v24 = vrot.slane %v189_v22, %v197_v21 }
   0xb   :  { %136 = vmatpush1.bf16.msra.mxu0 %v253_v6 }
   0xc   :  { %137 = vmatprep.subr.bf16.mxu0 %v254_v7 }
   0xf   :  { %138 = vmatpush1.bf16.msra.mxu0 %v256_v8 }
  0x10   :  { %139 = vmatprep.subr.bf16.mxu0 %v257_v9 }
  0x13   :  { %140 = vmatpush1.bf16.msra.mxu0 %v259_v10 }
  0x14   :  { %141 = vmatprep.subr.bf16.mxu0 %v260_v11 }
  0x17   :  { %142 = vmatpush1.bf16.msra.mxu0 %v262_v12 }
  0x18   :  { %143 = vmatprep.subr.bf16.mxu0 %v263_v13 }
  0x1b   :  { %144 = vmatpush1.bf16.msra.mxu0 %v265_v14 }
  0x1c   :  { %145 = vmatprep.subr.bf16.mxu0 %v266_v15 }
  0x1f   :  { %146 = vmatpush1.bf16.msra.mxu0 %v268_v16 }
  0x22   :  { %164 = vmatmul.mubr.bf16.vlgmr.msra.gmra.mxu0 %v269_v17 }
  0xe2   :  { %v165_v25 = vpop.f32.mrf.mxu0 }
  0xe3   :  { %v201_v27 = vadd.f32 %v194_v23, %v165_v25 }
  0xe4   :  { %v167_v26 = vpop.f32.mrf.mxu0 }
  0xe5   :  { %v202_v28 = vadd.f32 %v198_v24, %v167_v26 }
  0xe6   :  { %v169_v29 = vpop.f32.mrf.mxu0 }
  0xe7   :  { %v242_v30 = vpack.c.bf16 %v202_v28, %v201_v27  ;;  %v203_v32 = vadd.f32 %v194_v23, %v169_v29 }
  0xe8   :  { %v171_v31 = vpop.f32.mrf.mxu0 }
  0xe9   :  { %217 = vst [vmem:[%s354_s3] sm:$0xff] %v242_v30  ;;  %v204_v33 = vadd.f32 %v198_v24, %v171_v31 }
  0xeb   :  { %v243_v34 = vpack.c.bf16 %v204_v33, %v203_v32 }
  0xed   :  { %218 = vst [vmem:[%s354_s3 + $0x8] sm:$0xff] %v243_v34 }

// kernel: resnet_forward.24
= control target key start
LH: loop header
LB: loop body
LE: loop exit
PB: predicated region body
PF: predicated region fallthrough
CT: control target
= control target key end

     0   :  { %s1812_s0 = inlined_call_operand.vmem [shape: bf16[16,2304], index: 0, kind: input, shape index: {}]   ;;  %s1813_s1 = inlined_call_operand.vmem [shape: bf16[2304,512], index: 1, kind: input, shape index: {}]   ;;  %s1814_s2 = inlined_call_operand.vmem [shape: f32[1,512], index: 2, kind: input, shape index: {}]   ;;  %s1815_s3 = inlined_call_operand.vmem [shape: bf16[16,512], index: 3, kind: output, shape index: {}]  }
   0x1   :  { %1817 = sst [smem:[#allocation7_spill]] %s1812_s0 }
   0x2   :  { %1818 = sst [smem:[#allocation8_spill]] %s1813_s1 }
   0x3   :  { %s1479_s12 = smov 0   ;;  %s1481_s13 = smov 0  }
   0x4   :  { %s1483_s14 = smov 0   ;;  %s1485_s15 = smov 0  }
   0x5   :  { %s1487_s16 = smov 0   ;;  %s1489_s17 = smov 0  }
   0x6   :  { %s1491_s18 = smov 0   ;;  %s1493_s19 = smov 0  }
   0x7   :  { %s1495_s20 = smov 0   ;;  %s1497_s21 = smov 0  }
   0x8   :  { %s1499_s22 = smov 0  }
   0x9 LB: > { %s1119_s23 = sadd.s32 4294967295, %s1455_s22   ;;  %s25_s24 = sadd.s32 1, %s1447_s20  ;;  %s1455_s22 = sphi %s1499_s22, %s13_s22   ;;  %s1451_s21 = sphi %s1497_s21, %s1835_s21   ;;  %s1447_s20 = sphi %s1495_s20, %s1834_s20   ;;  %s1443_s19 = sphi %s1493_s19, %s1833_s19   ;;  %s1439_s18 = sphi %s1491_s18, %s1832_s18   ;;  %s1435_s17 = sphi %s1489_s17, %s1831_s17   ;;  %s1431_s16 = sphi %s1487_s16, %s1830_s16   ;;  %s1427_s15 = sphi %s1485_s15, %s1829_s15   ;;  %s1423_s14 = sphi %s1483_s14, %s1828_s14   ;;  %s1419_s13 = sphi %s1481_s13, %s1827_s13   ;;  %s1415_s12 = sphi %s1479_s12, %s1826_s12  }
   0xa   : > { %p26_p0 = scmp.ge.s32.totalorder %s25_s24, 6  ;;  %s28_s25 = sadd.s32 1, %s1451_s21 }
   0xb   : > { %s41_s26 = sadd.s32 1, %s1435_s17  ;;  %p48_p1 = scmp.ne.s32.totalorder %s1435_s17, %s1431_s16 }
   0xc   : > { %s1837_s24 = smov (%p26_p0, %s25_s24), 0  ;;  %s1839_s25 = smov (!%p26_p0, %s28_s25), %s1451_s21 }
   0xd   : > { %s37_s27 = ssub.s32 %s1447_s20, %s1837_s24  ;;  %p49_p2 = scmp.eq.s32.totalorder %s1455_s22, 0 }
   0xe   : > { %p30_p3 = scmp.ge.s32.totalorder %s1839_s25, 2  ;;  %p39_p4 = scmp.eq.s32.totalorder %s37_s27, 0 }
   0xf   : > { %p1546_p5 = por %p49_p2, %p48_p1  ;;  %s69_s29 = sadd.s32 1, %s1427_s15 }
  0x10   : > { %s1841_s25 = smov (%p30_p3, %s1839_s25), 0  ;;  %p76_p6 = scmp.ne.s32.totalorder %s1427_s15, %s1423_s14 }
  0x11   : > { %1820 = sst [smem:[#allocation6_spill]] %s1841_s25  ;;  %s65_s4 = ssub.s32 %s1451_s21, %s1841_s25 }
  0x12   : > { %s1554_s30 = scalar_select %p39_p4, %s1435_s17, %s41_s26  }
  0x13   : > { %s66_s5 = sor.u32 %s65_s4, %s37_s27  ;;  %p121_p7 = scmp.eq.s32.totalorder %s65_s4, 0 }
  0x14   : > { %p67_p8 = scmp.eq.s32.totalorder %s66_s5, 0  ;;  %p1560_p9 = por %p76_p6, %p49_p2 }
  0x15   : > { %s123_s7 = sadd.s32 1, %s1419_s13  ;;  %p133_p10 = scmp.ne.s32.totalorder %s1419_s13, %s1415_s12 }
  0x16   : > { %s1568_s8 = scalar_select %p67_p8, %s1427_s15, %s69_s29  }
  0x17   : > { %s1571_s9 = scalar_select %p121_p7, %s1419_s13, %s123_s7  }
  0x18   : > { %p134_p11 = scmp.eq.s32.totalorder %s1119_s23, 11  ;;  %p1122_p13 = scmp.ge.s32.totalorder %s1455_s22, 12 }
  0x1a   : > { %p1573_p12 = por %p134_p11, %p133_p10  ;;  %156 = sbr.rel (%p1122_p13) target bundleno = 76 (0x4c), region = 16 }
  0x1f   : > { %159 = sbr.rel (!%p1546_p5) target bundleno = 42 (0x2a), region = 20  ;;  %s161_s11 = sand.u32 (%p1546_p5), 1, %s1435_s17  }
  0x20   : > { %s1194_s26 = smul.u32 (%p1546_p5), 12, %s1447_s20  ;;  %s1823_s0 = sld [smem:[#allocation7_spill]] (%p1546_p5) }
  0x21   : > { %s1199_s27 = smul.u32 (%p1546_p5), 24, %s161_s11 }
  0x23   : > { %s163_s23 = scalar_lea.vmem (%p1546_p5), [#allocation3], %s1199_s27 }
  0x26   : > { %s169_s5 = scalar_lea.vmem %s1823_s0, %s1194_s26 }
  0x27   : > { %v184_v0 = vld [vmem:[%s169_s5] sm:$0xff]  ;;  %v186_v1 = vld [vmem:[%s169_s5 + $0x48] sm:$0xff]  ;;  %v1126_v3 = vld [vmem:[%s169_s5 + $0x50] sm:$0xf] }
  0x28   : > { %v1124_v2 = vld [vmem:[%s169_s5 + $0x8] sm:$0xf]  ;;  %185 = vst [vmem:[%s163_s23] sm:$0xff] %v184_v0  ;;  %187 = vst [vmem:[%s163_s23 + $0xc] sm:$0xff] %v186_v1 }
  0x29   : > { %1125 = vst [vmem:[%s163_s23 + $0x8] sm:$0xf] %v1124_v2  ;;  %1127 = vst [vmem:[%s163_s23 + $0x14] sm:$0xf] %v1126_v3 }
  0x2a PF: > { %205 = sbr.rel (!%p1560_p9) target bundleno = 76 (0x4c), region = 46  ;;  %s207_s28 = sand.u32 (%p1560_p9), 1, %s1427_s15  }
  0x2b   : > { %s1200_s7 = smul.u32 (%p1560_p9), 384, %s207_s28  ;;  %s1128_s11 = sshll.u32 (%p1560_p9), %s1451_s21, 1 }
  0x2c   : > { %s1195_s26 = smul.u32 (%p1560_p9), 192, %s1447_s20  ;;  %s1824_s1 = sld [smem:[#allocation8_spill]] (%p1560_p9) }
  0x2d   : > { %s1598_s6 = scalar_lea.vmem (%p1560_p9), [#allocation4], %s1200_s7 }
  0x2e   : > { %s213_s29 = sadd.s32 (%p1560_p9), %s1195_s26, %s1128_s11 }
  0x2f   : > { %s1130_s4 = sshll.u32 %s213_s29, 2 }
  0x32   : > { %s1593_s25 = scalar_lea.vmem %s1824_s1, %s1130_s4 }
  0x33   : > { %v338_v4 = vld [vmem:[%s1593_s25] sm:$0xff]  ;;  %v340_v5 = vld [vmem:[%s1593_s25 + $0x10] sm:$0xff] }
  0x34   : > { %v342_v6 = vld [vmem:[%s1593_s25 + $0x20] sm:$0xff]  ;;  %339 = vst [vmem:[%s1598_s6] sm:$0xff] %v338_v4  ;;  %341 = vst [vmem:[%s1598_s6 + $0x8] sm:$0xff] %v340_v5  ;;  %v344_v7 = vld [vmem:[%s1593_s25 + $0x30] sm:$0xff] }
  0x35   : > { %343 = vst [vmem:[%s1598_s6 + $0x10] sm:$0xff] %v342_v6  ;;  %v346_v8 = vld [vmem:[%s1593_s25 + $0x40] sm:$0xff]  ;;  %v348_v9 = vld [vmem:[%s1593_s25 + $0x50] sm:$0xff]  ;;  %345 = vst [vmem:[%s1598_s6 + $0x18] sm:$0xff] %v344_v7 }
  0x36   : > { %347 = vst [vmem:[%s1598_s6 + $0x20] sm:$0xff] %v346_v8  ;;  %349 = vst [vmem:[%s1598_s6 + $0x28] sm:$0xff] %v348_v9  ;;  %v350_v10 = vld [vmem:[%s1593_s25 + $0x60] sm:$0xff]  ;;  %v352_v11 = vld [vmem:[%s1593_s25 + $0x70] sm:$0xff] }
  0x37   : > { %v354_v12 = vld [vmem:[%s1593_s25 + $0x80] sm:$0xff]  ;;  %351 = vst [vmem:[%s1598_s6 + $0x30] sm:$0xff] %v350_v10  ;;  %353 = vst [vmem:[%s1598_s6 + $0x38] sm:$0xff] %v352_v11  ;;  %v356_v13 = vld [vmem:[%s1593_s25 + $0x90] sm:$0xff] }
  0x38   : > { %355 = vst [vmem:[%s1598_s6 + $0x40] sm:$0xff] %v354_v12  ;;  %v358_v14 = vld [vmem:[%s1593_s25 + $0xa0] sm:$0xff]  ;;  %v360_v15 = vld [vmem:[%s1593_s25 + $0xb0] sm:$0xff]  ;;  %357 = vst [vmem:[%s1598_s6 + $0x48] sm:$0xff] %v356_v13 }
  0x39   : > { %359 = vst [vmem:[%s1598_s6 + $0x50] sm:$0xff] %v358_v14  ;;  %361 = vst [vmem:[%s1598_s6 + $0x58] sm:$0xff] %v360_v15  ;;  %v362_v16 = vld [vmem:[%s1593_s25 + $0xc0] sm:$0xff]  ;;  %v364_v17 = vld [vmem:[%s1593_s25 + $0xd0] sm:$0xff] }
  0x3a   : > { %v366_v18 = vld [vmem:[%s1593_s25 + $0xe0] sm:$0xff]  ;;  %363 = vst [vmem:[%s1598_s6 + $0x60] sm:$0xff] %v362_v16  ;;  %365 = vst [vmem:[%s1598_s6 + $0x68] sm:$0xff] %v364_v17  ;;  %v368_v19 = vld [vmem:[%s1593_s25 + $0xf0] sm:$0xff] }
  0x3b   : > { %367 = vst [vmem:[%s1598_s6 + $0x70] sm:$0xff] %v366_v18  ;;  %v370_v20 = vld [vmem:[%s1593_s25 + $0x100] sm:$0xff]  ;;  %v372_v21 = vld [vmem:[%s1593_s25 + $0x110] sm:$0xff]  ;;  %369 = vst [vmem:[%s1598_s6 + $0x78] sm:$0xff] %v368_v19 }
  0x3c   : > { %371 = vst [vmem:[%s1598_s6 + $0x80] sm:$0xff] %v370_v20  ;;  %373 = vst [vmem:[%s1598_s6 + $0x88] sm:$0xff] %v372_v21  ;;  %v374_v22 = vld [vmem:[%s1593_s25 + $0x120] sm:$0xff]  ;;  %v376_v23 = vld [vmem:[%s1593_s25 + $0x130] sm:$0xff] }
  0x3d   : > { %v378_v24 = vld [vmem:[%s1593_s25 + $0x140] sm:$0xff]  ;;  %375 = vst [vmem:[%s1598_s6 + $0x90] sm:$0xff] %v374_v22  ;;  %377 = vst [vmem:[%s1598_s6 + $0x98] sm:$0xff] %v376_v23  ;;  %v380_v25 = vld [vmem:[%s1593_s25 + $0x150] sm:$0xff] }
  0x3e   : > { %379 = vst [vmem:[%s1598_s6 + $0xa0] sm:$0xff] %v378_v24  ;;  %v382_v26 = vld [vmem:[%s1593_s25 + $0x160] sm:$0xff]  ;;  %v384_v27 = vld [vmem:[%s1593_s25 + $0x170] sm:$0xff]  ;;  %381 = vst [vmem:[%s1598_s6 + $0xa8] sm:$0xff] %v380_v25 }
  0x3f   : > { %383 = vst [vmem:[%s1598_s6 + $0xb0] sm:$0xff] %v382_v26  ;;  %385 = vst [vmem:[%s1598_s6 + $0xb8] sm:$0xff] %v384_v27  ;;  %v386_v28 = vld [vmem:[%s1593_s25 + $0x180] sm:$0xff]  ;;  %v388_v29 = vld [vmem:[%s1593_s25 + $0x190] sm:$0xff] }
  0x40   : > { %v390_v30 = vld [vmem:[%s1593_s25 + $0x1a0] sm:$0xff]  ;;  %387 = vst [vmem:[%s1598_s6 + $0xc0] sm:$0xff] %v386_v28  ;;  %389 = vst [vmem:[%s1598_s6 + $0xc8] sm:$0xff] %v388_v29  ;;  %v392_v31 = vld [vmem:[%s1593_s25 + $0x1b0] sm:$0xff] }
  0x41   : > { %391 = vst [vmem:[%s1598_s6 + $0xd0] sm:$0xff] %v390_v30  ;;  %v394_v32 = vld [vmem:[%s1593_s25 + $0x1c0] sm:$0xff]  ;;  %v396_v33 = vld [vmem:[%s1593_s25 + $0x1d0] sm:$0xff]  ;;  %393 = vst [vmem:[%s1598_s6 + $0xd8] sm:$0xff] %v392_v31 }
  0x42   : > { %395 = vst [vmem:[%s1598_s6 + $0xe0] sm:$0xff] %v394_v32  ;;  %397 = vst [vmem:[%s1598_s6 + $0xe8] sm:$0xff] %v396_v33  ;;  %v398_v34 = vld [vmem:[%s1593_s25 + $0x1e0] sm:$0xff]  ;;  %v400_v35 = vld [vmem:[%s1593_s25 + $0x1f0] sm:$0xff] }
  0x43   : > { %v402_v36 = vld [vmem:[%s1593_s25 + $0x200] sm:$0xff]  ;;  %399 = vst [vmem:[%s1598_s6 + $0xf0] sm:$0xff] %v398_v34  ;;  %401 = vst [vmem:[%s1598_s6 + $0xf8] sm:$0xff] %v400_v35  ;;  %v404_v37 = vld [vmem:[%s1593_s25 + $0x210] sm:$0xff] }
  0x44   : > { %403 = vst [vmem:[%s1598_s6 + $0x100] sm:$0xff] %v402_v36  ;;  %v406_v38 = vld [vmem:[%s1593_s25 + $0x220] sm:$0xff]  ;;  %v408_v39 = vld [vmem:[%s1593_s25 + $0x230] sm:$0xff]  ;;  %405 = vst [vmem:[%s1598_s6 + $0x108] sm:$0xff] %v404_v37 }
  0x45   : > { %407 = vst [vmem:[%s1598_s6 + $0x110] sm:$0xff] %v406_v38  ;;  %409 = vst [vmem:[%s1598_s6 + $0x118] sm:$0xff] %v408_v39  ;;  %v410_v40 = vld [vmem:[%s1593_s25 + $0x240] sm:$0xff]  ;;  %v412_v41 = vld [vmem:[%s1593_s25 + $0x250] sm:$0xff] }
  0x46   : > { %v414_v42 = vld [vmem:[%s1593_s25 + $0x260] sm:$0xff]  ;;  %411 = vst [vmem:[%s1598_s6 + $0x120] sm:$0xff] %v410_v40  ;;  %413 = vst [vmem:[%s1598_s6 + $0x128] sm:$0xff] %v412_v41  ;;  %v416_v43 = vld [vmem:[%s1593_s25 + $0x270] sm:$0xff] }
  0x47   : > { %415 = vst [vmem:[%s1598_s6 + $0x130] sm:$0xff] %v414_v42  ;;  %v418_v44 = vld [vmem:[%s1593_s25 + $0x280] sm:$0xff]  ;;  %v420_v45 = vld [vmem:[%s1593_s25 + $0x290] sm:$0xff]  ;;  %417 = vst [vmem:[%s1598_s6 + $0x138] sm:$0xff] %v416_v43 }
  0x48   : > { %419 = vst [vmem:[%s1598_s6 + $0x140] sm:$0xff] %v418_v44  ;;  %421 = vst [vmem:[%s1598_s6 + $0x148] sm:$0xff] %v420_v45  ;;  %v422_v46 = vld [vmem:[%s1593_s25 + $0x2a0] sm:$0xff]  ;;  %v424_v47 = vld [vmem:[%s1593_s25 + $0x2b0] sm:$0xff] }
  0x49   : > { %v426_v48 = vld [vmem:[%s1593_s25 + $0x2c0] sm:$0xff]  ;;  %423 = vst [vmem:[%s1598_s6 + $0x150] sm:$0xff] %v422_v46  ;;  %425 = vst [vmem:[%s1598_s6 + $0x158] sm:$0xff] %v424_v47  ;;  %v428_v49 = vld [vmem:[%s1593_s25 + $0x2d0] sm:$0xff] }
  0x4a   : > { %427 = vst [vmem:[%s1598_s6 + $0x160] sm:$0xff] %v426_v48  ;;  %v430_v50 = vld [vmem:[%s1593_s25 + $0x2e0] sm:$0xff]  ;;  %v432_v51 = vld [vmem:[%s1593_s25 + $0x2f0] sm:$0xff]  ;;  %429 = vst [vmem:[%s1598_s6 + $0x168] sm:$0xff] %v428_v49 }
  0x4b   : > { %431 = vst [vmem:[%s1598_s6 + $0x170] sm:$0xff] %v430_v50  ;;  %433 = vst [vmem:[%s1598_s6 + $0x178] sm:$0xff] %v432_v51 }
  0x4c PF: > { %p1131_p0 = scmp.ge.s32.totalorder %s1455_s22, 1  ;;  %p446_p1 = scmp.lt.s32.totalorder %s1455_s22, 13 }
  0x4e   : > { %p447_p2 = pnand %p1131_p0, %p446_p1 }
  0x4f   : > { %s453_s0 = sand.u32 (!%p447_p2), 1, %s1431_s16   ;;  %s460_s5 = sand.u32 (!%p447_p2), 1, %s1423_s14  }
  0x50   : > { %450 = sbr.rel (%p447_p2) target bundleno = 387 (0x183), region = 88  ;;  %s487_s28 = sand.u32 (!%p447_p2), 1, %s1415_s12  }
  0x51   : > { %s1201_s23 = smul.u32 (!%p447_p2), 24, %s453_s0  ;;  %s1132_s7 = sshll.u32 (!%p447_p2), %s487_s28, 4 }
  0x52   : > { %s1202_s25 = smul.u32 (!%p447_p2), 384, %s460_s5  ;;  %s1133_s11 = sshll.u32 (!%p447_p2), %s1443_s19, 1 }
  0x53   : > { %p495_p3 = scmp.lt.s32.totalorder (!%p447_p2), %s1133_s11, 3  ;;  %s1705_s27 = scalar_lea.vmem (!%p447_p2), [#allocation3], %s1201_s23 }
  0x54   : > { %s1707_s6 = scalar_lea.vmem (!%p447_p2), [#allocation4], %s1202_s25  ;;  %s1709_s1 = scalar_lea.vmem (!%p447_p2), [#allocation5], %s1132_s7 }
  0x55   : > { %s1843_s11 = smov (!%p495_p3, %s1133_s11), 3  ;;  %p1134_p4 = scmp.ne.s32.totalorder %s1439_s18, 0 }
  0x56   : > { %s497_s4 = scalar_lea.vmem %s1814_s2, %s1843_s11 }
  0x57   : > { %505 = sbr.rel (%p1134_p4) target bundleno = 95 (0x5f), region = 100 }
  0x5c   : > { %v1457_v52 = vmov 0.0  }
  0x5d   : > { %506 = vst [vmem:[#allocation2 + $0x10] sm:$0xff] %v1457_v52  ;;  %507 = vst [vmem:[#allocation2] sm:$0xff] %v1457_v52 }
  0x5e   : > { %508 = vst [vmem:[#allocation2 + $0x18] sm:$0xff] %v1457_v52  ;;  %509 = vst [vmem:[#allocation2 + $0x8] sm:$0xff] %v1457_v52 }
  0x5f PF: > { %v1293_v53 = vld [vmem:[%s1707_s6 + $0x74] ss:$8 sps:$4 sm:$0xff]   ;;  %v1295_v54 = vld [vmem:[%s1707_s6 + $0x70] ss:$8 sps:$4 sm:$0xff]   ;;  %v1458_v55 = vmov 0   ;;  %p1186_p5 = scmp.ne.s32.totalorder %s1439_s18, 5 }
  0x60   : > { %897 = vmatprep.mubr.bf16.mxu1 %v1458_v55  ;;  %822 = vmatprep.subr.bf16.mxu0 %v1293_v53  ;;  %v1296_v56 = vld [vmem:[%s1707_s6 + $0x64] ss:$8 sps:$4 sm:$0xff]   ;;  %v1298_v57 = vld [vmem:[%s1707_s6 + $0x60] ss:$8 sps:$4 sm:$0xff]   ;;  %v1299_v58 = vld [vmem:[%s1707_s6 + $0x54] ss:$8 sps:$4 sm:$0xff]  }
  0x61   : > { %823 = vmatpush1.bf16.msra.mxu0 %v1295_v54  ;;  %v1301_v59 = vld [vmem:[%s1707_s6 + $0x50] ss:$8 sps:$4 sm:$0xff]   ;;  %v1302_v60 = vld [vmem:[%s1707_s6 + $0x44] ss:$8 sps:$4 sm:$0xff]   ;;  %v1314_v61 = vld [vmem:[%s1707_s6 + $0x174] ss:$8 sps:$4 sm:$0xff]  }
  0x62   : > { %824 = vmatprep.subr.bf16.mxu0 %v1296_v56  ;;  %v1316_v62 = vld [vmem:[%s1707_s6 + $0x170] ss:$8 sps:$4 sm:$0xff]   ;;  %v1304_v63 = vld [vmem:[%s1707_s6 + $0x40] ss:$8 sps:$4 sm:$0xff]   ;;  %v1305_v0 = vld [vmem:[%s1707_s6 + $0x34] ss:$8 sps:$4 sm:$0xff]   ;;  %865 = vmatprep.subr.bf16.mxu1 %v1314_v61 }
  0x63   : > { %v1320_v1 = vld [vmem:[%s1707_s6 + $0x164] ss:$8 sps:$4 sm:$0xff]   ;;  %866 = vmatpush1.bf16.msra.mxu1 %v1316_v62  ;;  %v1322_v2 = vld [vmem:[%s1707_s6 + $0x160] ss:$8 sps:$4 sm:$0xff]   ;;  %v1307_v3 = vld [vmem:[%s1707_s6 + $0x30] ss:$8 sps:$4 sm:$0xff]  }
  0x64   : > { %867 = vmatprep.subr.bf16.mxu1 %v1320_v1  ;;  %v1326_v4 = vld [vmem:[%s1707_s6 + $0x154] ss:$8 sps:$4 sm:$0xff]   ;;  %v1308_v5 = vld [vmem:[%s1707_s6 + $0x24] ss:$8 sps:$4 sm:$0xff]   ;;  %v1328_v6 = vld [vmem:[%s1707_s6 + $0x150] ss:$8 sps:$4 sm:$0xff]  }
  0x65   : > { %825 = vmatpush1.bf16.msra.mxu0 %v1298_v57  ;;  %v1332_v7 = vld [vmem:[%s1707_s6 + $0x144] ss:$8 sps:$4 sm:$0xff]   ;;  %v1310_v8 = vld [vmem:[%s1707_s6 + $0x20] ss:$8 sps:$4 sm:$0xff]   ;;  %v1311_v9 = vld [vmem:[%s1707_s6 + $0x14] ss:$8 sps:$4 sm:$0xff]  }
  0x66   : > { %826 = vmatprep.subr.bf16.mxu0 %v1299_v58  ;;  %v1334_v10 = vld [vmem:[%s1707_s6 + $0x140] ss:$8 sps:$4 sm:$0xff]   ;;  %v1338_v11 = vld [vmem:[%s1707_s6 + $0x134] ss:$8 sps:$4 sm:$0xff]   ;;  %v1313_v12 = vld [vmem:[%s1707_s6 + $0x10] ss:$8 sps:$4 sm:$0xff]  }
  0x67   : > { %868 = vmatpush1.bf16.msra.mxu1 %v1322_v2  ;;  %v1317_v13 = vld [vmem:[%s1707_s6 + $0x4] ss:$8 sps:$4 sm:$0xff]   ;;  %v1340_v14 = vld [vmem:[%s1707_s6 + $0x130] ss:$8 sps:$4 sm:$0xff]   ;;  %v1319_v16 = vld [vmem:[%s1707_s6] ss:$8 sps:$4 sm:$0xff]  }
  0x68   : > { %869 = vmatprep.subr.bf16.mxu1 %v1326_v4  ;;  %v1344_v15 = vld [vmem:[%s1707_s6 + $0x124] ss:$8 sps:$4 sm:$0xff]   ;;  %v1323_v17 = vld [vmem:[%s1707_s6 + $0xf4] ss:$8 sps:$4 sm:$0xff]   ;;  %v1346_v18 = vld [vmem:[%s1707_s6 + $0x120] ss:$8 sps:$4 sm:$0xff]  }
  0x69   : > { %827 = vmatpush1.bf16.msra.mxu0 %v1301_v59  ;;  %v1350_v19 = vld [vmem:[%s1707_s6 + $0x114] ss:$8 sps:$4 sm:$0xff]   ;;  %v1325_v20 = vld [vmem:[%s1707_s6 + $0xf0] ss:$8 sps:$4 sm:$0xff]   ;;  %v1329_v21 = vld [vmem:[%s1707_s6 + $0xe4] ss:$8 sps:$4 sm:$0xff]  }
  0x6a   : > { %828 = vmatprep.subr.bf16.mxu0 %v1302_v60  ;;  %v1352_v22 = vld [vmem:[%s1707_s6 + $0x110] ss:$8 sps:$4 sm:$0xff]   ;;  %v1356_v23 = vld [vmem:[%s1707_s6 + $0x104] ss:$8 sps:$4 sm:$0xff]   ;;  %v1331_v25 = vld [vmem:[%s1707_s6 + $0xe0] ss:$8 sps:$4 sm:$0xff]  }
  0x6b   : > { %870 = vmatpush1.bf16.msra.mxu1 %v1328_v6  ;;  %v1368_v24 = vld [vmem:[%s1705_s27 + $0x4] ss:$12 sps:$4 sm:$0xff]   ;;  %v1362_v30 = vld [vmem:[%s1705_s27 + $0x8] ss:$12 sps:$4 sm:$0xff]   ;;  %v1366_v40 = vld [vmem:[%s1705_s27] ss:$12 sps:$4 sm:$0xff]  }
  0x6c   : > { %871 = vmatprep.subr.bf16.mxu1 %v1332_v7  ;;  %v1335_v26 = vld [vmem:[%s1707_s6 + $0xd4] ss:$8 sps:$4 sm:$0xff]   ;;  %854 = vmatprep.mubr.bf16.mxu0 %v1368_v24  ;;  %v1358_v27 = vld [vmem:[%s1707_s6 + $0x100] ss:$8 sps:$4 sm:$0xff]   ;;  %v1337_v28 = vld [vmem:[%s1707_s6 + $0xd0] ss:$8 sps:$4 sm:$0xff]  }
  0x6d   : > { %829 = vmatpush1.bf16.msra.mxu0 %v1304_v63  ;;  %v1341_v29 = vld [vmem:[%s1707_s6 + $0xc4] ss:$8 sps:$4 sm:$0xff]   ;;  %v1343_v31 = vld [vmem:[%s1707_s6 + $0xc0] ss:$8 sps:$4 sm:$0xff]   ;;  %v1347_v32 = vld [vmem:[%s1707_s6 + $0xb4] ss:$8 sps:$4 sm:$0xff]  }
  0x6e   : > { %830 = vmatprep.subr.bf16.mxu0 %v1305_v0  ;;  %v1349_v33 = vld [vmem:[%s1707_s6 + $0xb0] ss:$8 sps:$4 sm:$0xff]   ;;  %v1353_v34 = vld [vmem:[%s1707_s6 + $0xa4] ss:$8 sps:$4 sm:$0xff]   ;;  %v1355_v35 = vld [vmem:[%s1707_s6 + $0xa0] ss:$8 sps:$4 sm:$0xff]  }
  0x6f   : > { %872 = vmatpush1.bf16.msra.mxu1 %v1334_v10  ;;  %v1359_v36 = vld [vmem:[%s1707_s6 + $0x94] ss:$8 sps:$4 sm:$0xff]   ;;  %v1361_v37 = vld [vmem:[%s1707_s6 + $0x90] ss:$8 sps:$4 sm:$0xff]   ;;  %v1363_v38 = vld [vmem:[%s1707_s6 + $0x84] ss:$8 sps:$4 sm:$0xff]  }
  0x70   : > { %873 = vmatprep.subr.bf16.mxu1 %v1338_v11  ;;  %v1365_v39 = vld [vmem:[%s1707_s6 + $0x80] ss:$8 sps:$4 sm:$0xff]   ;;  %v511_v47 = vld [vmem:[#allocation2] sm:$0xff]  ;;  %v513_v56 = vld [vmem:[#allocation2 + $0x8] sm:$0xff] }
  0x71   : > { %831 = vmatpush1.bf16.msra.mxu0 %v1307_v3  ;;  %v510_v43 = vld [vmem:[#allocation2 + $0x10] sm:$0xff]  ;;  %v512_v51 = vld [vmem:[#allocation2 + $0x18] sm:$0xff] }
  0x72   : > { %832 = vmatprep.subr.bf16.mxu0 %v1308_v5 }
  0x73   : > { %874 = vmatpush1.bf16.msra.mxu1 %v1340_v14 }
  0x74   : > { %875 = vmatprep.subr.bf16.mxu1 %v1344_v15 }
  0x75   : > { %833 = vmatpush1.bf16.msra.mxu0 %v1310_v8 }
  0x76   : > { %834 = vmatprep.subr.bf16.mxu0 %v1311_v9 }
  0x77   : > { %876 = vmatpush1.bf16.msra.mxu1 %v1346_v18 }
  0x78   : > { %877 = vmatprep.subr.bf16.mxu1 %v1350_v19 }
  0x79   : > { %835 = vmatpush1.bf16.msra.mxu0 %v1313_v12 }
  0x7a   : > { %836 = vmatprep.subr.bf16.mxu0 %v1317_v13 }
  0x7b   : > { %878 = vmatpush1.bf16.msra.mxu1 %v1352_v22 }
  0x7c   : > { %879 = vmatprep.subr.bf16.mxu1 %v1356_v23 }
  0x7d   : > { %837 = vmatpush1.bf16.msra.mxu0 %v1319_v16 }
  0x7e   : > { %838 = vmatprep.subr.bf16.mxu0 %v1323_v17 }
  0x7f   : > { %880 = vmatpush1.bf16.msra.mxu1 %v1358_v27 }
  0x81   : > { %839 = vmatpush2.bf16.msra.mxu0 %v1325_v20 }
  0x82   : > { %840 = vmatprep.subr.bf16.mxu0 %v1329_v21  ;;  %898 = vmatmul.mubr.bf16.vlgmr.msra.gmra.mxu1 %v1362_v30 }
  0x85   : > { %841 = vmatpush2.bf16.msra.mxu0 %v1331_v25 }
  0x86   : > { %842 = vmatprep.subr.bf16.mxu0 %v1335_v26 }
  0x89   : > { %843 = vmatpush2.bf16.msra.mxu0 %v1337_v28 }
  0x8a   : > { %844 = vmatprep.subr.bf16.mxu0 %v1341_v29 }
  0x8d   : > { %845 = vmatpush2.bf16.msra.mxu0 %v1343_v31 }
  0x8e   : > { %846 = vmatprep.subr.bf16.mxu0 %v1347_v32 }
  0x91   : > { %847 = vmatpush2.bf16.msra.mxu0 %v1349_v33 }
  0x92   : > { %848 = vmatprep.subr.bf16.mxu0 %v1353_v34 }
  0x95   : > { %849 = vmatpush2.bf16.msra.mxu0 %v1355_v35 }
  0x96   : > { %850 = vmatprep.subr.bf16.mxu0 %v1359_v36 }
  0x99   : > { %851 = vmatpush2.bf16.msra.mxu0 %v1361_v37 }
  0x9a   : > { %852 = vmatprep.subr.bf16.mxu0 %v1363_v38 }
  0x9d   : > { %853 = vmatpush2.bf16.msra.mxu0 %v1365_v39 }
  0xa0   : > { %855 = vmatmul.mubr.bf16.vlgmr.msra.gmra.mxu0 %v1366_v40 }
 0x142   : > { %v899_v41 = vpop.f32.mrf.mxu1 }
 0x144   : > { %v901_v42 = vpop.f32.mrf.mxu1 }
 0x146   : > { %v903_v46 = vpop.f32.mrf.mxu1 }
 0x148   : > { %v905_v55 = vpop.f32.mrf.mxu1 }
 0x160   : > { %v856_v44 = vpop.f32.mrf.mxu0 }
 0x161   : > { %v900_v45 = vadd.f32 %v899_v41, %v856_v44 }
 0x162   : > { %v858_v48 = vpop.f32.mrf.mxu0 }
 0x163   : > { %v908_v49 = vadd.f32 %v900_v45, %v510_v43  ;;  %v902_v50 = vadd.f32 %v901_v42, %v858_v48 }
 0x164   : > { %v860_v52 = vpop.f32.mrf.mxu0 }
 0x165   : > { %912 = vst [vmem:[#allocation2 + $0x10] sm:$0xff] %v908_v49  ;;  %v909_v53 = vadd.f32 %v902_v50, %v511_v47  ;;  %v904_v54 = vadd.f32 %v903_v46, %v860_v52 }
 0x166   : > { %v862_v57 = vpop.f32.mrf.mxu0 }
 0x167   : > { %913 = vst [vmem:[#allocation2] sm:$0xff] %v909_v53  ;;  %v910_v58 = vadd.f32 %v904_v54, %v512_v51  ;;  %v906_v59 = vadd.f32 %v905_v55, %v862_v57  ;;  %919 = sbr.rel (%p1186_p5) target bundleno = 379 (0x17b), region = 104 }
 0x169   : > { %914 = vst [vmem:[#allocation2 + $0x18] sm:$0xff] %v910_v58  ;;  %v911_v60 = vadd.f32 %v906_v59, %v513_v56 }
 0x16b   : > { %915 = vst [vmem:[#allocation2 + $0x8] sm:$0xff] %v911_v60 }
 0x16c   : > { %v926_v61 = vlaneseq  ;;  %v924_v63 = vld [vmem:[%s497_s4] sm:$0x3]  ;;  %v920_v0 = vld [vmem:[#allocation2 + $0x10] sm:$0xff] }
 0x16e   : > { %v927_v62 = vshrl.u32 %v926_v61, 7  ;;  %v921_v3 = vld [vmem:[#allocation2] sm:$0xff] }
 0x170   : > { %v928_v1 = vsub.s32 0, %v927_v62  ;;  %v932_v2 = vsub.s32 1, %v927_v62  ;;  %v922_v4 = vld [vmem:[#allocation2 + $0x18] sm:$0xff] }
 0x172   : > { %v923_v5 = vld [vmem:[#allocation2 + $0x8] sm:$0xff]  ;;  %v929_v6 = vrot.slane %v924_v63, %v928_v1  ;;  %v933_v7 = vrot.slane %v924_v63, %v932_v2 }
 0x174   : > { %v936_v8 = vadd.f32 %v929_v6, %v920_v0  ;;  %v937_v9 = vadd.f32 %v933_v7, %v921_v3  ;;  %v938_v10 = vadd.f32 %v929_v6, %v922_v4  ;;  %v939_v11 = vadd.f32 %v933_v7, %v923_v5 }
 0x176   : > { %v940_v12 = vmax.f32 %v936_v8, 0.0  ;;  %v941_v13 = vmax.f32 %v937_v9, 0.0  ;;  %v942_v14 = vmax.f32 %v938_v10, 0.0  ;;  %v943_v15 = vmax.f32 %v939_v11, 0.0 }
 0x178   : > { %v1196_v16 = vpack.c.bf16 %v941_v13, %v940_v12  ;;  %v1197_v17 = vpack.c.bf16 %v943_v15, %v942_v14 }
 0x17a   : > { %956 = vst [vmem:[%s1709_s1] sm:$0xff] %v1196_v16  ;;  %957 = vst [vmem:[%s1709_s1 + $0x8] sm:$0xff] %v1197_v17 }
 0x17b PF: > { %964 = sbr.rel (!%p1573_p12) target bundleno = 387 (0x183), region = 108  ;;  %s1198_s16 = sshll.u32 (%p1573_p12), %s1443_s19, 3 }
 0x17c   : > { %s970_s5 = scalar_lea.vmem (%p1573_p12), %s1815_s3, %s1198_s16 }
 0x181   : > { %v1001_v18 = vld [vmem:[%s1709_s1] sm:$0xff]  ;;  %v1003_v19 = vld [vmem:[%s1709_s1 + $0x8] sm:$0xff] }
 0x182   : > { %1002 = vst [vmem:[%s970_s5] sm:$0xff] %v1001_v18  ;;  %1004 = vst [vmem:[%s970_s5 + $0x10] sm:$0xff] %v1003_v19 }
 0x183 PF: > { %s13_s22 = sadd.s32 1, %s1455_s22   ;;  %s1825_s1 = sld [smem:[#allocation6_spill]] }
 0x184   : > { %p10_p6 = scmp.ge.s32.totalorder %s13_s22, 14   ;;  %s1826_s12 = smov %s1419_s13 }
 0x185   : > { %s1827_s13 = smov %s1571_s9  ;;  %s1828_s14 = smov %s1427_s15 }
 0x186   : > { %s1829_s15 = smov %s1568_s8  ;;  %s1830_s16 = smov %s1435_s17 }
 0x187   : > { %s1831_s17 = smov %s1554_s30  ;;  %s1832_s18 = smov %s1447_s20 }
 0x188   : > { %s1833_s19 = smov %s1451_s21  ;;  %s1834_s20 = smov %s1837_s24 }
 0x189   : > { %s1835_s21 = smov %s1825_s1  ;;  %12 = sbr.rel (!%p10_p6) target bundleno = 9 (0x9), region = 194 }

// kernel: resnet_forward.25
= control target key start
LH: loop header
LB: loop body
LE: loop exit
PB: predicated region body
PF: predicated region fallthrough
CT: control target
= control target key end

     0   :  { %s1081_s12 = smov 0   ;;  %s1083_s13 = smov 0   ;;  %s1269_s0 = inlined_call_operand.vmem [shape: bf16[16,256], index: 0, kind: input, shape index: {}]   ;;  %s1270_s1 = inlined_call_operand.vmem [shape: bf16[256,512], index: 1, kind: input, shape index: {}]   ;;  %s1271_s2 = inlined_call_operand.vmem [shape: f32[1,512], index: 2, kind: input, shape index: {}]   ;;  %s1272_s3 = inlined_call_operand.vmem [shape: bf16[16,512], index: 3, kind: output, shape index: {}]  }
   0x1   :  { %s1085_s14 = smov 0   ;;  %s1087_s15 = smov 0  }
   0x2   :  { %s1089_s16 = smov 0  }
   0x3 LB: > { %s28_s17 = sadd.s32 1, %s1055_s15  ;;  %s873_s18 = sadd.s32 4294967295, %s1059_s16   ;;  %s1059_s16 = sphi %s1089_s16, %s13_s16   ;;  %s1055_s15 = sphi %s1087_s15, %s1277_s15   ;;  %s1051_s14 = sphi %s1085_s14, %s1276_s14   ;;  %s1047_s13 = sphi %s1083_s13, %s1275_s13   ;;  %s1043_s12 = sphi %s1081_s12, %s1274_s12  }
   0x4   : > { %p30_p0 = scmp.ge.s32.totalorder %s28_s17, 2  ;;  %p76_p1 = scmp.ne.s32.totalorder %s1047_s13, %s1043_s12 }
   0x5   : > { %p77_p2 = scmp.eq.s32.totalorder %s1059_s16, 0  ;;  %p134_p4 = scmp.eq.s32.totalorder %s873_s18, 1 }
   0x6   : > { %s1279_s17 = smov (%p30_p0, %s28_s17), 0  ;;  %s69_s20 = sadd.s32 1, %s1047_s13 }
   0x7   : > { %p78_p3 = por %p77_p2, %p76_p1  ;;  %s65_s19 = ssub.s32 %s1055_s15, %s1279_s17 }
   0x8   : > { %p67_p5 = scmp.eq.s32.totalorder %s65_s19, 0  ;;  %p1116_p6 = por %p134_p4, %p76_p1 }
   0x9   : > { %p877_p7 = scmp.ge.s32.totalorder %s1059_s16, 2 }
   0xa   : > { %s1121_s22 = scalar_select %p67_p5, %s1047_s13, %s69_s20  }
   0xb   : > { %171 = sbr.rel (%p877_p7) target bundleno = 36 (0x24), region = 20 }
  0x10   : > { %174 = sbr.rel (!%p78_p3) target bundleno = 36 (0x24), region = 24  ;;  %s176_s23 = sand.u32 (%p78_p3), 1, %s1047_s13  }
  0x11   : > { %s926_s24 = sshll.u32 (%p78_p3), %s1055_s15, 3  ;;  %s878_s25 = sshll.u32 (%p78_p3), %s176_s23, 8 }
  0x12   : > { %s1129_s28 = scalar_lea.vmem (%p78_p3), %s1270_s1, %s926_s24  ;;  %s1134_s29 = scalar_lea.vmem (%p78_p3), [#allocation3], %s878_s25 }
  0x13   : > { %v275_v0 = vld [vmem:[%s1129_s28] sm:$0xff] (%p78_p3)  ;;  %v277_v1 = vld [vmem:[%s1129_s28 + $0x10] sm:$0xff] (%p78_p3) }
  0x14   : > { %v279_v2 = vld [vmem:[%s1129_s28 + $0x20] sm:$0xff] (%p78_p3)  ;;  %276 = vst [vmem:[%s1134_s29] sm:$0xff] (%p78_p3), %v275_v0  ;;  %278 = vst [vmem:[%s1134_s29 + $0x8] sm:$0xff] (%p78_p3), %v277_v1  ;;  %v281_v3 = vld [vmem:[%s1129_s28 + $0x30] sm:$0xff] (%p78_p3) }
  0x15   : > { %280 = vst [vmem:[%s1134_s29 + $0x10] sm:$0xff] %v279_v2  ;;  %v283_v4 = vld [vmem:[%s1129_s28 + $0x40] sm:$0xff]  ;;  %v285_v5 = vld [vmem:[%s1129_s28 + $0x50] sm:$0xff]  ;;  %282 = vst [vmem:[%s1134_s29 + $0x18] sm:$0xff] %v281_v3 }
  0x16   : > { %284 = vst [vmem:[%s1134_s29 + $0x20] sm:$0xff] %v283_v4  ;;  %286 = vst [vmem:[%s1134_s29 + $0x28] sm:$0xff] %v285_v5  ;;  %v287_v6 = vld [vmem:[%s1129_s28 + $0x60] sm:$0xff]  ;;  %v289_v7 = vld [vmem:[%s1129_s28 + $0x70] sm:$0xff] }
  0x17   : > { %v291_v8 = vld [vmem:[%s1129_s28 + $0x80] sm:$0xff]  ;;  %288 = vst [vmem:[%s1134_s29 + $0x30] sm:$0xff] %v287_v6  ;;  %290 = vst [vmem:[%s1134_s29 + $0x38] sm:$0xff] %v289_v7  ;;  %v293_v9 = vld [vmem:[%s1129_s28 + $0x90] sm:$0xff] }
  0x18   : > { %292 = vst [vmem:[%s1134_s29 + $0x40] sm:$0xff] %v291_v8  ;;  %v295_v10 = vld [vmem:[%s1129_s28 + $0xa0] sm:$0xff]  ;;  %v297_v11 = vld [vmem:[%s1129_s28 + $0xb0] sm:$0xff]  ;;  %294 = vst [vmem:[%s1134_s29 + $0x48] sm:$0xff] %v293_v9 }
  0x19   : > { %296 = vst [vmem:[%s1134_s29 + $0x50] sm:$0xff] %v295_v10  ;;  %298 = vst [vmem:[%s1134_s29 + $0x58] sm:$0xff] %v297_v11  ;;  %v299_v12 = vld [vmem:[%s1129_s28 + $0xc0] sm:$0xff]  ;;  %v301_v13 = vld [vmem:[%s1129_s28 + $0xd0] sm:$0xff] }
  0x1a   : > { %v303_v14 = vld [vmem:[%s1129_s28 + $0xe0] sm:$0xff]  ;;  %300 = vst [vmem:[%s1134_s29 + $0x60] sm:$0xff] %v299_v12  ;;  %302 = vst [vmem:[%s1134_s29 + $0x68] sm:$0xff] %v301_v13  ;;  %v305_v15 = vld [vmem:[%s1129_s28 + $0xf0] sm:$0xff] }
  0x1b   : > { %304 = vst [vmem:[%s1134_s29 + $0x70] sm:$0xff] %v303_v14  ;;  %v307_v16 = vld [vmem:[%s1129_s28 + $0x100] sm:$0xff]  ;;  %v309_v17 = vld [vmem:[%s1129_s28 + $0x110] sm:$0xff]  ;;  %306 = vst [vmem:[%s1134_s29 + $0x78] sm:$0xff] %v305_v15 }
  0x1c   : > { %308 = vst [vmem:[%s1134_s29 + $0x80] sm:$0xff] %v307_v16  ;;  %310 = vst [vmem:[%s1134_s29 + $0x88] sm:$0xff] %v309_v17  ;;  %v311_v18 = vld [vmem:[%s1129_s28 + $0x120] sm:$0xff]  ;;  %v313_v19 = vld [vmem:[%s1129_s28 + $0x130] sm:$0xff] }
  0x1d   : > { %v315_v20 = vld [vmem:[%s1129_s28 + $0x140] sm:$0xff]  ;;  %312 = vst [vmem:[%s1134_s29 + $0x90] sm:$0xff] %v311_v18  ;;  %314 = vst [vmem:[%s1134_s29 + $0x98] sm:$0xff] %v313_v19  ;;  %v317_v21 = vld [vmem:[%s1129_s28 + $0x150] sm:$0xff] }
  0x1e   : > { %316 = vst [vmem:[%s1134_s29 + $0xa0] sm:$0xff] %v315_v20  ;;  %v319_v22 = vld [vmem:[%s1129_s28 + $0x160] sm:$0xff]  ;;  %v321_v23 = vld [vmem:[%s1129_s28 + $0x170] sm:$0xff]  ;;  %318 = vst [vmem:[%s1134_s29 + $0xa8] sm:$0xff] %v317_v21 }
  0x1f   : > { %320 = vst [vmem:[%s1134_s29 + $0xb0] sm:$0xff] %v319_v22  ;;  %322 = vst [vmem:[%s1134_s29 + $0xb8] sm:$0xff] %v321_v23  ;;  %v323_v24 = vld [vmem:[%s1129_s28 + $0x180] sm:$0xff]  ;;  %v325_v25 = vld [vmem:[%s1129_s28 + $0x190] sm:$0xff] }
  0x20   : > { %v327_v26 = vld [vmem:[%s1129_s28 + $0x1a0] sm:$0xff]  ;;  %324 = vst [vmem:[%s1134_s29 + $0xc0] sm:$0xff] %v323_v24  ;;  %326 = vst [vmem:[%s1134_s29 + $0xc8] sm:$0xff] %v325_v25  ;;  %v329_v27 = vld [vmem:[%s1129_s28 + $0x1b0] sm:$0xff] }
  0x21   : > { %328 = vst [vmem:[%s1134_s29 + $0xd0] sm:$0xff] %v327_v26  ;;  %v331_v28 = vld [vmem:[%s1129_s28 + $0x1c0] sm:$0xff]  ;;  %v333_v29 = vld [vmem:[%s1129_s28 + $0x1d0] sm:$0xff]  ;;  %330 = vst [vmem:[%s1134_s29 + $0xd8] sm:$0xff] %v329_v27 }
  0x22   : > { %332 = vst [vmem:[%s1134_s29 + $0xe0] sm:$0xff] %v331_v28  ;;  %334 = vst [vmem:[%s1134_s29 + $0xe8] sm:$0xff] %v333_v29  ;;  %v335_v30 = vld [vmem:[%s1129_s28 + $0x1e0] sm:$0xff]  ;;  %v337_v31 = vld [vmem:[%s1129_s28 + $0x1f0] sm:$0xff] }
  0x23   : > { %336 = vst [vmem:[%s1134_s29 + $0xf0] sm:$0xff] %v335_v30  ;;  %338 = vst [vmem:[%s1134_s29 + $0xf8] sm:$0xff] %v337_v31 }
  0x24 PF: > { %p881_p8 = scmp.ge.s32.totalorder %s1059_s16, 1  ;;  %p351_p9 = scmp.lt.s32.totalorder %s1059_s16, 3 }
  0x26   : > { %p352_p10 = pnand %p881_p8, %p351_p9 }
  0x27   : > { %s358_s30 = sand.u32 (!%p352_p10), 1, %s1043_s12   ;;  %s884_s10 = sshll.u32 (!%p352_p10), %s1051_s14, 1 }
  0x28   : > { %355 = sbr.rel (%p352_p10) target bundleno = 322 (0x142), region = 66  ;;  %s882_s4 = sshll.u32 (!%p352_p10), %s358_s30, 8 }
  0x29   : > { %s1205_s7 = scalar_lea.vmem (!%p352_p10), [#allocation3], %s882_s4  ;;  %p409_p11 = scmp.lt.s32.totalorder (!%p352_p10), %s884_s10, 3 }
  0x2a   : > { %s883_s20 = sshll.u32 (!%p352_p10), %s358_s30, 4 }
  0x2b   : > { %s393_s23 = scalar_lea.vmem (!%p352_p10), [#allocation4], %s883_s20 }
  0x2d   : > { %v1020_v32 = vld [vmem:[%s1269_s0 + $0x4] ss:$8 sps:$4 sm:$0xff]   ;;  %v970_v33 = vld [vmem:[%s1205_s7 + $0x74] ss:$8 sps:$4 sm:$0xff]   ;;  %v972_v34 = vld [vmem:[%s1205_s7 + $0x70] ss:$8 sps:$4 sm:$0xff]   ;;  %v691_v2 = vlaneseq }
  0x2e   : > { %663 = vmatprep.mubr.bf16.mxu0 %v1020_v32  ;;  %631 = vmatprep.subr.bf16.mxu0 %v970_v33  ;;  %v973_v35 = vld [vmem:[%s1205_s7 + $0x64] ss:$8 sps:$4 sm:$0xff]   ;;  %v975_v36 = vld [vmem:[%s1205_s7 + $0x60] ss:$8 sps:$4 sm:$0xff]   ;;  %v976_v37 = vld [vmem:[%s1205_s7 + $0x54] ss:$8 sps:$4 sm:$0xff]  }
  0x2f   : > { %632 = vmatpush1.bf16.msra.mxu0 %v972_v34  ;;  %v978_v38 = vld [vmem:[%s1205_s7 + $0x50] ss:$8 sps:$4 sm:$0xff]   ;;  %v979_v39 = vld [vmem:[%s1205_s7 + $0x44] ss:$8 sps:$4 sm:$0xff]   ;;  %v981_v40 = vld [vmem:[%s1205_s7 + $0x40] ss:$8 sps:$4 sm:$0xff]  }
  0x30   : > { %633 = vmatprep.subr.bf16.mxu0 %v973_v35  ;;  %v982_v41 = vld [vmem:[%s1205_s7 + $0x34] ss:$8 sps:$4 sm:$0xff]   ;;  %v984_v42 = vld [vmem:[%s1205_s7 + $0x30] ss:$8 sps:$4 sm:$0xff]   ;;  %v985_v43 = vld [vmem:[%s1205_s7 + $0x24] ss:$8 sps:$4 sm:$0xff]  }
  0x31   : > { %v987_v44 = vld [vmem:[%s1205_s7 + $0x20] ss:$8 sps:$4 sm:$0xff]   ;;  %v988_v45 = vld [vmem:[%s1205_s7 + $0x14] ss:$8 sps:$4 sm:$0xff]   ;;  %v990_v46 = vld [vmem:[%s1205_s7 + $0x10] ss:$8 sps:$4 sm:$0xff]  }
  0x32   : > { %v991_v47 = vld [vmem:[%s1205_s7 + $0x4] ss:$8 sps:$4 sm:$0xff]   ;;  %v993_v48 = vld [vmem:[%s1205_s7] ss:$8 sps:$4 sm:$0xff]   ;;  %v994_v49 = vld [vmem:[%s1205_s7 + $0xf4] ss:$8 sps:$4 sm:$0xff]  }
  0x33   : > { %634 = vmatpush1.bf16.msra.mxu0 %v975_v36  ;;  %v996_v50 = vld [vmem:[%s1205_s7 + $0xf0] ss:$8 sps:$4 sm:$0xff]   ;;  %v997_v51 = vld [vmem:[%s1205_s7 + $0xe4] ss:$8 sps:$4 sm:$0xff]   ;;  %v999_v52 = vld [vmem:[%s1205_s7 + $0xe0] ss:$8 sps:$4 sm:$0xff]  }
  0x34   : > { %635 = vmatprep.subr.bf16.mxu0 %v976_v37  ;;  %v1000_v53 = vld [vmem:[%s1205_s7 + $0xd4] ss:$8 sps:$4 sm:$0xff]   ;;  %v1002_v54 = vld [vmem:[%s1205_s7 + $0xd0] ss:$8 sps:$4 sm:$0xff]   ;;  %v1003_v55 = vld [vmem:[%s1205_s7 + $0xc4] ss:$8 sps:$4 sm:$0xff]  }
  0x35   : > { %v1005_v56 = vld [vmem:[%s1205_s7 + $0xc0] ss:$8 sps:$4 sm:$0xff]   ;;  %v1006_v57 = vld [vmem:[%s1205_s7 + $0xb4] ss:$8 sps:$4 sm:$0xff]   ;;  %v1008_v58 = vld [vmem:[%s1205_s7 + $0xb0] ss:$8 sps:$4 sm:$0xff]  }
  0x36   : > { %v1009_v59 = vld [vmem:[%s1205_s7 + $0xa4] ss:$8 sps:$4 sm:$0xff]   ;;  %v1011_v60 = vld [vmem:[%s1205_s7 + $0xa0] ss:$8 sps:$4 sm:$0xff]   ;;  %v1012_v61 = vld [vmem:[%s1205_s7 + $0x94] ss:$8 sps:$4 sm:$0xff]  }
  0x37   : > { %636 = vmatpush1.bf16.msra.mxu0 %v978_v38  ;;  %v1014_v62 = vld [vmem:[%s1205_s7 + $0x90] ss:$8 sps:$4 sm:$0xff]   ;;  %v1015_v63 = vld [vmem:[%s1205_s7 + $0x84] ss:$8 sps:$4 sm:$0xff]   ;;  %v1017_v0 = vld [vmem:[%s1205_s7 + $0x80] ss:$8 sps:$4 sm:$0xff]  }
  0x38   : > { %637 = vmatprep.subr.bf16.mxu0 %v979_v39  ;;  %v1018_v1 = vld [vmem:[%s1269_s0] ss:$8 sps:$4 sm:$0xff]   ;;  %s1281_s10 = smov (!%p409_p11, %s884_s10), 3  ;;  %v692_v3 = vshrl.u32 %v691_v2, 7  ;;  %s929_s24 = sshll.u32 (%p1116_p6), %s1051_s14, 3 }
  0x39   : > { %s411_s19 = scalar_lea.vmem %s1271_s2, %s1281_s10  ;;  %s731_s26 = scalar_lea.vmem (%p1116_p6), %s1272_s3, %s929_s24 }
  0x3a   : > { %v693_v4 = vsub.s32 0, %v692_v3  ;;  %v697_v5 = vsub.s32 1, %v692_v3  ;;  %v689_v6 = vld [vmem:[%s411_s19] sm:$0x3] }
  0x3b   : > { %638 = vmatpush1.bf16.msra.mxu0 %v981_v40 }
  0x3c   : > { %639 = vmatprep.subr.bf16.mxu0 %v982_v41  ;;  %v694_v7 = vrot.slane %v689_v6, %v693_v4  ;;  %v698_v8 = vrot.slane %v689_v6, %v697_v5 }
  0x3f   : > { %640 = vmatpush1.bf16.msra.mxu0 %v984_v42 }
  0x40   : > { %641 = vmatprep.subr.bf16.mxu0 %v985_v43 }
  0x43   : > { %642 = vmatpush1.bf16.msra.mxu0 %v987_v44 }
  0x44   : > { %643 = vmatprep.subr.bf16.mxu0 %v988_v45 }
  0x47   : > { %644 = vmatpush1.bf16.msra.mxu0 %v990_v46 }
  0x48   : > { %645 = vmatprep.subr.bf16.mxu0 %v991_v47 }
  0x4b   : > { %646 = vmatpush1.bf16.msra.mxu0 %v993_v48 }
  0x4c   : > { %647 = vmatprep.subr.bf16.mxu0 %v994_v49 }
  0x4f   : > { %648 = vmatpush2.bf16.msra.mxu0 %v996_v50 }
  0x50   : > { %649 = vmatprep.subr.bf16.mxu0 %v997_v51 }
  0x53   : > { %650 = vmatpush2.bf16.msra.mxu0 %v999_v52 }
  0x54   : > { %651 = vmatprep.subr.bf16.mxu0 %v1000_v53 }
  0x57   : > { %652 = vmatpush2.bf16.msra.mxu0 %v1002_v54 }
  0x58   : > { %653 = vmatprep.subr.bf16.mxu0 %v1003_v55 }
  0x5b   : > { %654 = vmatpush2.bf16.msra.mxu0 %v1005_v56 }
  0x5c   : > { %655 = vmatprep.subr.bf16.mxu0 %v1006_v57 }
  0x5f   : > { %656 = vmatpush2.bf16.msra.mxu0 %v1008_v58 }
  0x60   : > { %657 = vmatprep.subr.bf16.mxu0 %v1009_v59 }
  0x63   : > { %658 = vmatpush2.bf16.msra.mxu0 %v1011_v60 }
  0x64   : > { %659 = vmatprep.subr.bf16.mxu0 %v1012_v61 }
  0x67   : > { %660 = vmatpush2.bf16.msra.mxu0 %v1014_v62 }
  0x68   : > { %661 = vmatprep.subr.bf16.mxu0 %v1015_v63 }
  0x6b   : > { %662 = vmatpush2.bf16.msra.mxu0 %v1017_v0 }
  0x6e   : > { %664 = vmatmul.mubr.bf16.vlgmr.msra.gmra.mxu0 %v1018_v1 }
 0x12e   : > { %v665_v9 = vpop.f32.mrf.mxu0 }
 0x12f   : > { %v701_v11 = vadd.f32 %v694_v7, %v665_v9 }
 0x130   : > { %v667_v10 = vpop.f32.mrf.mxu0 }
 0x131   : > { %v702_v12 = vadd.f32 %v698_v8, %v667_v10 }
 0x132   : > { %v669_v13 = vpop.f32.mrf.mxu0 }
 0x133   : > { %v927_v14 = vpack.c.bf16 %v702_v12, %v701_v11  ;;  %v703_v16 = vadd.f32 %v694_v7, %v669_v13 }
 0x134   : > { %v671_v15 = vpop.f32.mrf.mxu0 }
 0x135   : > { %717 = vst [vmem:[%s393_s23] sm:$0xff] %v927_v14  ;;  %v704_v17 = vadd.f32 %v698_v8, %v671_v15  ;;  %725 = sbr.rel (!%p1116_p6) target bundleno = 322 (0x142), region = 82 }
 0x137   : > { %v928_v18 = vpack.c.bf16 %v704_v17, %v703_v16 }
 0x139   : > { %718 = vst [vmem:[%s393_s23 + $0x8] sm:$0xff] %v928_v18 }
 0x13c   : > { %v762_v19 = vld [vmem:[%s393_s23] sm:$0xff] }
 0x13d   : > { %763 = vst [vmem:[%s731_s26] sm:$0xff] %v762_v19 }
 0x140   : > { %v764_v20 = vld [vmem:[%s393_s23 + $0x8] sm:$0xff] }
 0x141   : > { %765 = vst [vmem:[%s731_s26 + $0x10] sm:$0xff] %v764_v20 }
 0x142 PF: > { %s13_s16 = sadd.s32 1, %s1059_s16   ;;  %s1274_s12 = smov %s1047_s13 }
 0x143   : > { %p10_p12 = scmp.ge.s32.totalorder %s13_s16, 4   ;;  %s1275_s13 = smov %s1121_s22 }
 0x144   : > { %s1276_s14 = smov %s1055_s15  ;;  %s1277_s15 = smov %s1279_s17 }
 0x145   :  { %12 = sbr.rel (!%p10_p12) target bundleno = 3 (0x3), region = 157 }

// kernel: resnet_forward.26
= control target key start
LH: loop header
LB: loop body
LE: loop exit
PB: predicated region body
PF: predicated region fallthrough
CT: control target
= control target key end

     0   :  { %s2209_s0 = inlined_call_operand.vmem [shape: bf16[16,4608], index: 0, kind: input, shape index: {}]   ;;  %s2210_s1 = inlined_call_operand.vmem [shape: bf16[4608,512], index: 1, kind: input, shape index: {}]   ;;  %s2211_s2 = inlined_call_operand.vmem [shape: f32[1,512], index: 2, kind: input, shape index: {}]   ;;  %s2212_s3 = inlined_call_operand.vmem [shape: bf16[16,512], index: 3, kind: input, shape index: {}]   ;;  %s2213_s4 = inlined_call_operand.vmem [shape: bf16[16,512], index: 4, kind: output, shape index: {}]  }
   0x1   :  { %2216 = sst [smem:[#allocation10_spill]] %s2209_s0 }
   0x2   :  { %s1802_s15 = smov 0   ;;  %s1804_s16 = smov 0  }
   0x3   :  { %s1806_s17 = smov 0   ;;  %s1808_s18 = smov 0  }
   0x4   :  { %s1810_s19 = smov 0   ;;  %s1812_s20 = smov 0  }
   0x5   :  { %s1814_s21 = smov 0   ;;  %s1816_s22 = smov 0  }
   0x6   :  { %s1818_s23 = smov 0   ;;  %s1820_s24 = smov 0  }
   0x7   :  { %s1822_s25 = smov 0  }
   0x8 LB: > { %s1393_s26 = sadd.s32 4294967295, %s1774_s25   ;;  %s26_s27 = sadd.s32 1, %s1766_s23  ;;  %s1774_s25 = sphi %s1822_s25, %s14_s25   ;;  %s1770_s24 = sphi %s1820_s24, %s2237_s24   ;;  %s1766_s23 = sphi %s1818_s23, %s2236_s23   ;;  %s1762_s22 = sphi %s1816_s22, %s2235_s22   ;;  %s1758_s21 = sphi %s1814_s21, %s2234_s21   ;;  %s1754_s20 = sphi %s1812_s20, %s2233_s20   ;;  %s1750_s19 = sphi %s1810_s19, %s2232_s19   ;;  %s1746_s18 = sphi %s1808_s18, %s2231_s18   ;;  %s1742_s17 = sphi %s1806_s17, %s2230_s17   ;;  %s1738_s16 = sphi %s1804_s16, %s2229_s16   ;;  %s1734_s15 = sphi %s1802_s15, %s2228_s15  }
   0x9   : > { %p27_p0 = scmp.ge.s32.totalorder %s26_s27, 9  ;;  %s29_s28 = sadd.s32 1, %s1770_s24 }
   0xa   : > { %s42_s29 = sadd.s32 1, %s1754_s20  ;;  %p49_p1 = scmp.ne.s32.totalorder %s1754_s20, %s1750_s19 }
   0xb   : > { %s2239_s27 = smov (%p27_p0, %s26_s27), 0  ;;  %s2241_s28 = smov (!%p27_p0, %s29_s28), %s1770_s24 }
   0xc   : > { %2217 = sst [smem:[#allocation7_spill]] %s2239_s27  ;;  %s38_s30 = ssub.s32 %s1766_s23, %s2239_s27 }
   0xd   : > { %p50_p2 = scmp.eq.s32.totalorder %s1774_s25, 0  ;;  %p31_p3 = scmp.ge.s32.totalorder %s2241_s28, 2 }
   0xe   : > { %p40_p4 = scmp.eq.s32.totalorder %s38_s30, 0  ;;  %s70_s6 = sadd.s32 1, %s1746_s18 }
   0xf   : > { %p1871_p5 = por %p50_p2, %p49_p1  ;;  %s2243_s28 = smov (%p31_p3, %s2241_s28), 0 }
  0x10   : > { %2219 = sst [smem:[#allocation8_spill]] %s2243_s28  ;;  %s66_s8 = ssub.s32 %s1770_s24, %s2243_s28 }
  0x11   : > { %s1879_s7 = scalar_select %p40_p4, %s1754_s20, %s42_s29  }
  0x12   : > { %p77_p6 = scmp.ne.s32.totalorder %s1746_s18, %s1742_s17  ;;  %s67_s9 = sor.u32 %s66_s8, %s38_s30 }
  0x13   : > { %2220 = sst [smem:[#allocation9_spill]] %s1879_s7  ;;  %p122_p7 = scmp.eq.s32.totalorder %s66_s8, 0 }
  0x14   : > { %p68_p8 = scmp.eq.s32.totalorder %s67_s9, 0  ;;  %p1887_p9 = por %p77_p6, %p50_p2 }
  0x15   : > { %s124_s11 = sadd.s32 1, %s1738_s16  ;;  %p131_p10 = scmp.ne.s32.totalorder %s1738_s16, %s1734_s15 }
  0x16   : > { %s1895_s12 = scalar_select %p68_p8, %s1746_s18, %s70_s6  }
  0x17   : > { %s1898_s13 = scalar_select %p122_p7, %s1738_s16, %s124_s11  }
  0x18   : > { %p1902_p11 = por %p131_p10, %p50_p2  ;;  %p163_p12 = scmp.eq.s32.totalorder %s1393_s26, 17 }
  0x19   : > { %p1396_p0 = scmp.ge.s32.totalorder %s1774_s25, 18 }
  0x1a   : > { %p1906_p13 = por %p163_p12, %p131_p10 }
  0x1b   : > { %185 = sbr.rel (%p1396_p0) target bundleno = 88 (0x58), region = 16 }
  0x20   : > { %188 = sbr.rel (!%p1871_p5) target bundleno = 44 (0x2c), region = 20  ;;  %s190_s30 = sand.u32 (%p1871_p5), 1, %s1754_s20  }
  0x21   : > { %s1491_s6 = sshll.u32 (%p1871_p5), %s1766_s23, 4  ;;  %s1397_s8 = sshll.u32 (%p1871_p5), %s190_s30, 5 }
  0x22   : > { %s2224_s0 = sld [smem:[#allocation10_spill]] (%p1871_p5)  ;;  %s192_s26 = scalar_lea.vmem (%p1871_p5), [#allocation3], %s1397_s8 }
  0x28   : > { %s198_s28 = scalar_lea.vmem %s2224_s0, %s1491_s6 }
  0x29   : > { %v211_v0 = vld [vmem:[%s198_s28] sm:$0xff]  ;;  %v213_v1 = vld [vmem:[%s198_s28 + $0x8] sm:$0xff]  ;;  %v215_v2 = vld [vmem:[%s198_s28 + $0x90] sm:$0xff] }
  0x2a   : > { %212 = vst [vmem:[%s192_s26] sm:$0xff] %v211_v0  ;;  %214 = vst [vmem:[%s192_s26 + $0x8] sm:$0xff] %v213_v1  ;;  %v217_v3 = vld [vmem:[%s198_s28 + $0x98] sm:$0xff] }
  0x2b   : > { %216 = vst [vmem:[%s192_s26 + $0x10] sm:$0xff] %v215_v2  ;;  %218 = vst [vmem:[%s192_s26 + $0x18] sm:$0xff] %v217_v3 }
  0x2c PF: > { %224 = sbr.rel (!%p1887_p9) target bundleno = 83 (0x53), region = 43  ;;  %s226_s5 = sand.u32 (%p1887_p9), 1, %s1746_s18  }
  0x2d   : > { %s1402_s30 = sshll.u32 (%p1887_p9), %s1770_s24, 1  ;;  %s1400_s9 = sshll.u32 (%p1887_p9), %s226_s5, 9 }
  0x2e   : > { %s1492_s6 = sshll.u32 (%p1887_p9), %s1766_s23, 8  ;;  %s1931_s28 = scalar_lea.vmem (%p1887_p9), [#allocation4], %s1400_s9 }
  0x2f   : > { %s232_s11 = sadd.s32 (%p1887_p9), %s1492_s6, %s1402_s30 }
  0x30   : > { %s1404_s0 = sshll.u32 (%p1887_p9), %s232_s11, 2 }
  0x31   : > { %s1926_s7 = scalar_lea.vmem %s2210_s1, %s1404_s0 }
  0x32   : > { %v389_v4 = vld [vmem:[%s1926_s7] sm:$0xff]  ;;  %v391_v5 = vld [vmem:[%s1926_s7 + $0x10] sm:$0xff] }
  0x33   : > { %v393_v6 = vld [vmem:[%s1926_s7 + $0x20] sm:$0xff]  ;;  %390 = vst [vmem:[%s1931_s28] sm:$0xff] %v389_v4  ;;  %392 = vst [vmem:[%s1931_s28 + $0x8] sm:$0xff] %v391_v5  ;;  %v395_v7 = vld [vmem:[%s1926_s7 + $0x30] sm:$0xff] }
  0x34   : > { %394 = vst [vmem:[%s1931_s28 + $0x10] sm:$0xff] %v393_v6  ;;  %v397_v8 = vld [vmem:[%s1926_s7 + $0x40] sm:$0xff]  ;;  %v399_v9 = vld [vmem:[%s1926_s7 + $0x50] sm:$0xff]  ;;  %396 = vst [vmem:[%s1931_s28 + $0x18] sm:$0xff] %v395_v7 }
  0x35   : > { %398 = vst [vmem:[%s1931_s28 + $0x20] sm:$0xff] %v397_v8  ;;  %400 = vst [vmem:[%s1931_s28 + $0x28] sm:$0xff] %v399_v9  ;;  %v401_v10 = vld [vmem:[%s1926_s7 + $0x60] sm:$0xff]  ;;  %v403_v11 = vld [vmem:[%s1926_s7 + $0x70] sm:$0xff] }
  0x36   : > { %v405_v12 = vld [vmem:[%s1926_s7 + $0x80] sm:$0xff]  ;;  %402 = vst [vmem:[%s1931_s28 + $0x30] sm:$0xff] %v401_v10  ;;  %404 = vst [vmem:[%s1931_s28 + $0x38] sm:$0xff] %v403_v11  ;;  %v407_v13 = vld [vmem:[%s1926_s7 + $0x90] sm:$0xff] }
  0x37   : > { %406 = vst [vmem:[%s1931_s28 + $0x40] sm:$0xff] %v405_v12  ;;  %v409_v14 = vld [vmem:[%s1926_s7 + $0xa0] sm:$0xff]  ;;  %v411_v15 = vld [vmem:[%s1926_s7 + $0xb0] sm:$0xff]  ;;  %408 = vst [vmem:[%s1931_s28 + $0x48] sm:$0xff] %v407_v13 }
  0x38   : > { %410 = vst [vmem:[%s1931_s28 + $0x50] sm:$0xff] %v409_v14  ;;  %412 = vst [vmem:[%s1931_s28 + $0x58] sm:$0xff] %v411_v15  ;;  %v413_v16 = vld [vmem:[%s1926_s7 + $0xc0] sm:$0xff]  ;;  %v415_v17 = vld [vmem:[%s1926_s7 + $0xd0] sm:$0xff] }
  0x39   : > { %v417_v18 = vld [vmem:[%s1926_s7 + $0xe0] sm:$0xff]  ;;  %414 = vst [vmem:[%s1931_s28 + $0x60] sm:$0xff] %v413_v16  ;;  %416 = vst [vmem:[%s1931_s28 + $0x68] sm:$0xff] %v415_v17  ;;  %v419_v19 = vld [vmem:[%s1926_s7 + $0xf0] sm:$0xff] }
  0x3a   : > { %418 = vst [vmem:[%s1931_s28 + $0x70] sm:$0xff] %v417_v18  ;;  %v421_v20 = vld [vmem:[%s1926_s7 + $0x100] sm:$0xff]  ;;  %v423_v21 = vld [vmem:[%s1926_s7 + $0x110] sm:$0xff]  ;;  %420 = vst [vmem:[%s1931_s28 + $0x78] sm:$0xff] %v419_v19 }
  0x3b   : > { %422 = vst [vmem:[%s1931_s28 + $0x80] sm:$0xff] %v421_v20  ;;  %424 = vst [vmem:[%s1931_s28 + $0x88] sm:$0xff] %v423_v21  ;;  %v425_v22 = vld [vmem:[%s1926_s7 + $0x120] sm:$0xff]  ;;  %v427_v23 = vld [vmem:[%s1926_s7 + $0x130] sm:$0xff] }
  0x3c   : > { %v429_v24 = vld [vmem:[%s1926_s7 + $0x140] sm:$0xff]  ;;  %426 = vst [vmem:[%s1931_s28 + $0x90] sm:$0xff] %v425_v22  ;;  %428 = vst [vmem:[%s1931_s28 + $0x98] sm:$0xff] %v427_v23  ;;  %v431_v25 = vld [vmem:[%s1926_s7 + $0x150] sm:$0xff] }
  0x3d   : > { %430 = vst [vmem:[%s1931_s28 + $0xa0] sm:$0xff] %v429_v24  ;;  %v433_v26 = vld [vmem:[%s1926_s7 + $0x160] sm:$0xff]  ;;  %v435_v27 = vld [vmem:[%s1926_s7 + $0x170] sm:$0xff]  ;;  %432 = vst [vmem:[%s1931_s28 + $0xa8] sm:$0xff] %v431_v25 }
  0x3e   : > { %434 = vst [vmem:[%s1931_s28 + $0xb0] sm:$0xff] %v433_v26  ;;  %436 = vst [vmem:[%s1931_s28 + $0xb8] sm:$0xff] %v435_v27  ;;  %v437_v28 = vld [vmem:[%s1926_s7 + $0x180] sm:$0xff]  ;;  %v439_v29 = vld [vmem:[%s1926_s7 + $0x190] sm:$0xff] }
  0x3f   : > { %v441_v30 = vld [vmem:[%s1926_s7 + $0x1a0] sm:$0xff]  ;;  %438 = vst [vmem:[%s1931_s28 + $0xc0] sm:$0xff] %v437_v28  ;;  %440 = vst [vmem:[%s1931_s28 + $0xc8] sm:$0xff] %v439_v29  ;;  %v443_v31 = vld [vmem:[%s1926_s7 + $0x1b0] sm:$0xff] }
  0x40   : > { %442 = vst [vmem:[%s1931_s28 + $0xd0] sm:$0xff] %v441_v30  ;;  %v445_v32 = vld [vmem:[%s1926_s7 + $0x1c0] sm:$0xff]  ;;  %v447_v33 = vld [vmem:[%s1926_s7 + $0x1d0] sm:$0xff]  ;;  %444 = vst [vmem:[%s1931_s28 + $0xd8] sm:$0xff] %v443_v31 }
  0x41   : > { %446 = vst [vmem:[%s1931_s28 + $0xe0] sm:$0xff] %v445_v32  ;;  %448 = vst [vmem:[%s1931_s28 + $0xe8] sm:$0xff] %v447_v33  ;;  %v449_v34 = vld [vmem:[%s1926_s7 + $0x1e0] sm:$0xff]  ;;  %v451_v35 = vld [vmem:[%s1926_s7 + $0x1f0] sm:$0xff] }
  0x42   : > { %v453_v36 = vld [vmem:[%s1926_s7 + $0x200] sm:$0xff]  ;;  %450 = vst [vmem:[%s1931_s28 + $0xf0] sm:$0xff] %v449_v34  ;;  %452 = vst [vmem:[%s1931_s28 + $0xf8] sm:$0xff] %v451_v35  ;;  %v455_v37 = vld [vmem:[%s1926_s7 + $0x210] sm:$0xff] }
  0x43   : > { %454 = vst [vmem:[%s1931_s28 + $0x100] sm:$0xff] %v453_v36  ;;  %v457_v38 = vld [vmem:[%s1926_s7 + $0x220] sm:$0xff]  ;;  %v459_v39 = vld [vmem:[%s1926_s7 + $0x230] sm:$0xff]  ;;  %456 = vst [vmem:[%s1931_s28 + $0x108] sm:$0xff] %v455_v37 }
  0x44   : > { %458 = vst [vmem:[%s1931_s28 + $0x110] sm:$0xff] %v457_v38  ;;  %460 = vst [vmem:[%s1931_s28 + $0x118] sm:$0xff] %v459_v39  ;;  %v461_v40 = vld [vmem:[%s1926_s7 + $0x240] sm:$0xff]  ;;  %v463_v41 = vld [vmem:[%s1926_s7 + $0x250] sm:$0xff] }
  0x45   : > { %v465_v42 = vld [vmem:[%s1926_s7 + $0x260] sm:$0xff]  ;;  %462 = vst [vmem:[%s1931_s28 + $0x120] sm:$0xff] %v461_v40  ;;  %464 = vst [vmem:[%s1931_s28 + $0x128] sm:$0xff] %v463_v41  ;;  %v467_v43 = vld [vmem:[%s1926_s7 + $0x270] sm:$0xff] }
  0x46   : > { %466 = vst [vmem:[%s1931_s28 + $0x130] sm:$0xff] %v465_v42  ;;  %v469_v44 = vld [vmem:[%s1926_s7 + $0x280] sm:$0xff]  ;;  %v471_v45 = vld [vmem:[%s1926_s7 + $0x290] sm:$0xff]  ;;  %468 = vst [vmem:[%s1931_s28 + $0x138] sm:$0xff] %v467_v43 }
  0x47   : > { %470 = vst [vmem:[%s1931_s28 + $0x140] sm:$0xff] %v469_v44  ;;  %472 = vst [vmem:[%s1931_s28 + $0x148] sm:$0xff] %v471_v45  ;;  %v473_v46 = vld [vmem:[%s1926_s7 + $0x2a0] sm:$0xff]  ;;  %v475_v47 = vld [vmem:[%s1926_s7 + $0x2b0] sm:$0xff] }
  0x48   : > { %v477_v48 = vld [vmem:[%s1926_s7 + $0x2c0] sm:$0xff]  ;;  %474 = vst [vmem:[%s1931_s28 + $0x150] sm:$0xff] %v473_v46  ;;  %476 = vst [vmem:[%s1931_s28 + $0x158] sm:$0xff] %v475_v47  ;;  %v479_v49 = vld [vmem:[%s1926_s7 + $0x2d0] sm:$0xff] }
  0x49   : > { %478 = vst [vmem:[%s1931_s28 + $0x160] sm:$0xff] %v477_v48  ;;  %v481_v50 = vld [vmem:[%s1926_s7 + $0x2e0] sm:$0xff]  ;;  %v483_v51 = vld [vmem:[%s1926_s7 + $0x2f0] sm:$0xff]  ;;  %480 = vst [vmem:[%s1931_s28 + $0x168] sm:$0xff] %v479_v49 }
  0x4a   : > { %482 = vst [vmem:[%s1931_s28 + $0x170] sm:$0xff] %v481_v50  ;;  %484 = vst [vmem:[%s1931_s28 + $0x178] sm:$0xff] %v483_v51  ;;  %v485_v52 = vld [vmem:[%s1926_s7 + $0x300] sm:$0xff]  ;;  %v487_v53 = vld [vmem:[%s1926_s7 + $0x310] sm:$0xff] }
  0x4b   : > { %v489_v54 = vld [vmem:[%s1926_s7 + $0x320] sm:$0xff]  ;;  %486 = vst [vmem:[%s1931_s28 + $0x180] sm:$0xff] %v485_v52  ;;  %488 = vst [vmem:[%s1931_s28 + $0x188] sm:$0xff] %v487_v53  ;;  %v491_v55 = vld [vmem:[%s1926_s7 + $0x330] sm:$0xff] }
  0x4c   : > { %490 = vst [vmem:[%s1931_s28 + $0x190] sm:$0xff] %v489_v54  ;;  %v493_v56 = vld [vmem:[%s1926_s7 + $0x340] sm:$0xff]  ;;  %v495_v57 = vld [vmem:[%s1926_s7 + $0x350] sm:$0xff]  ;;  %492 = vst [vmem:[%s1931_s28 + $0x198] sm:$0xff] %v491_v55 }
  0x4d   : > { %494 = vst [vmem:[%s1931_s28 + $0x1a0] sm:$0xff] %v493_v56  ;;  %496 = vst [vmem:[%s1931_s28 + $0x1a8] sm:$0xff] %v495_v57  ;;  %v497_v58 = vld [vmem:[%s1926_s7 + $0x360] sm:$0xff]  ;;  %v499_v59 = vld [vmem:[%s1926_s7 + $0x370] sm:$0xff] }
  0x4e   : > { %v501_v60 = vld [vmem:[%s1926_s7 + $0x380] sm:$0xff]  ;;  %498 = vst [vmem:[%s1931_s28 + $0x1b0] sm:$0xff] %v497_v58  ;;  %500 = vst [vmem:[%s1931_s28 + $0x1b8] sm:$0xff] %v499_v59  ;;  %v503_v61 = vld [vmem:[%s1926_s7 + $0x390] sm:$0xff] }
  0x4f   : > { %502 = vst [vmem:[%s1931_s28 + $0x1c0] sm:$0xff] %v501_v60  ;;  %v505_v62 = vld [vmem:[%s1926_s7 + $0x3a0] sm:$0xff]  ;;  %v507_v63 = vld [vmem:[%s1926_s7 + $0x3b0] sm:$0xff]  ;;  %504 = vst [vmem:[%s1931_s28 + $0x1c8] sm:$0xff] %v503_v61 }
  0x50   : > { %506 = vst [vmem:[%s1931_s28 + $0x1d0] sm:$0xff] %v505_v62  ;;  %508 = vst [vmem:[%s1931_s28 + $0x1d8] sm:$0xff] %v507_v63  ;;  %v509_v0 = vld [vmem:[%s1926_s7 + $0x3c0] sm:$0xff]  ;;  %v511_v1 = vld [vmem:[%s1926_s7 + $0x3d0] sm:$0xff] }
  0x51   : > { %v513_v2 = vld [vmem:[%s1926_s7 + $0x3e0] sm:$0xff]  ;;  %510 = vst [vmem:[%s1931_s28 + $0x1e0] sm:$0xff] %v509_v0  ;;  %512 = vst [vmem:[%s1931_s28 + $0x1e8] sm:$0xff] %v511_v1  ;;  %v515_v3 = vld [vmem:[%s1926_s7 + $0x3f0] sm:$0xff] }
  0x52   : > { %514 = vst [vmem:[%s1931_s28 + $0x1f0] sm:$0xff] %v513_v2  ;;  %516 = vst [vmem:[%s1931_s28 + $0x1f8] sm:$0xff] %v515_v3 }
  0x53 PF: > { %530 = sbr.rel (!%p1902_p11) target bundleno = 88 (0x58), region = 85  ;;  %s532_s0 = sand.u32 (%p1902_p11), 1, %s1738_s16  }
  0x54   : > { %s1493_s27 = sshll.u32 (%p1902_p11), %s1770_s24, 3  ;;  %s1405_s10 = sshll.u32 (%p1902_p11), %s532_s0, 4 }
  0x55   : > { %s540_s30 = scalar_lea.vmem (%p1902_p11), %s2212_s3, %s1493_s27  ;;  %s534_s9 = scalar_lea.vmem (%p1902_p11), [#allocation5], %s1405_s10 }
  0x56   : > { %v571_v4 = vld [vmem:[%s540_s30] sm:$0xff] (%p1902_p11)  ;;  %v573_v5 = vld [vmem:[%s540_s30 + $0x10] sm:$0xff] (%p1902_p11) }
  0x57   : > { %572 = vst [vmem:[%s534_s9] sm:$0xff] (%p1902_p11), %v571_v4  ;;  %574 = vst [vmem:[%s534_s9 + $0x8] sm:$0xff] (%p1902_p11), %v573_v5 }
  0x58 PF: > { %p1408_p1 = scmp.ge.s32.totalorder %s1774_s25, 1  ;;  %p579_p2 = scmp.lt.s32.totalorder %s1774_s25, 19 }
  0x5a   : > { %p580_p3 = pnand %p1408_p1, %p579_p2 }
  0x5b   : > { %s586_s7 = sand.u32 (!%p580_p3), 1, %s1750_s19   ;;  %s593_s14 = sand.u32 (!%p580_p3), 1, %s1742_s17  }
  0x5c   : > { %583 = sbr.rel (%p580_p3) target bundleno = 403 (0x193), region = 123  ;;  %s1409_s6 = sshll.u32 (!%p580_p3), %s586_s7, 5 }
  0x5d   : > { %s1410_s11 = sshll.u32 (!%p580_p3), %s593_s14, 9  ;;  %s600_s8 = sand.u32 (!%p580_p3), 1, %s1734_s15  }
  0x5e   : > { %s1413_s28 = sshll.u32 (!%p580_p3), %s1762_s22, 1  ;;  %s2071_s0 = sshll.u32 (!%p580_p3), %s600_s8, 4 }
  0x5f   : > { %p641_p4 = scmp.lt.s32.totalorder (!%p580_p3), %s1413_s28, 3  ;;  %s2079_s5 = scalar_lea.vmem (!%p580_p3), [#allocation3], %s1409_s6 }
  0x60   : > { %s2081_s19 = scalar_lea.vmem (!%p580_p3), [#allocation4], %s1410_s11  ;;  %s602_s17 = scalar_lea.vmem (!%p580_p3), [#allocation5], %s2071_s0 }
  0x61   : > { %s2245_s28 = smov (!%p641_p4, %s1413_s28), 3  ;;  %s2085_s30 = scalar_lea.vmem [#allocation6], %s2071_s0 }
  0x62   : > { %s643_s26 = scalar_lea.vmem %s2211_s2, %s2245_s28  ;;  %p1414_p5 = scmp.ne.s32.totalorder %s1758_s21, 0 }
  0x64   : > { %652 = sbr.rel (%p1414_p5) target bundleno = 108 (0x6c), region = 139 }
  0x69   : > { %v1776_v6 = vmov 0.0  }
  0x6a   : > { %653 = vst [vmem:[#allocation2 + $0x10] sm:$0xff] %v1776_v6  ;;  %654 = vst [vmem:[#allocation2] sm:$0xff] %v1776_v6 }
  0x6b   : > { %655 = vst [vmem:[#allocation2 + $0x18] sm:$0xff] %v1776_v6  ;;  %656 = vst [vmem:[#allocation2 + $0x8] sm:$0xff] %v1776_v6 }
  0x6c PF: > { %v1586_v7 = vld [vmem:[%s2081_s19 + $0x74] ss:$8 sps:$4 sm:$0xff]   ;;  %v1590_v9 = vld [vmem:[%s2081_s19 + $0x70] ss:$8 sps:$4 sm:$0xff]   ;;  %v1592_v11 = vld [vmem:[%s2081_s19 + $0x64] ss:$8 sps:$4 sm:$0xff]  }
  0x6d   : > { %v1588_v8 = vld [vmem:[%s2081_s19 + $0x174] ss:$8 sps:$4 sm:$0xff]   ;;  %1069 = vmatprep.subr.bf16.mxu0 %v1586_v7  ;;  %v1591_v10 = vld [vmem:[%s2081_s19 + $0x170] ss:$8 sps:$4 sm:$0xff]   ;;  %v1594_v12 = vld [vmem:[%s2081_s19 + $0x164] ss:$8 sps:$4 sm:$0xff]  }
  0x6e   : > { %1112 = vmatprep.subr.bf16.mxu1 %v1588_v8  ;;  %1070 = vmatpush1.bf16.msra.mxu0 %v1590_v9  ;;  %v1596_v13 = vld [vmem:[%s2081_s19 + $0x60] ss:$8 sps:$4 sm:$0xff]   ;;  %v1598_v15 = vld [vmem:[%s2081_s19 + $0x54] ss:$8 sps:$4 sm:$0xff]   ;;  %v1602_v17 = vld [vmem:[%s2081_s19 + $0x50] ss:$8 sps:$4 sm:$0xff]  }
  0x6f   : > { %1113 = vmatpush1.bf16.msra.mxu1 %v1591_v10  ;;  %1071 = vmatprep.subr.bf16.mxu0 %v1592_v11  ;;  %v1597_v14 = vld [vmem:[%s2081_s19 + $0x160] ss:$8 sps:$4 sm:$0xff]   ;;  %v1600_v16 = vld [vmem:[%s2081_s19 + $0x154] ss:$8 sps:$4 sm:$0xff]   ;;  %v1603_v18 = vld [vmem:[%s2081_s19 + $0x150] ss:$8 sps:$4 sm:$0xff]  }
  0x70   : > { %1114 = vmatprep.subr.bf16.mxu1 %v1594_v12  ;;  %v1604_v19 = vld [vmem:[%s2081_s19 + $0x44] ss:$8 sps:$4 sm:$0xff]   ;;  %v1608_v21 = vld [vmem:[%s2081_s19 + $0x40] ss:$8 sps:$4 sm:$0xff]   ;;  %v1610_v23 = vld [vmem:[%s2081_s19 + $0x34] ss:$8 sps:$4 sm:$0xff]  }
  0x71   : > { %v1606_v20 = vld [vmem:[%s2081_s19 + $0x144] ss:$8 sps:$4 sm:$0xff]   ;;  %v1609_v22 = vld [vmem:[%s2081_s19 + $0x140] ss:$8 sps:$4 sm:$0xff]   ;;  %v1612_v24 = vld [vmem:[%s2081_s19 + $0x134] ss:$8 sps:$4 sm:$0xff]  }
  0x72   : > { %1072 = vmatpush1.bf16.msra.mxu0 %v1596_v13  ;;  %v1614_v25 = vld [vmem:[%s2081_s19 + $0x30] ss:$8 sps:$4 sm:$0xff]   ;;  %v1616_v27 = vld [vmem:[%s2081_s19 + $0x24] ss:$8 sps:$4 sm:$0xff]   ;;  %v1620_v29 = vld [vmem:[%s2081_s19 + $0x20] ss:$8 sps:$4 sm:$0xff]  }
  0x73   : > { %1115 = vmatpush1.bf16.msra.mxu1 %v1597_v14  ;;  %1073 = vmatprep.subr.bf16.mxu0 %v1598_v15  ;;  %v1615_v26 = vld [vmem:[%s2081_s19 + $0x130] ss:$8 sps:$4 sm:$0xff]   ;;  %v1618_v28 = vld [vmem:[%s2081_s19 + $0x124] ss:$8 sps:$4 sm:$0xff]   ;;  %v1621_v30 = vld [vmem:[%s2081_s19 + $0x120] ss:$8 sps:$4 sm:$0xff]  }
  0x74   : > { %1116 = vmatprep.subr.bf16.mxu1 %v1600_v16  ;;  %v1622_v31 = vld [vmem:[%s2081_s19 + $0x14] ss:$8 sps:$4 sm:$0xff]   ;;  %v1626_v33 = vld [vmem:[%s2081_s19 + $0x10] ss:$8 sps:$4 sm:$0xff]   ;;  %v1628_v35 = vld [vmem:[%s2081_s19 + $0x4] ss:$8 sps:$4 sm:$0xff]  }
  0x75   : > { %v1624_v32 = vld [vmem:[%s2081_s19 + $0x114] ss:$8 sps:$4 sm:$0xff]   ;;  %v1627_v34 = vld [vmem:[%s2081_s19 + $0x110] ss:$8 sps:$4 sm:$0xff]   ;;  %v1630_v36 = vld [vmem:[%s2081_s19 + $0x104] ss:$8 sps:$4 sm:$0xff]  }
  0x76   : > { %1074 = vmatpush1.bf16.msra.mxu0 %v1602_v17  ;;  %v1632_v37 = vld [vmem:[%s2081_s19] ss:$8 sps:$4 sm:$0xff]   ;;  %v1634_v39 = vld [vmem:[%s2081_s19 + $0xf4] ss:$8 sps:$4 sm:$0xff]   ;;  %v1638_v41 = vld [vmem:[%s2081_s19 + $0xf0] ss:$8 sps:$4 sm:$0xff]  }
  0x77   : > { %1117 = vmatpush1.bf16.msra.mxu1 %v1603_v18  ;;  %1075 = vmatprep.subr.bf16.mxu0 %v1604_v19  ;;  %v1633_v38 = vld [vmem:[%s2081_s19 + $0x100] ss:$8 sps:$4 sm:$0xff]   ;;  %v1636_v40 = vld [vmem:[%s2081_s19 + $0x1f4] ss:$8 sps:$4 sm:$0xff]   ;;  %v1639_v42 = vld [vmem:[%s2081_s19 + $0x1f0] ss:$8 sps:$4 sm:$0xff]  }
  0x78   : > { %1118 = vmatprep.subr.bf16.mxu1 %v1606_v20  ;;  %v1640_v43 = vld [vmem:[%s2081_s19 + $0xe4] ss:$8 sps:$4 sm:$0xff]   ;;  %v1644_v45 = vld [vmem:[%s2081_s19 + $0xe0] ss:$8 sps:$4 sm:$0xff]   ;;  %v1646_v47 = vld [vmem:[%s2081_s19 + $0xd4] ss:$8 sps:$4 sm:$0xff]  }
  0x79   : > { %v1642_v44 = vld [vmem:[%s2081_s19 + $0x1e4] ss:$8 sps:$4 sm:$0xff]   ;;  %v1645_v46 = vld [vmem:[%s2081_s19 + $0x1e0] ss:$8 sps:$4 sm:$0xff]   ;;  %v1648_v48 = vld [vmem:[%s2081_s19 + $0x1d4] ss:$8 sps:$4 sm:$0xff]  }
  0x7a   : > { %1076 = vmatpush1.bf16.msra.mxu0 %v1608_v21  ;;  %v1650_v49 = vld [vmem:[%s2081_s19 + $0xd0] ss:$8 sps:$4 sm:$0xff]   ;;  %v1652_v51 = vld [vmem:[%s2081_s19 + $0xc4] ss:$8 sps:$4 sm:$0xff]   ;;  %v1656_v53 = vld [vmem:[%s2081_s19 + $0xc0] ss:$8 sps:$4 sm:$0xff]  }
  0x7b   : > { %1119 = vmatpush1.bf16.msra.mxu1 %v1609_v22  ;;  %1077 = vmatprep.subr.bf16.mxu0 %v1610_v23  ;;  %v1651_v50 = vld [vmem:[%s2081_s19 + $0x1d0] ss:$8 sps:$4 sm:$0xff]   ;;  %v1654_v52 = vld [vmem:[%s2081_s19 + $0x1c4] ss:$8 sps:$4 sm:$0xff]   ;;  %v1657_v55 = vld [vmem:[%s2081_s19 + $0x1c0] ss:$8 sps:$4 sm:$0xff]  }
  0x7c   : > { %1120 = vmatprep.subr.bf16.mxu1 %v1612_v24  ;;  %v1684_v54 = vld [vmem:[%s2079_s5 + $0x4] ss:$16 sps:$4 sm:$0xff]   ;;  %v1687_v58 = vld [vmem:[%s2079_s5 + $0xc] ss:$16 sps:$4 sm:$0xff]   ;;  %v1662_v59 = vld [vmem:[%s2081_s19 + $0xb0] ss:$8 sps:$4 sm:$0xff]  }
  0x7d   : > { %v1658_v56 = vld [vmem:[%s2081_s19 + $0xb4] ss:$8 sps:$4 sm:$0xff]   ;;  %1101 = vmatprep.mubr.bf16.mxu0 %v1684_v54  ;;  %1144 = vmatprep.mubr.bf16.mxu1 %v1687_v58  ;;  %v1663_v60 = vld [vmem:[%s2081_s19 + $0x1b0] ss:$8 sps:$4 sm:$0xff]   ;;  %v1664_v61 = vld [vmem:[%s2081_s19 + $0xa4] ss:$8 sps:$4 sm:$0xff]  }
  0x7e   : > { %1078 = vmatpush1.bf16.msra.mxu0 %v1614_v25  ;;  %v1660_v57 = vld [vmem:[%s2081_s19 + $0x1b4] ss:$8 sps:$4 sm:$0xff]   ;;  %v1666_v62 = vld [vmem:[%s2081_s19 + $0x1a4] ss:$8 sps:$4 sm:$0xff]   ;;  %v1668_v63 = vld [vmem:[%s2081_s19 + $0xa0] ss:$8 sps:$4 sm:$0xff]  }
  0x7f   : > { %1121 = vmatpush1.bf16.msra.mxu1 %v1615_v26  ;;  %1079 = vmatprep.subr.bf16.mxu0 %v1616_v27  ;;  %v1669_v0 = vld [vmem:[%s2081_s19 + $0x1a0] ss:$8 sps:$4 sm:$0xff]   ;;  %v1670_v1 = vld [vmem:[%s2081_s19 + $0x94] ss:$8 sps:$4 sm:$0xff]   ;;  %v1674_v3 = vld [vmem:[%s2081_s19 + $0x90] ss:$8 sps:$4 sm:$0xff]  }
  0x80   : > { %1122 = vmatprep.subr.bf16.mxu1 %v1618_v28  ;;  %v1672_v2 = vld [vmem:[%s2081_s19 + $0x194] ss:$8 sps:$4 sm:$0xff]   ;;  %v1675_v4 = vld [vmem:[%s2081_s19 + $0x190] ss:$8 sps:$4 sm:$0xff]   ;;  %v1676_v5 = vld [vmem:[%s2081_s19 + $0x84] ss:$8 sps:$4 sm:$0xff]  }
  0x81   : > { %v1678_v6 = vld [vmem:[%s2081_s19 + $0x184] ss:$8 sps:$4 sm:$0xff]   ;;  %v1680_v7 = vld [vmem:[%s2081_s19 + $0x80] ss:$8 sps:$4 sm:$0xff]   ;;  %v657_v12 = vld [vmem:[#allocation2 + $0x10] sm:$0xff]  ;;  %p1483_p6 = scmp.ne.s32.totalorder %s1758_s21, 8 }
  0x82   : > { %1080 = vmatpush1.bf16.msra.mxu0 %v1620_v29  ;;  %v1681_v8 = vld [vmem:[%s2081_s19 + $0x180] ss:$8 sps:$4 sm:$0xff]   ;;  %v659_v21 = vld [vmem:[#allocation2 + $0x18] sm:$0xff] }
  0x83   : > { %1123 = vmatpush1.bf16.msra.mxu1 %v1621_v30  ;;  %1081 = vmatprep.subr.bf16.mxu0 %v1622_v31  ;;  %v1682_v9 = vld [vmem:[%s2079_s5] ss:$16 sps:$4 sm:$0xff]   ;;  %v1685_v10 = vld [vmem:[%s2079_s5 + $0x8] ss:$16 sps:$4 sm:$0xff]  }
  0x84   : > { %1124 = vmatprep.subr.bf16.mxu1 %v1624_v32  ;;  %v658_v16 = vld [vmem:[#allocation2] sm:$0xff]  ;;  %v660_v26 = vld [vmem:[#allocation2 + $0x8] sm:$0xff] }
  0x86   : > { %1082 = vmatpush1.bf16.msra.mxu0 %v1626_v33 }
  0x87   : > { %1125 = vmatpush1.bf16.msra.mxu1 %v1627_v34  ;;  %1083 = vmatprep.subr.bf16.mxu0 %v1628_v35 }
  0x88   : > { %1126 = vmatprep.subr.bf16.mxu1 %v1630_v36 }
  0x8a   : > { %1084 = vmatpush1.bf16.msra.mxu0 %v1632_v37 }
  0x8b   : > { %1127 = vmatpush1.bf16.msra.mxu1 %v1633_v38  ;;  %1085 = vmatprep.subr.bf16.mxu0 %v1634_v39 }
  0x8c   : > { %1128 = vmatprep.subr.bf16.mxu1 %v1636_v40 }
  0x8e   : > { %1086 = vmatpush2.bf16.msra.mxu0 %v1638_v41 }
  0x8f   : > { %1129 = vmatpush2.bf16.msra.mxu1 %v1639_v42  ;;  %1087 = vmatprep.subr.bf16.mxu0 %v1640_v43 }
  0x90   : > { %1130 = vmatprep.subr.bf16.mxu1 %v1642_v44 }
  0x92   : > { %1088 = vmatpush2.bf16.msra.mxu0 %v1644_v45 }
  0x93   : > { %1131 = vmatpush2.bf16.msra.mxu1 %v1645_v46  ;;  %1089 = vmatprep.subr.bf16.mxu0 %v1646_v47 }
  0x94   : > { %1132 = vmatprep.subr.bf16.mxu1 %v1648_v48 }
  0x96   : > { %1090 = vmatpush2.bf16.msra.mxu0 %v1650_v49 }
  0x97   : > { %1133 = vmatpush2.bf16.msra.mxu1 %v1651_v50  ;;  %1091 = vmatprep.subr.bf16.mxu0 %v1652_v51 }
  0x98   : > { %1134 = vmatprep.subr.bf16.mxu1 %v1654_v52 }
  0x9a   : > { %1092 = vmatpush2.bf16.msra.mxu0 %v1656_v53 }
  0x9b   : > { %1135 = vmatpush2.bf16.msra.mxu1 %v1657_v55  ;;  %1093 = vmatprep.subr.bf16.mxu0 %v1658_v56 }
  0x9c   : > { %1136 = vmatprep.subr.bf16.mxu1 %v1660_v57 }
  0x9e   : > { %1094 = vmatpush2.bf16.msra.mxu0 %v1662_v59 }
  0x9f   : > { %1137 = vmatpush2.bf16.msra.mxu1 %v1663_v60  ;;  %1095 = vmatprep.subr.bf16.mxu0 %v1664_v61 }
  0xa0   : > { %1138 = vmatprep.subr.bf16.mxu1 %v1666_v62 }
  0xa2   : > { %1096 = vmatpush2.bf16.msra.mxu0 %v1668_v63 }
  0xa3   : > { %1139 = vmatpush2.bf16.msra.mxu1 %v1669_v0  ;;  %1097 = vmatprep.subr.bf16.mxu0 %v1670_v1 }
  0xa4   : > { %1140 = vmatprep.subr.bf16.mxu1 %v1672_v2 }
  0xa6   : > { %1098 = vmatpush2.bf16.msra.mxu0 %v1674_v3 }
  0xa7   : > { %1141 = vmatpush2.bf16.msra.mxu1 %v1675_v4  ;;  %1099 = vmatprep.subr.bf16.mxu0 %v1676_v5 }
  0xa8   : > { %1142 = vmatprep.subr.bf16.mxu1 %v1678_v6 }
  0xaa   : > { %1100 = vmatpush2.bf16.msra.mxu0 %v1680_v7 }
  0xab   : > { %1143 = vmatpush2.bf16.msra.mxu1 %v1681_v8 }
  0xad   : > { %1102 = vmatmul.mubr.bf16.vlgmr.msra.gmra.mxu0 %v1682_v9 }
  0xae   : > { %1145 = vmatmul.mubr.bf16.vlgmr.msra.gmra.mxu1 %v1685_v10 }
 0x16d   : > { %v1103_v11 = vpop.f32.mrf.mxu0 }
 0x16e   : > { %v1146_v13 = vpop.f32.mrf.mxu1 }
 0x16f   : > { %v1147_v14 = vadd.f32 %v1146_v13, %v1103_v11  ;;  %v1105_v15 = vpop.f32.mrf.mxu0 }
 0x170   : > { %v1148_v17 = vpop.f32.mrf.mxu1 }
 0x171   : > { %v1155_v18 = vadd.f32 %v1147_v14, %v657_v12  ;;  %v1149_v19 = vadd.f32 %v1148_v17, %v1105_v15  ;;  %v1107_v20 = vpop.f32.mrf.mxu0 }
 0x172   : > { %v1150_v22 = vpop.f32.mrf.mxu1 }
 0x173   : > { %1159 = vst [vmem:[#allocation2 + $0x10] sm:$0xff] %v1155_v18  ;;  %v1156_v23 = vadd.f32 %v1149_v19, %v658_v16  ;;  %v1151_v24 = vadd.f32 %v1150_v22, %v1107_v20  ;;  %v1109_v25 = vpop.f32.mrf.mxu0 }
 0x174   : > { %v1152_v27 = vpop.f32.mrf.mxu1 }
 0x175   : > { %1160 = vst [vmem:[#allocation2] sm:$0xff] %v1156_v23  ;;  %v1157_v28 = vadd.f32 %v1151_v24, %v659_v21  ;;  %v1153_v29 = vadd.f32 %v1152_v27, %v1109_v25  ;;  %1166 = sbr.rel (%p1483_p6) target bundleno = 395 (0x18b), region = 143 }
 0x177   : > { %1161 = vst [vmem:[#allocation2 + $0x18] sm:$0xff] %v1157_v28  ;;  %v1158_v30 = vadd.f32 %v1153_v29, %v660_v26 }
 0x179   : > { %1162 = vst [vmem:[#allocation2 + $0x8] sm:$0xff] %v1158_v30 }
 0x17a   : > { %v1173_v31 = vlaneseq  ;;  %v1187_v33 = vld [vmem:[%s602_s17] sm:$0xff]  ;;  %v1188_v35 = vld [vmem:[%s602_s17 + $0x8] sm:$0xff] }
 0x17b   : > { %v1171_v34 = vld [vmem:[%s643_s26] sm:$0x3]  ;;  %v1167_v36 = vld [vmem:[#allocation2 + $0x10] sm:$0xff]  ;;  %v1189_v40 = vunpack.c.l.bf16 %v1187_v33  ;;  %v1190_v41 = vunpack.c.h.bf16 %v1187_v33  ;;  %v1191_v46 = vunpack.c.l.bf16 %v1188_v35  ;;  %v1192_v47 = vunpack.c.h.bf16 %v1188_v35 }
 0x17c   : > { %v1174_v32 = vshrl.u32 %v1173_v31, 7  ;;  %v1168_v39 = vld [vmem:[#allocation2] sm:$0xff] }
 0x17e   : > { %v1175_v37 = vsub.s32 0, %v1174_v32  ;;  %v1179_v38 = vsub.s32 1, %v1174_v32  ;;  %v1169_v42 = vld [vmem:[#allocation2 + $0x18] sm:$0xff] }
 0x180   : > { %v1170_v43 = vld [vmem:[#allocation2 + $0x8] sm:$0xff]  ;;  %v1176_v44 = vrot.slane %v1171_v34, %v1175_v37  ;;  %v1180_v45 = vrot.slane %v1171_v34, %v1179_v38 }
 0x182   : > { %v1183_v48 = vadd.f32 %v1176_v44, %v1167_v36  ;;  %v1184_v49 = vadd.f32 %v1180_v45, %v1168_v39  ;;  %v1185_v50 = vadd.f32 %v1176_v44, %v1169_v42  ;;  %v1186_v51 = vadd.f32 %v1180_v45, %v1170_v43 }
 0x184   : > { %v1193_v52 = vadd.f32 %v1189_v40, %v1183_v48  ;;  %v1194_v53 = vadd.f32 %v1190_v41, %v1184_v49  ;;  %v1195_v54 = vadd.f32 %v1191_v46, %v1185_v50  ;;  %v1196_v55 = vadd.f32 %v1192_v47, %v1186_v51 }
 0x186   : > { %v1197_v56 = vmax.f32 %v1193_v52, 0.0  ;;  %v1198_v57 = vmax.f32 %v1194_v53, 0.0  ;;  %v1199_v58 = vmax.f32 %v1195_v54, 0.0  ;;  %v1200_v59 = vmax.f32 %v1196_v55, 0.0 }
 0x188   : > { %v1494_v60 = vpack.c.bf16 %v1198_v57, %v1197_v56  ;;  %v1495_v61 = vpack.c.bf16 %v1200_v59, %v1199_v58 }
 0x18a   : > { %1213 = vst [vmem:[%s2085_s30] sm:$0xff] %v1494_v60  ;;  %1214 = vst [vmem:[%s2085_s30 + $0x8] sm:$0xff] %v1495_v61 }
 0x18b PF: > { %1221 = sbr.rel (!%p1906_p13) target bundleno = 403 (0x193), region = 147  ;;  %s1496_s21 = sshll.u32 (%p1906_p13), %s1762_s22, 3 }
 0x18c   : > { %s1227_s6 = scalar_lea.vmem (%p1906_p13), %s2213_s4, %s1496_s21 }
 0x191   : > { %v1258_v62 = vld [vmem:[%s2085_s30] sm:$0xff]  ;;  %v1260_v63 = vld [vmem:[%s2085_s30 + $0x8] sm:$0xff] }
 0x192   : > { %1259 = vst [vmem:[%s1227_s6] sm:$0xff] %v1258_v62  ;;  %1261 = vst [vmem:[%s1227_s6 + $0x10] sm:$0xff] %v1260_v63 }
 0x193 PF: > { %s14_s25 = sadd.s32 1, %s1774_s25   ;;  %s2225_s29 = sld [smem:[#allocation9_spill]] }
 0x194   : > { %p11_p7 = scmp.ge.s32.totalorder %s14_s25, 20   ;;  %s2226_s11 = sld [smem:[#allocation7_spill]] }
 0x195   : > { %s2227_s8 = sld [smem:[#allocation8_spill]]  ;;  %s2228_s15 = smov %s1738_s16 }
 0x196   : > { %s2229_s16 = smov %s1898_s13  ;;  %s2230_s17 = smov %s1746_s18 }
 0x197   : > { %s2231_s18 = smov %s1895_s12  ;;  %s2232_s19 = smov %s1754_s20 }
 0x198   : > { %s2234_s21 = smov %s1766_s23  ;;  %s2235_s22 = smov %s1770_s24 }
 0x199   : > { %s2233_s20 = smov %s2225_s29  ;;  %13 = sbr.rel (!%p11_p7) target bundleno = 8 (0x8), region = 235 }
 0x19a   : > { %s2236_s23 = smov %s2226_s11 }
 0x19b   : > { %s2237_s24 = smov %s2227_s8 }

// kernel: resnet_forward.27
= control target key start
LH: loop header
LB: loop body
LE: loop exit
PB: predicated region body
PF: predicated region fallthrough
CT: control target
= control target key end

     0   :  { %s665_s1 = inlined_call_operand.vmem [shape: bf16[512,128], index: 1, kind: input, shape index: {}]   ;;  %s666_s0 = inlined_call_operand.vmem [shape: bf16[16,512], index: 0, kind: input, shape index: {}]   ;;  %s667_s2 = inlined_call_operand.vmem [shape: f32[1,128], index: 2, kind: input, shape index: {}]   ;;  %s668_s3 = inlined_call_operand.vmem [shape: f32[16,128], index: 3, kind: output, shape index: {}]  }
   0x1   :  { %v490_v0 = vld [vmem:[%s665_s1 + $0x78] sm:$0xff]   ;;  %v494_v4 = vld [vmem:[%s665_s1 + $0x70] sm:$0xff]   ;;  %v498_v8 = vld [vmem:[%s665_s1 + $0x68] sm:$0xff]  }
   0x2   :  { %v491_v1 = vld [vmem:[%s665_s1 + $0xf8] sm:$0xff]   ;;  %446 = vmatprep.subr.bf16.mxu0 %v490_v0  ;;  %v495_v5 = vld [vmem:[%s665_s1 + $0xf0] sm:$0xff]   ;;  %v499_v9 = vld [vmem:[%s665_s1 + $0xe8] sm:$0xff]  }
   0x3   :  { %v492_v2 = vld [vmem:[%s665_s1 + $0x38] sm:$0xff]   ;;  %468 = vmatprep.subr.bf16.mxu1 %v491_v1  ;;  %v496_v6 = vld [vmem:[%s665_s1 + $0x30] sm:$0xff]   ;;  %v500_v10 = vld [vmem:[%s665_s1 + $0x28] sm:$0xff]  }
   0x4   :  { %v493_v3 = vld [vmem:[%s665_s1 + $0xb8] sm:$0xff]   ;;  %447 = vmatpush3.bf16.msra.mxu0 %v492_v2  ;;  %v497_v7 = vld [vmem:[%s665_s1 + $0xb0] sm:$0xff]   ;;  %v501_v11 = vld [vmem:[%s665_s1 + $0xa8] sm:$0xff]  }
   0x5   :  { %469 = vmatpush3.bf16.msra.mxu1 %v493_v3  ;;  %448 = vmatprep.subr.bf16.mxu0 %v494_v4  ;;  %v502_v12 = vld [vmem:[%s665_s1 + $0x60] sm:$0xff]   ;;  %v506_v16 = vld [vmem:[%s665_s1 + $0x58] sm:$0xff]   ;;  %v510_v20 = vld [vmem:[%s665_s1 + $0x50] sm:$0xff]  }
   0x6   :  { %470 = vmatprep.subr.bf16.mxu1 %v495_v5  ;;  %v503_v13 = vld [vmem:[%s665_s1 + $0xe0] sm:$0xff]   ;;  %v507_v17 = vld [vmem:[%s665_s1 + $0xd8] sm:$0xff]   ;;  %v511_v21 = vld [vmem:[%s665_s1 + $0xd0] sm:$0xff]  }
   0x7   :  { %v504_v14 = vld [vmem:[%s665_s1 + $0x20] sm:$0xff]   ;;  %v508_v18 = vld [vmem:[%s665_s1 + $0x18] sm:$0xff]   ;;  %v512_v22 = vld [vmem:[%s665_s1 + $0x10] sm:$0xff]  }
   0x8   :  { %449 = vmatpush3.bf16.msra.mxu0 %v496_v6  ;;  %v505_v15 = vld [vmem:[%s665_s1 + $0xa0] sm:$0xff]   ;;  %v509_v19 = vld [vmem:[%s665_s1 + $0x98] sm:$0xff]   ;;  %v513_v23 = vld [vmem:[%s665_s1 + $0x90] sm:$0xff]  }
   0x9   :  { %471 = vmatpush3.bf16.msra.mxu1 %v497_v7  ;;  %450 = vmatprep.subr.bf16.mxu0 %v498_v8  ;;  %v514_v24 = vld [vmem:[%s665_s1 + $0x48] sm:$0xff]   ;;  %v518_v28 = vld [vmem:[%s665_s1 + $0x40] sm:$0xff]  }
   0xa   :  { %472 = vmatprep.subr.bf16.mxu1 %v499_v9  ;;  %v515_v25 = vld [vmem:[%s665_s1 + $0xc8] sm:$0xff]   ;;  %v519_v29 = vld [vmem:[%s665_s1 + $0xc0] sm:$0xff]  }
   0xb   :  { %v516_v26 = vld [vmem:[%s665_s1 + $0x8] sm:$0xff]   ;;  %v520_v30 = vld [vmem:[%s665_s1] sm:$0xff]  }
   0xc   :  { %451 = vmatpush3.bf16.msra.mxu0 %v500_v10  ;;  %v517_v27 = vld [vmem:[%s665_s1 + $0x88] sm:$0xff]   ;;  %v521_v31 = vld [vmem:[%s665_s1 + $0x80] sm:$0xff]  }
   0xd   :  { %473 = vmatpush3.bf16.msra.mxu1 %v501_v11  ;;  %452 = vmatprep.subr.bf16.mxu0 %v502_v12  ;;  %v522_v32 = vld [vmem:[%s666_s0] ss:$16 sps:$4 sm:$0xff]   ;;  %v524_v33 = vld [vmem:[%s666_s0 + $0x4] ss:$16 sps:$4 sm:$0xff]   ;;  %v525_v34 = vld [vmem:[%s666_s0 + $0x8] ss:$16 sps:$4 sm:$0xff]  }
   0xe   :  { %474 = vmatprep.subr.bf16.mxu1 %v503_v13  ;;  %v527_v35 = vld [vmem:[%s666_s0 + $0xc] ss:$16 sps:$4 sm:$0xff]   ;;  %335 = vmatprep.mubr.bf16.mxu0 %v524_v33  ;;  %v445_v43 = vld [vmem:[%s667_s2] ss:$0 sm:$0xff] }
   0xf   :  { %376 = vmatprep.mubr.bf16.mxu1 %v527_v35 }
  0x10   :  { %453 = vmatpush3.bf16.msra.mxu0 %v504_v14 }
  0x11   :  { %475 = vmatpush3.bf16.msra.mxu1 %v505_v15  ;;  %454 = vmatprep.subr.bf16.mxu0 %v506_v16 }
  0x12   :  { %476 = vmatprep.subr.bf16.mxu1 %v507_v17 }
  0x14   :  { %455 = vmatpush3.bf16.msra.mxu0 %v508_v18 }
  0x15   :  { %477 = vmatpush3.bf16.msra.mxu1 %v509_v19  ;;  %456 = vmatprep.subr.bf16.mxu0 %v510_v20 }
  0x16   :  { %478 = vmatprep.subr.bf16.mxu1 %v511_v21 }
  0x18   :  { %457 = vmatpush3.bf16.msra.mxu0 %v512_v22 }
  0x19   :  { %479 = vmatpush3.bf16.msra.mxu1 %v513_v23  ;;  %458 = vmatprep.subr.bf16.mxu0 %v514_v24 }
  0x1a   :  { %480 = vmatprep.subr.bf16.mxu1 %v515_v25 }
  0x1c   :  { %459 = vmatpush3.bf16.msra.mxu0 %v516_v26 }
  0x1d   :  { %481 = vmatpush3.bf16.msra.mxu1 %v517_v27  ;;  %460 = vmatprep.subr.bf16.mxu0 %v518_v28 }
  0x1e   :  { %482 = vmatprep.subr.bf16.mxu1 %v519_v29 }
  0x20   :  { %461 = vmatpush3.bf16.msra.mxu0 %v520_v30 }
  0x21   :  { %483 = vmatpush3.bf16.msra.mxu1 %v521_v31 }
  0x23   :  { %336 = vmatmul.mubr.bf16.vlgmr.msra.gmra.mxu0 %v522_v32 }
  0x24   :  { %377 = vmatmul.mubr.bf16.vlgmr.msra.gmra.mxu1 %v525_v34 }
  0xe3   :  { %v462_v36 = vpop.f32.mrf.mxu0 }
  0xe4   :  { %v484_v37 = vpop.f32.mrf.mxu1 }
  0xe5   :  { %v463_v38 = vpop.f32.mrf.mxu0 }
  0xe6   :  { %v464_v39 = vadd.f32 %v463_v38, %v462_v36  ;;  %v485_v40 = vpop.f32.mrf.mxu1 }
  0xe7   :  { %v486_v41 = vadd.f32 %v485_v40, %v484_v37  ;;  %v465_v42 = vpop.f32.mrf.mxu0 }
  0xe8   :  { %v487_v44 = vpop.f32.mrf.mxu1 }
  0xe9   :  { %v379_v45 = vadd.f32 %v486_v41, %v464_v39  ;;  %v466_v46 = vpop.f32.mrf.mxu0 }
  0xea   :  { %v467_v47 = vadd.f32 %v466_v46, %v465_v42  ;;  %v488_v48 = vpop.f32.mrf.mxu1 }
  0xeb   :  { %v401_v49 = vadd.f32 %v445_v43, %v379_v45  ;;  %v489_v50 = vadd.f32 %v488_v48, %v487_v44 }
  0xed   :  { %403 = vst [vmem:[%s668_s3] sm:$0xff] %v401_v49  ;;  %v382_v51 = vadd.f32 %v489_v50, %v467_v47 }
  0xef   :  { %v402_v52 = vadd.f32 %v445_v43, %v382_v51 }
  0xf1   :  { %404 = vst [vmem:[%s668_s3 + $0x8] sm:$0xff] %v402_v52 }

</bundles_post_ra>
